<compile_context>
chip_gen: v7x
topology: tpu7x:2x2x1
jax: 0.10.0
libtpu: 0.0.40
codegen_flags: <defaults>
</compile_context>

<pallas_src>
import jax
import jax.numpy as jnp
from jax.experimental import pallas as pl
from jax.experimental.pallas import tpu as pltpu

_VMEM_LIMIT = 64 * 1024 * 1024   # explicit scoped-VMEM ceiling (valid on v5e/v6e/v7x)


def _round_up(x, m):
    return ((x + m - 1) // m) * m


def _is_pow2(n):
    return n > 0 and (n & (n - 1)) == 0


def _col_index(n_lanes, W):
    """(1, n_lanes) int32 column index; only passed when W is not a power of two."""
    return (jnp.arange(n_lanes, dtype=jnp.int32) % W).reshape(1, n_lanes)


# -----------------------------------------------------------------------------
# Fused [pre-add] -> [BN scale/shift + ReLU] -> 3x3 conv -> [residual] -> [sigmoid]
# optionally emitting per-channel (sum, sumsq) of the output for the next BatchNorm.
# -----------------------------------------------------------------------------
def _make_conv3x3_kernel(H, W, Cin, Cout, Cpad, has_pre, has_bn, has_col,
                         has_post, act, want_stats):
    HW = H * W

    def kernel(*refs):
        it = iter(refs)
        x_ref = next(it)
        pre_ref = next(it) if has_pre else None
        ss_ref = next(it) if has_bn else None
        col_ref = next(it) if has_col else None
        w_ref = next(it)
        b_ref = next(it)
        post_ref = next(it) if has_post else None
        out_ref = next(it)
        stats_ref = next(it) if want_stats else None
        patch_ref = next(it)

        x = x_ref[0].astype(jnp.float32)              # (Cin, HW); VPU math in f32 (v5e-safe)
        if has_pre:                                   # fused "x = x + link"
            x = x + pre_ref[0].astype(jnp.float32)
        if has_bn:                                    # fused BatchNorm scale/shift + ReLU
            x = jnp.maximum(x * ss_ref[0] + ss_ref[1], 0.0)

        # In-kernel tap-validity masks from a lane iota (no HBM mask input).
        pos = jax.lax.broadcasted_iota(jnp.int32, (1, HW), 1)
        col = (pos & (W - 1)) if col_ref is None else col_ref[...]

        # Only the (Cpad - Cin) channel-padding rows of the im2col scratch need zeroing
        # (their weight columns are zero, but NaN garbage * 0 = NaN); the Cin data rows of
        # every tap block are fully overwritten below.  Vanishes when Cin % 8 == 0.
        if Cpad > Cin:
            zpad = jnp.zeros((Cpad - Cin, HW), patch_ref.dtype)
            for t in range(9):
                patch_ref[pl.ds(t * Cpad + Cin, Cpad - Cin), :] = zpad

        # im2col: tap t = dy*3+dx gathered with an XLU lane rotate + boundary mask, stored
        # as bf16 so the single MXU matmul below runs on the native bf16 path.
        # TODO(synk): if the 8 rolls saturate the 2 XLUs (v6e/v7x) at larger C, load a
        # +/-1-row halo via the BlockSpec and keep only the 3 column shifts as rolls.
        for dy in range(3):
            for dx in range(3):
                t = dy * 3 + dx
                s = (dy - 1) * W + (dx - 1)           # flat lane shift of this tap
                shifted = x if s == 0 else pltpu.roll(x, shift=(-s) % HW, axis=1)
                conds = []
                if dy == 0:
                    conds.append(pos >= W)             # row - 1 >= 0
                elif dy == 2:
                    conds.append(pos < (H - 1) * W)    # row + 1 <  H
                if dx == 0:
                    conds.append(col >= 1)             # col - 1 >= 0
                elif dx == 2:
                    conds.append(col < W - 1)          # col + 1 <  W
                tap = shifted
                if conds:
                    valid = conds[0]
                    for cnd in conds[1:]:
                        valid = valid & cnd
                    tap = jnp.where(valid, shifted, 0.0)
                patch_ref[pl.ds(t * Cpad, Cin), :] = tap.astype(patch_ref.dtype)

        # Single MXU matmul over K = 9*Cpad, lane-dense (Cout, HW) f32 accumulator.
        acc = jnp.dot(w_ref[...], patch_ref[...], preferred_element_type=jnp.float32)
        acc = acc + b_ref[...]
        if has_post:                                  # fused residual add
            acc = acc + post_ref[0].astype(jnp.float32)
        if act == "sigmoid":                          # exact sigmoid (final layer is tiny)
            acc = 1.0 / (1.0 + jnp.exp(-acc))
        out_val = acc.astype(out_ref.dtype)
        out_ref[0] = out_val

        if want_stats:
            # Per-channel (sum, sumsq) of THIS layer's output (the tensor the next
            # BatchNorm normalizes), accumulated across the batch grid axis so no
            # standalone stats pass re-reads the activation from HBM.
            # NOTE: E[x^2]-E[x]^2 in f32 is fine for BN-scale activations (|mean| ~ std).
            @pl.when(pl.program_id(0) == 0)
            def _():
                stats_ref[...] = jnp.zeros_like(stats_ref)
            ov = out_val.astype(jnp.float32)
            stats_ref[0] += jnp.sum(ov, axis=1, keepdims=True)
            stats_ref[1] += jnp.sum(ov * ov, axis=1, keepdims=True)

    return kernel


def conv3x3_flat(x, w_mat, b, H, W, *, pre_add=None, scale_shift=None,
                 post_add=None, act=None, want_stats=False, out_dtype=None):
    """3x3 / stride-1 / pad-1 conv on (N, Cin, H*W) lane-dense bf16 activations."""
    N, Cin, HW = x.shape
    assert HW == H * W
    Cout, K = w_mat.shape
    Cpad = K // 9
    out_dtype = x.dtype if out_dtype is None else out_dtype
    has_col = not _is_pow2(W)

    kernel = _make_conv3x3_kernel(H, W, Cin, Cout, Cpad, pre_add is not None,
                                  scale_shift is not None, has_col,
                                  post_add is not None, act, want_stats)

    in_specs = [pl.BlockSpec((1, Cin, HW), lambda n: (n, 0, 0))]
    args = [x]
    if pre_add is not None:
        in_specs.append(pl.BlockSpec((1, Cin, HW), lambda n: (n, 0, 0)))
        args.append(pre_add)
    if scale_shift is not None:
        in_specs.append(pl.BlockSpec((2, Cin, 1), lambda n: (0, 0, 0)))
        args.append(scale_shift)
    if has_col:   # only when W is not a power of two (col can't be pos & (W-1))
        in_specs.append(pl.BlockSpec((1, HW), lambda n: (0, 0)))
        args.append(_col_index(HW, W))
    in_specs += [pl.BlockSpec((Cout, K), lambda n: (0, 0)),
                 pl.BlockSpec((Cout, 1), lambda n: (0, 0))]
    args += [w_mat, b.reshape(Cout, 1)]
    if post_add is not None:
        in_specs.append(pl.BlockSpec((1, Cout, HW), lambda n: (n, 0, 0)))
        args.append(post_add)

    if want_stats:
        out_shape = (jax.ShapeDtypeStruct((N, Cout, HW), out_dtype),
                     jax.ShapeDtypeStruct((2, Cout, 1), jnp.float32))
        out_specs = (pl.BlockSpec((1, Cout, HW), lambda n: (n, 0, 0)),
                     pl.BlockSpec((2, Cout, 1), lambda n: (0, 0, 0)))
        # Stats output is a grid-carried accumulator -> batch axis must stay un-sharded.
        semantics = ("arbitrary",)
    else:
        out_shape = jax.ShapeDtypeStruct((N, Cout, HW), out_dtype)
        out_specs = pl.BlockSpec((1, Cout, HW), lambda n: (n, 0, 0))
        semantics = ("parallel",)

    return pl.pallas_call(
        kernel,
        out_shape=out_shape,
        grid=(N,),
        in_specs=in_specs,
        out_specs=out_specs,
        scratch_shapes=[pltpu.VMEM((9 * Cpad, HW), jnp.bfloat16)],
        compiler_params=pltpu.CompilerParams(dimension_semantics=semantics,
                                             vmem_limit_bytes=_VMEM_LIMIT),
        # TODO(synk): for v7x (64 MiB VMEM) at large H*W, add a row-tile grid axis
        # (multiple-of-8 rows with a 1-row halo) instead of whole-image blocks and mark it
        # "parallel" so both TensorCores split a single image.
    )(*args)


# -----------------------------------------------------------------------------
# BN finalize: fold batch (sum, sumsq) partials into per-channel (scale, shift).
# -----------------------------------------------------------------------------
def bn_scale_shift(stats, gamma, beta, count, eps=1e-5):
    """BN(x) = x*scale + shift with batch mean / biased variance (PyTorch train mode)."""
    mean = stats[0] / count                                    # (C, 1)
    var = jnp.maximum(stats[1] / count - mean * mean, 0.0)     # biased; f32 partials
    scale = gamma.reshape(-1, 1) * jax.lax.rsqrt(var + eps)
    shift = beta.reshape(-1, 1) - mean * scale
    return jnp.stack([scale, shift], axis=0)                   # (2, C, 1) f32


# -----------------------------------------------------------------------------
# ConvTranspose2d(C, C, k=3, s=2, p=1, output_padding=1): one stacked parity matmul
# -----------------------------------------------------------------------------
def _make_ct_kernel(H, W, HWp, C, Cpad, has_col):
    def kernel(*refs):
        it = iter(refs)
        x_ref = next(it)
        col_ref = next(it) if has_col else None
        w_ref = next(it)
        b_ref = next(it)
        out_ref = next(it)
        patch_ref = next(it)

        x = x_ref[0].astype(jnp.float32)                       # (C, HWp)
        pos = jax.lax.broadcasted_iota(jnp.int32, (1, HWp), 1)
        col = (pos & (W - 1)) if col_ref is None else col_ref[...]

        if Cpad > C:
            zpad = jnp.zeros((Cpad - C, HWp), patch_ref.dtype)
            for q in range(4):
                patch_ref[pl.ds(q * Cpad + C, Cpad - C), :] = zpad

        for q, (di, dj) in enumerate(((0, 0), (0, 1), (1, 0), (1, 1))):
            s = di * W + dj
            shifted = x if s == 0 else pltpu.roll(x, shift=(-s) % HWp, axis=1)
            conds = []
            if di == 1:
                conds.append(pos < (H - 1) * W)                 # row + 1 < H
            if dj == 1:
                conds.append(col < W - 1)                       # col + 1 < W
            tap = shifted
            if conds:
                valid = conds[0]
                for cnd in conds[1:]:
                    valid = valid & cnd
                tap = jnp.where(valid, shifted, 0.0)
            patch_ref[pl.ds(q * Cpad, C), :] = tap.astype(patch_ref.dtype)

        # ONE stacked MXU matmul for all four output parities: (4C, 4Cpad) x (4Cpad, HWp).
        acc = jnp.dot(w_ref[...], patch_ref[...], preferred_element_type=jnp.float32)
        out_ref[0] = (acc + b_ref[...]).astype(out_ref.dtype)

    return kernel


def conv_transpose_up2(x, w_stack, b_col, H, W):
    """Input (N, C, HWp) (lane-padded H*W) -> stacked parity planes (N, 4*C, HWp)."""
    N, C, HWp = x.shape
    FourC, K = w_stack.shape
    Cpad = K // 4
    has_col = not _is_pow2(W)
    kernel = _make_ct_kernel(H, W, HWp, C, Cpad, has_col)

    in_specs = [pl.BlockSpec((1, C, HWp), lambda n: (n, 0, 0))]
    args = [x]
    if has_col:
        in_specs.append(pl.BlockSpec((1, HWp), lambda n: (0, 0)))
        args.append(_col_index(HWp, W))
    in_specs += [pl.BlockSpec((FourC, K), lambda n: (0, 0)),
                 pl.BlockSpec((FourC, 1), lambda n: (0, 0))]
    args += [w_stack, b_col]

    return pl.pallas_call(
        kernel,
        out_shape=jax.ShapeDtypeStruct((N, FourC, HWp), x.dtype),
        grid=(N,),
        in_specs=in_specs,
        out_specs=pl.BlockSpec((1, FourC, HWp), lambda n: (n, 0, 0)),
        scratch_shapes=[pltpu.VMEM((4 * Cpad, HWp), jnp.bfloat16)],
        compiler_params=pltpu.CompilerParams(dimension_semantics=("parallel",),
                                             vmem_limit_bytes=_VMEM_LIMIT),
    )(*args)


# -----------------------------------------------------------------------------
# One-time weight repacking (hoisted out of the jitted forward) + parity interleave
# -----------------------------------------------------------------------------
def _conv_weight(w_oihw, cpad):
    """PyTorch Conv2d weight (Cout, Cin, 3, 3) -> im2col matrix (Cout, 9*cpad)."""
    cout, cin = w_oihw.shape[0], w_oihw.shape[1]
    w = jnp.transpose(w_oihw.reshape(cout, cin, 9), (0, 2, 1))   # (o, t, c), t = dy*3+dx
    w = jnp.pad(w, ((0, 0), (0, 0), (0, cpad - cin)))
    return w.reshape(cout, 9 * cpad)


def _ct_parity_weights(w_ct, cpad):
    """ConvTranspose2d weight (Cin, Cout, 3, 3) -> stacked matrix (4*Cout, 4*cpad).

    Output row pp*Cout + o (parity pp = py*2 + px); K-slot q = di*2 + dj carries tap
    (ky, kx) = (py + 1 - 2*di, px + 1 - 2*dj) when it exists, zeros otherwise.
    """
    cin, cout = w_ct.shape[0], w_ct.shape[1]
    mats = []
    for py in range(2):
        for px in range(2):
            slots = []
            for di in range(2):
                for dj in range(2):
                    ky, kx = py + 1 - 2 * di, px + 1 - 2 * dj
                    if 0 <= ky <= 2 and 0 <= kx <= 2:
                        blk = jnp.transpose(w_ct[:, :, ky, kx], (1, 0))   # (Cout, Cin)
                    else:
                        blk = jnp.zeros((cout, cin), w_ct.dtype)
                    slots.append(jnp.pad(blk, ((0, 0), (0, cpad - cin))))
            mats.append(jnp.concatenate(slots, axis=1))                   # (Cout, 4*cpad)
    return jnp.concatenate(mats, axis=0)                                  # (4*Cout, 4*cpad)


def prepare_params(p):
    """One-time repack of PyTorch-layout weights into bf16 matmul operands."""
    nin = p["bc1_w"].shape[1]
    cpad = _round_up(nin, 8)

    def cw(w):
        return _conv_weight(w, cpad).astype(jnp.bfloat16)

    def rb(q):
        return {"bn1_g": q["bn1_g"].astype(jnp.float32),
                "bn1_b": q["bn1_b"].astype(jnp.float32),
                "conv1_wm": cw(q["conv1_w"]), "conv1_b": q["conv1_b"].astype(jnp.float32),
                "bn2_g": q["bn2_g"].astype(jnp.float32),
                "bn2_b": q["bn2_b"].astype(jnp.float32),
                "conv2_wm": cw(q["conv2_w"]), "conv2_b": q["conv2_b"].astype(jnp.float32)}

    return {
        "ct_wm": _ct_parity_weights(p["ct_w"], cpad).astype(jnp.bfloat16),
        "ct_bt": jnp.tile(p["ct_b"].astype(jnp.float32), 4).reshape(4 * nin, 1),
        "bc1_wm": cw(p["bc1_w"]), "bc1_b": p["bc1_b"].astype(jnp.float32),
        "bc2_wm": cw(p["bc2_w"]), "bc2_b": p["bc2_b"].astype(jnp.float32),
        "rb1": rb(p["rb1"]), "rb2": rb(p["rb2"]),
    }


def _interleave_parities(yp, H, W):
    """(N, 4, C, H*W) parity planes (pp = py*2+px) -> (N, C, 2H, 2W)."""
    N, _, C, _ = yp.shape
    y = yp.reshape(N, 2, 2, C, H, W)                  # (n, py, px, c, i, j)
    y = jnp.transpose(y, (0, 3, 4, 1, 5, 2))          # (n, c, i, py, j, px)
    return y.reshape(N, C, 2 * H, 2 * W)


# -----------------------------------------------------------------------------
# LastBlock forward
# -----------------------------------------------------------------------------
def residual_block(x, x_stats, q, H, W, count, want_out_stats):
    """x: (N,C,HW) bf16; x_stats: (2,C,1) [sum, sumsq] of x.  Returns out[, out_stats]."""
    ss1 = bn_scale_shift(x_stats, q["bn1_g"], q["bn1_b"], count)
    h, h_stats = conv3x3_flat(x, q["conv1_wm"], q["conv1_b"], H, W,
                              scale_shift=ss1, want_stats=True)
    ss2 = bn_scale_shift(h_stats, q["bn2_g"], q["bn2_b"], count)
    return conv3x3_flat(h, q["conv2_wm"], q["conv2_b"], H, W,
                        scale_shift=ss2, post_add=x, want_stats=want_out_stats)


def last_block_forward(x, link, pp):
    """x: (N, C, H, W) f32 NCHW;  link: (N, C, 2H, 2W) f32 NCHW  ->  (N, nout, 2H, 2W) f32."""
    N, C, H, W = x.shape
    Ho, Wo = 2 * H, 2 * W
    HWo = Ho * Wo
    count = float(N * HWo)

    # --- ConvTranspose2d upsample: one stacked parity matmul on the UN-dilated input ----
    HWp = _round_up(H * W, 128)                       # lane-pad the small pre-upsample tensor
    xf = jnp.pad(x.astype(jnp.bfloat16).reshape(N, C, H * W),
                 ((0, 0), (0, 0), (0, HWp - H * W)))
    yp = conv_transpose_up2(xf, pp["ct_wm"], pp["ct_bt"], H, W)          # (N, 4*C, HWp)
    xu = _interleave_parities(yp[..., :H * W].reshape(N, 4, C, H * W), H, W)
    xu = xu.reshape(N, C, HWo)
    # TODO(synk): the parity interleave is one XLA transpose pass (write+read of the largest
    # activation); fusing it into baseconv1 needs stride-2 lane scatters not relied on here.

    # --- add(x, link) fused into baseconv1; every conv feeding a BN also emits its stats --
    linkf = link.astype(jnp.bfloat16).reshape(N, C, HWo)
    h, s = conv3x3_flat(xu, pp["bc1_wm"], pp["bc1_b"], Ho, Wo,
                        pre_add=linkf, want_stats=True)
    h, s = residual_block(h, s, pp["rb1"], Ho, Wo, count, want_out_stats=True)
    h = residual_block(h, s, pp["rb2"], Ho, Wo, count, want_out_stats=False)
    out = conv3x3_flat(h, pp["bc2_wm"], pp["bc2_b"], Ho, Wo,
                       act="sigmoid", out_dtype=jnp.float32)
    # TODO(synk): the upsample='nearest' branch of the module is not implemented
    # (module default is 'transpose').
    return out.reshape(N, -1, Ho, Wo)


# -----------------------------------------------------------------------------
# Pure-JAX f32 reference (numeric check of the Pallas path)
# -----------------------------------------------------------------------------
def _ref_conv3x3(x, w, b):
    y = jax.lax.conv_general_dilated(x, w, (1, 1), ((1, 1), (1, 1)),
                                     dimension_numbers=("NCHW", "OIHW", "NCHW"))
    return y + b.reshape(1, -1, 1, 1)


def _ref_bn_relu(x, g, b, eps=1e-5):
    mean = jnp.mean(x, axis=(0, 2, 3), keepdims=True)
    var = jnp.mean((x - mean) ** 2, axis=(0, 2, 3), keepdims=True)   # biased (train mode)
    xn = (x - mean) * jax.lax.rsqrt(var + eps)
    return jnp.maximum(xn * g.reshape(1, -1, 1, 1) + b.reshape(1, -1, 1, 1), 0.0)


def _ref_conv_transpose(x, w, b):
    # ConvTranspose2d(k=3, s=2, p=1, op=1) == conv over the 2x-dilated input with the
    # spatially-flipped, channel-swapped kernel and asymmetric padding (1, 2).
    wf = jnp.transpose(jnp.flip(w, (2, 3)), (1, 0, 2, 3))
    y = jax.lax.conv_general_dilated(x, wf, (1, 1), ((1, 2), (1, 2)),
                                     lhs_dilation=(2, 2),
                                     dimension_numbers=("NCHW", "OIHW", "NCHW"))
    return y + b.reshape(1, -1, 1, 1)


def last_block_reference(x, link, p):
    def res_block(xin, q):
        y = _ref_bn_relu(xin, q["bn1_g"], q["bn1_b"])
        y = _ref_conv3x3(y, q["conv1_w"], q["conv1_b"])
        y = _ref_bn_relu(y, q["bn2_g"], q["bn2_b"])
        y = _ref_conv3x3(y, q["conv2_w"], q["conv2_b"])
        return xin + y

    h = _ref_conv_transpose(x, p["ct_w"], p["ct_b"]) + link
    h = _ref_conv3x3(h, p["bc1_w"], p["bc1_b"])
    h = res_block(h, p["rb1"])
    h = res_block(h, p["rb2"])
    h = _ref_conv3x3(h, p["bc2_w"], p["bc2_b"])
    return jax.nn.sigmoid(h)


# -----------------------------------------------------------------------------
# Deterministic parameter init (PyTorch layouts; synthetic values)
# -----------------------------------------------------------------------------
def init_params(key, nin, nout):
    ks = jax.random.split(key, 16)

    def conv_w(k, cout, cin):
        return jax.random.normal(k, (cout, cin, 3, 3), jnp.float32) * 0.1

    def bias(k, c):
        return jax.random.normal(k, (c,), jnp.float32) * 0.05

    def rb(koff):
        return {"bn1_g": jnp.ones((nin,), jnp.float32),
                "bn1_b": jnp.zeros((nin,), jnp.float32),
                "conv1_w": conv_w(ks[koff], nin, nin), "conv1_b": bias(ks[koff + 1], nin),
                "bn2_g": jnp.ones((nin,), jnp.float32),
                "bn2_b": jnp.zeros((nin,), jnp.float32),
                "conv2_w": conv_w(ks[koff + 2], nin, nin), "conv2_b": bias(ks[koff + 3], nin)}

    return {
        "ct_w": jax.random.normal(ks[0], (nin, nin, 3, 3), jnp.float32) * 0.1,  # (in,out,kh,kw)
        "ct_b": bias(ks[1], nin),
        "bc1_w": conv_w(ks[2], nin, nin), "bc1_b": bias(ks[3], nin),
        "bc2_w": conv_w(ks[4], nout, nin), "bc2_b": bias(ks[5], nout),
        "rb1": rb(6), "rb2": rb(10),
    }


if __name__ == "__main__":
    nin, nout = 4, 2
    N, H, W = 2, 8, 8

    key = jax.random.PRNGKey(0)
    kx, kl, kp = jax.random.split(key, 3)
    x = jax.random.normal(kx, (N, nin, H, W), jnp.float32)              # NCHW
    link = jax.random.normal(kl, (N, nin, 2 * H, 2 * W), jnp.float32)   # NCHW
    params = init_params(kp, nin, nout)
    prepared = prepare_params(params)                                   # one-time repacking

    out = jax.jit(last_block_forward)(x, link, prepared)
    jax.block_until_ready(out)
    assert out.shape == (N, nout, 2 * H, 2 * W), out.shape
    assert bool(jnp.all(jnp.isfinite(out)))

    # Numeric check against a pure-JAX f32 reference (tolerance covers bf16 activations).
    ref = last_block_reference(x, link, params)
    err = float(jnp.max(jnp.abs(out - ref)))
    assert err < 5e-2, f"max abs err vs f32 reference: {err}"

    print("KERNEL_OK")
</pallas_src>

<mosaic_0001>
module attributes {stable_mosaic.version = 11 : i64} {
  func.func @kernel(%arg0: i32, %arg1: memref<1x4x128xbf16, #tpu.memory_space<vmem>>, %arg2: memref<16x32xbf16, #tpu.memory_space<vmem>>, %arg3: memref<16x1xf32, #tpu.memory_space<vmem>>, %arg4: memref<1x16x128xbf16, #tpu.memory_space<vmem>>, %arg5: memref<32x128xbf16, #tpu.memory_space<vmem>>) attributes {dimension_semantics = [#tpu.dimension_semantics<parallel>], iteration_bounds = array<i64: 2>, scalar_prefetch = 0 : i64, scratch_operands = 1 : i64, tpu.core_type = #tpu.core_type<tc>, window_params = [{transform_indices = @transform_0, window_bounds = array<i64: 1, 4, 128>}, {pipeline_mode = #tpu.pipeline_mode<synchronous>, transform_indices = @transform_1, window_bounds = array<i64: 16, 32>}, {pipeline_mode = #tpu.pipeline_mode<synchronous>, transform_indices = @transform_2, window_bounds = array<i64: 16, 1>}, {transform_indices = @transform_3, window_bounds = array<i64: 1, 16, 128>}]} {
    %c0 = arith.constant 0 : index
    %c0_0 = arith.constant 0 : index
    %c0_1 = arith.constant 0 : index
    %0 = vector.load %arg1[%c0, %c0_0, %c0_1] : memref<1x4x128xbf16, #tpu.memory_space<vmem>>, vector<1x4x128xbf16>
    %1 = vector.shape_cast %0 : vector<1x4x128xbf16> to vector<4x128xbf16>
    %2 = arith.extf %1 : vector<4x128xbf16> to vector<4x128xf32>
    %3 = tpu.iota {dimensions = array<i32: 1>} : vector<1x128xi32>
    %c7_i32 = arith.constant 7 : i32
    %4 = vector.broadcast %c7_i32 : i32 to vector<1x128xi32>
    %5 = arith.andi %3, %4 : vector<1x128xi32>
    %cst = arith.constant 0.000000e+00 : bf16
    %6 = vector.broadcast %cst : bf16 to vector<4x128xbf16>
    %c4 = arith.constant 4 : index
    %c0_2 = arith.constant 0 : index
    %7 = vector.load %arg5[%c4, %c0_2] : memref<32x128xbf16, #tpu.memory_space<vmem>>, vector<4x128xbf16>
    tpu.vector_store %arg5[%c4, %c0_2], %6 {strides = array<i32>} : memref<32x128xbf16, #tpu.memory_space<vmem>>, vector<4x128xbf16>,
    %c12 = arith.constant 12 : index
    %c0_3 = arith.constant 0 : index
    %8 = vector.load %arg5[%c12, %c0_3] : memref<32x128xbf16, #tpu.memory_space<vmem>>, vector<4x128xbf16>
    tpu.vector_store %arg5[%c12, %c0_3], %6 {strides = array<i32>} : memref<32x128xbf16, #tpu.memory_space<vmem>>, vector<4x128xbf16>,
    %c20 = arith.constant 20 : index
    %c0_4 = arith.constant 0 : index
    %9 = vector.load %arg5[%c20, %c0_4] : memref<32x128xbf16, #tpu.memory_space<vmem>>, vector<4x128xbf16>
    tpu.vector_store %arg5[%c20, %c0_4], %6 {strides = array<i32>} : memref<32x128xbf16, #tpu.memory_space<vmem>>, vector<4x128xbf16>,
    %c28 = arith.constant 28 : index
    %c0_5 = arith.constant 0 : index
    %10 = vector.load %arg5[%c28, %c0_5] : memref<32x128xbf16, #tpu.memory_space<vmem>>, vector<4x128xbf16>
    tpu.vector_store %arg5[%c28, %c0_5], %6 {strides = array<i32>} : memref<32x128xbf16, #tpu.memory_space<vmem>>, vector<4x128xbf16>,
    %11 = arith.truncf %2 : vector<4x128xf32> to vector<4x128xbf16>
    %c0_6 = arith.constant 0 : index
    %c0_7 = arith.constant 0 : index
    %12 = vector.load %arg5[%c0_6, %c0_7] : memref<32x128xbf16, #tpu.memory_space<vmem>>, vector<4x128xbf16>
    tpu.vector_store %arg5[%c0_6, %c0_7], %11 {strides = array<i32>} : memref<32x128xbf16, #tpu.memory_space<vmem>>, vector<4x128xbf16>,
    %c127_i32 = arith.constant 127 : i32
    %13 = tpu.dynamic_rotate %2 by %c127_i32 dim 1 : vector<4x128xf32>, i32 -> vector<4x128xf32>
    %c7_i32_8 = arith.constant 7 : i32
    %14 = vector.broadcast %c7_i32_8 : i32 to vector<1x128xi32>
    %15 = arith.cmpi slt, %5, %14 : vector<1x128xi32>
    %cst_9 = arith.constant 0.000000e+00 : f32
    %16 = vector.shape_cast %15 : vector<1x128xi1> to vector<1x128xi1>
    %17 = vector.broadcast %16 : vector<1x128xi1> to vector<4x128xi1>
    %18 = vector.broadcast %cst_9 : f32 to vector<4x128xf32>
    %19 = arith.select %17, %13, %18 : vector<4x128xi1>, vector<4x128xf32>
    %20 = arith.truncf %19 : vector<4x128xf32> to vector<4x128xbf16>
    %c8 = arith.constant 8 : index
    %c0_10 = arith.constant 0 : index
    %21 = vector.load %arg5[%c8, %c0_10] : memref<32x128xbf16, #tpu.memory_space<vmem>>, vector<4x128xbf16>
    tpu.vector_store %arg5[%c8, %c0_10], %20 {strides = array<i32>} : memref<32x128xbf16, #tpu.memory_space<vmem>>, vector<4x128xbf16>,
    %c120_i32 = arith.constant 120 : i32
    %22 = tpu.dynamic_rotate %2 by %c120_i32 dim 1 : vector<4x128xf32>, i32 -> vector<4x128xf32>
    %c56_i32 = arith.constant 56 : i32
    %23 = vector.broadcast %c56_i32 : i32 to vector<1x128xi32>
    %24 = arith.cmpi slt, %3, %23 : vector<1x128xi32>
    %cst_11 = arith.constant 0.000000e+00 : f32
    %25 = vector.shape_cast %24 : vector<1x128xi1> to vector<1x128xi1>
    %26 = vector.broadcast %25 : vector<1x128xi1> to vector<4x128xi1>
    %27 = vector.broadcast %cst_11 : f32 to vector<4x128xf32>
    %28 = arith.select %26, %22, %27 : vector<4x128xi1>, vector<4x128xf32>
    %29 = arith.truncf %28 : vector<4x128xf32> to vector<4x128xbf16>
    %c16 = arith.constant 16 : index
    %c0_12 = arith.constant 0 : index
    %30 = vector.load %arg5[%c16, %c0_12] : memref<32x128xbf16, #tpu.memory_space<vmem>>, vector<4x128xbf16>
    tpu.vector_store %arg5[%c16, %c0_12], %29 {strides = array<i32>} : memref<32x128xbf16, #tpu.memory_space<vmem>>, vector<4x128xbf16>,
    %c119_i32 = arith.constant 119 : i32
    %31 = tpu.dynamic_rotate %2 by %c119_i32 dim 1 : vector<4x128xf32>, i32 -> vector<4x128xf32>
    %c56_i32_13 = arith.constant 56 : i32
    %32 = vector.broadcast %c56_i32_13 : i32 to vector<1x128xi32>
    %33 = arith.cmpi slt, %3, %32 : vector<1x128xi32>
    %c7_i32_14 = arith.constant 7 : i32
    %34 = vector.broadcast %c7_i32_14 : i32 to vector<1x128xi32>
    %35 = arith.cmpi slt, %5, %34 : vector<1x128xi32>
    %36 = arith.andi %33, %35 : vector<1x128xi1>
    %cst_15 = arith.constant 0.000000e+00 : f32
    %37 = vector.shape_cast %36 : vector<1x128xi1> to vector<1x128xi1>
    %38 = vector.broadcast %37 : vector<1x128xi1> to vector<4x128xi1>
    %39 = vector.broadcast %cst_15 : f32 to vector<4x128xf32>
    %40 = arith.select %38, %31, %39 : vector<4x128xi1>, vector<4x128xf32>
    %41 = arith.truncf %40 : vector<4x128xf32> to vector<4x128xbf16>
    %c24 = arith.constant 24 : index
    %c0_16 = arith.constant 0 : index
    %42 = vector.load %arg5[%c24, %c0_16] : memref<32x128xbf16, #tpu.memory_space<vmem>>, vector<4x128xbf16>
    tpu.vector_store %arg5[%c24, %c0_16], %41 {strides = array<i32>} : memref<32x128xbf16, #tpu.memory_space<vmem>>, vector<4x128xbf16>,
    %c0_17 = arith.constant 0 : index
    %c0_18 = arith.constant 0 : index
    %43 = vector.load %arg2[%c0_17, %c0_18] : memref<16x32xbf16, #tpu.memory_space<vmem>>, vector<16x32xbf16>
    %c0_19 = arith.constant 0 : index
    %c0_20 = arith.constant 0 : index
    %44 = vector.load %arg5[%c0_19, %c0_20] : memref<32x128xbf16, #tpu.memory_space<vmem>>, vector<32x128xbf16>
    %cst_21 = arith.constant dense<0.000000e+00> : vector<16x128xf32>
    %45 = tpu.matmul %43, %44, %cst_21 {dimension_numbers = #tpu.dot_dimension_numbers<[1], [0], [0], [1], [0, 0, 1, 1], [], []>} : vector<16x32xbf16>, vector<32x128xbf16>, vector<16x128xf32> -> vector<16x128xf32>
    %c0_22 = arith.constant 0 : index
    %c0_23 = arith.constant 0 : index
    %46 = vector.load %arg3[%c0_22, %c0_23] : memref<16x1xf32, #tpu.memory_space<vmem>>, vector<16x1xf32>
    %47 = vector.broadcast %46 : vector<16x1xf32> to vector<16x128xf32>
    %48 = arith.addf %45, %47 : vector<16x128xf32>
    %49 = arith.truncf %48 : vector<16x128xf32> to vector<16x128xbf16>
    %c0_24 = arith.constant 0 : index
    %c0_25 = arith.constant 0 : index
    %c0_26 = arith.constant 0 : index
    %50 = vector.load %arg4[%c0_24, %c0_25, %c0_26] : memref<1x16x128xbf16, #tpu.memory_space<vmem>>, vector<1x16x128xbf16>
    %51 = vector.shape_cast %50 : vector<1x16x128xbf16> to vector<16x128xbf16>
    %52 = vector.shape_cast %49 : vector<16x128xbf16> to vector<1x16x128xbf16>
    tpu.vector_store %arg4[%c0_24, %c0_25, %c0_26], %52 {strides = array<i32>} : memref<1x16x128xbf16, #tpu.memory_space<vmem>>, vector<1x16x128xbf16>,
    return
  }
  func.func @transform_0(%arg0: i32) -> (i32, i32, i32) {
    %c0_i32 = arith.constant 0 : i32
    %c0_i32_0 = arith.constant 0 : i32
    %c0_i32_1 = arith.constant 0 : i32
    return %arg0, %c0_i32, %c0_i32_0 : i32, i32, i32
  }
  func.func @transform_1(%arg0: i32) -> (i32, i32) {
    %c0_i32 = arith.constant 0 : i32
    %c0_i32_0 = arith.constant 0 : i32
    %c0_i32_1 = arith.constant 0 : i32
    return %c0_i32, %c0_i32_0 : i32, i32
  }
  func.func @transform_2(%arg0: i32) -> (i32, i32) {
    %c0_i32 = arith.constant 0 : i32
    %c0_i32_0 = arith.constant 0 : i32
    %c0_i32_1 = arith.constant 0 : i32
    return %c0_i32, %c0_i32_0 : i32, i32
  }
  func.func @transform_3(%arg0: i32) -> (i32, i32, i32) {
    %c0_i32 = arith.constant 0 : i32
    %c0_i32_0 = arith.constant 0 : i32
    %c0_i32_1 = arith.constant 0 : i32
    return %arg0, %c0_i32, %c0_i32_0 : i32, i32, i32
  }
}

module attributes {stable_mosaic.version = 11 : i64} {
  func.func @kernel(%arg0: i32, %arg1: memref<1x4x256xbf16, #tpu.memory_space<vmem>>, %arg2: memref<1x4x256xbf16, #tpu.memory_space<vmem>>, %arg3: memref<4x72xbf16, #tpu.memory_space<vmem>>, %arg4: memref<4x1xf32, #tpu.memory_space<vmem>>, %arg5: memref<1x4x256xbf16, #tpu.memory_space<vmem>>, %arg6: memref<2x4x1xf32, #tpu.memory_space<vmem>>, %arg7: memref<72x256xbf16, #tpu.memory_space<vmem>>) attributes {dimension_semantics = [#tpu.dimension_semantics<arbitrary>], iteration_bounds = array<i64: 2>, scalar_prefetch = 0 : i64, scratch_operands = 1 : i64, tpu.core_type = #tpu.core_type<tc>, window_params = [{transform_indices = @transform_0, window_bounds = array<i64: 1, 4, 256>}, {transform_indices = @transform_1, window_bounds = array<i64: 1, 4, 256>}, {pipeline_mode = #tpu.pipeline_mode<synchronous>, transform_indices = @transform_2, window_bounds = array<i64: 4, 72>}, {pipeline_mode = #tpu.pipeline_mode<synchronous>, transform_indices = @transform_3, window_bounds = array<i64: 4, 1>}, {transform_indices = @transform_4, window_bounds = array<i64: 1, 4, 256>}, {pipeline_mode = #tpu.pipeline_mode<synchronous>, transform_indices = @transform_5, window_bounds = array<i64: 2, 4, 1>}]} {
    %c0 = arith.constant 0 : index
    %c0_0 = arith.constant 0 : index
    %c0_1 = arith.constant 0 : index
    %0 = vector.load %arg1[%c0, %c0_0, %c0_1] : memref<1x4x256xbf16, #tpu.memory_space<vmem>>, vector<1x4x256xbf16>
    %1 = vector.shape_cast %0 : vector<1x4x256xbf16> to vector<4x256xbf16>
    %2 = arith.extf %1 : vector<4x256xbf16> to vector<4x256xf32>
    %c0_2 = arith.constant 0 : index
    %c0_3 = arith.constant 0 : index
    %c0_4 = arith.constant 0 : index
    %3 = vector.load %arg2[%c0_2, %c0_3, %c0_4] : memref<1x4x256xbf16, #tpu.memory_space<vmem>>, vector<1x4x256xbf16>
    %4 = vector.shape_cast %3 : vector<1x4x256xbf16> to vector<4x256xbf16>
    %5 = arith.extf %4 : vector<4x256xbf16> to vector<4x256xf32>
    %6 = arith.addf %2, %5 : vector<4x256xf32>
    %7 = tpu.iota {dimensions = array<i32: 1>} : vector<1x256xi32>
    %c15_i32 = arith.constant 15 : i32
    %8 = vector.broadcast %c15_i32 : i32 to vector<1x256xi32>
    %9 = arith.andi %7, %8 : vector<1x256xi32>
    %cst = arith.constant 0.000000e+00 : bf16
    %10 = vector.broadcast %cst : bf16 to vector<4x256xbf16>
    %c4 = arith.constant 4 : index
    %c0_5 = arith.constant 0 : index
    %11 = vector.load %arg7[%c4, %c0_5] : memref<72x256xbf16, #tpu.memory_space<vmem>>, vector<4x256xbf16>
    tpu.vector_store %arg7[%c4, %c0_5], %10 {strides = array<i32>} : memref<72x256xbf16, #tpu.memory_space<vmem>>, vector<4x256xbf16>,
    %c12 = arith.constant 12 : index
    %c0_6 = arith.constant 0 : index
    %12 = vector.load %arg7[%c12, %c0_6] : memref<72x256xbf16, #tpu.memory_space<vmem>>, vector<4x256xbf16>
    tpu.vector_store %arg7[%c12, %c0_6], %10 {strides = array<i32>} : memref<72x256xbf16, #tpu.memory_space<vmem>>, vector<4x256xbf16>,
    %c20 = arith.constant 20 : index
    %c0_7 = arith.constant 0 : index
    %13 = vector.load %arg7[%c20, %c0_7] : memref<72x256xbf16, #tpu.memory_space<vmem>>, vector<4x256xbf16>
    tpu.vector_store %arg7[%c20, %c0_7], %10 {strides = array<i32>} : memref<72x256xbf16, #tpu.memory_space<vmem>>, vector<4x256xbf16>,
    %c28 = arith.constant 28 : index
    %c0_8 = arith.constant 0 : index
    %14 = vector.load %arg7[%c28, %c0_8] : memref<72x256xbf16, #tpu.memory_space<vmem>>, vector<4x256xbf16>
    tpu.vector_store %arg7[%c28, %c0_8], %10 {strides = array<i32>} : memref<72x256xbf16, #tpu.memory_space<vmem>>, vector<4x256xbf16>,
    %c36 = arith.constant 36 : index
    %c0_9 = arith.constant 0 : index
    %15 = vector.load %arg7[%c36, %c0_9] : memref<72x256xbf16, #tpu.memory_space<vmem>>, vector<4x256xbf16>
    tpu.vector_store %arg7[%c36, %c0_9], %10 {strides = array<i32>} : memref<72x256xbf16, #tpu.memory_space<vmem>>, vector<4x256xbf16>,
    %c44 = arith.constant 44 : index
    %c0_10 = arith.constant 0 : index
    %16 = vector.load %arg7[%c44, %c0_10] : memref<72x256xbf16, #tpu.memory_space<vmem>>, vector<4x256xbf16>
    tpu.vector_store %arg7[%c44, %c0_10], %10 {strides = array<i32>} : memref<72x256xbf16, #tpu.memory_space<vmem>>, vector<4x256xbf16>,
    %c52 = arith.constant 52 : index
    %c0_11 = arith.constant 0 : index
    %17 = vector.load %arg7[%c52, %c0_11] : memref<72x256xbf16, #tpu.memory_space<vmem>>, vector<4x256xbf16>
    tpu.vector_store %arg7[%c52, %c0_11], %10 {strides = array<i32>} : memref<72x256xbf16, #tpu.memory_space<vmem>>, vector<4x256xbf16>,
    %c60 = arith.constant 60 : index
    %c0_12 = arith.constant 0 : index
    %18 = vector.load %arg7[%c60, %c0_12] : memref<72x256xbf16, #tpu.memory_space<vmem>>, vector<4x256xbf16>
    tpu.vector_store %arg7[%c60, %c0_12], %10 {strides = array<i32>} : memref<72x256xbf16, #tpu.memory_space<vmem>>, vector<4x256xbf16>,
    %c68 = arith.constant 68 : index
    %c0_13 = arith.constant 0 : index
    %19 = vector.load %arg7[%c68, %c0_13] : memref<72x256xbf16, #tpu.memory_space<vmem>>, vector<4x256xbf16>
    tpu.vector_store %arg7[%c68, %c0_13], %10 {strides = array<i32>} : memref<72x256xbf16, #tpu.memory_space<vmem>>, vector<4x256xbf16>,
    %c17_i32 = arith.constant 17 : i32
    %20 = tpu.dynamic_rotate %6 by %c17_i32 dim 1 : vector<4x256xf32>, i32 -> vector<4x256xf32>
    %c16_i32 = arith.constant 16 : i32
    %21 = vector.broadcast %c16_i32 : i32 to vector<1x256xi32>
    %22 = arith.cmpi sge, %7, %21 : vector<1x256xi32>
    %c1_i32 = arith.constant 1 : i32
    %23 = vector.broadcast %c1_i32 : i32 to vector<1x256xi32>
    %24 = arith.cmpi sge, %9, %23 : vector<1x256xi32>
    %25 = arith.andi %22, %24 : vector<1x256xi1>
    %cst_14 = arith.constant 0.000000e+00 : f32
    %26 = vector.shape_cast %25 : vector<1x256xi1> to vector<1x256xi1>
    %27 = vector.broadcast %26 : vector<1x256xi1> to vector<4x256xi1>
    %28 = vector.broadcast %cst_14 : f32 to vector<4x256xf32>
    %29 = arith.select %27, %20, %28 : vector<4x256xi1>, vector<4x256xf32>
    %30 = arith.truncf %29 : vector<4x256xf32> to vector<4x256xbf16>
    %c0_15 = arith.constant 0 : index
    %c0_16 = arith.constant 0 : index
    %31 = vector.load %arg7[%c0_15, %c0_16] : memref<72x256xbf16, #tpu.memory_space<vmem>>, vector<4x256xbf16>
    tpu.vector_store %arg7[%c0_15, %c0_16], %30 {strides = array<i32>} : memref<72x256xbf16, #tpu.memory_space<vmem>>, vector<4x256xbf16>,
    %c16_i32_17 = arith.constant 16 : i32
    %32 = tpu.dynamic_rotate %6 by %c16_i32_17 dim 1 : vector<4x256xf32>, i32 -> vector<4x256xf32>
    %c16_i32_18 = arith.constant 16 : i32
    %33 = vector.broadcast %c16_i32_18 : i32 to vector<1x256xi32>
    %34 = arith.cmpi sge, %7, %33 : vector<1x256xi32>
    %cst_19 = arith.constant 0.000000e+00 : f32
    %35 = vector.shape_cast %34 : vector<1x256xi1> to vector<1x256xi1>
    %36 = vector.broadcast %35 : vector<1x256xi1> to vector<4x256xi1>
    %37 = vector.broadcast %cst_19 : f32 to vector<4x256xf32>
    %38 = arith.select %36, %32, %37 : vector<4x256xi1>, vector<4x256xf32>
    %39 = arith.truncf %38 : vector<4x256xf32> to vector<4x256xbf16>
    %c8 = arith.constant 8 : index
    %c0_20 = arith.constant 0 : index
    %40 = vector.load %arg7[%c8, %c0_20] : memref<72x256xbf16, #tpu.memory_space<vmem>>, vector<4x256xbf16>
    tpu.vector_store %arg7[%c8, %c0_20], %39 {strides = array<i32>} : memref<72x256xbf16, #tpu.memory_space<vmem>>, vector<4x256xbf16>,
    %c15_i32_21 = arith.constant 15 : i32
    %41 = tpu.dynamic_rotate %6 by %c15_i32_21 dim 1 : vector<4x256xf32>, i32 -> vector<4x256xf32>
    %c16_i32_22 = arith.constant 16 : i32
    %42 = vector.broadcast %c16_i32_22 : i32 to vector<1x256xi32>
    %43 = arith.cmpi sge, %7, %42 : vector<1x256xi32>
    %c15_i32_23 = arith.constant 15 : i32
    %44 = vector.broadcast %c15_i32_23 : i32 to vector<1x256xi32>
    %45 = arith.cmpi slt, %9, %44 : vector<1x256xi32>
    %46 = arith.andi %43, %45 : vector<1x256xi1>
    %cst_24 = arith.constant 0.000000e+00 : f32
    %47 = vector.shape_cast %46 : vector<1x256xi1> to vector<1x256xi1>
    %48 = vector.broadcast %47 : vector<1x256xi1> to vector<4x256xi1>
    %49 = vector.broadcast %cst_24 : f32 to vector<4x256xf32>
    %50 = arith.select %48, %41, %49 : vector<4x256xi1>, vector<4x256xf32>
    %51 = arith.truncf %50 : vector<4x256xf32> to vector<4x256xbf16>
    %c16 = arith.constant 16 : index
    %c0_25 = arith.constant 0 : index
    %52 = vector.load %arg7[%c16, %c0_25] : memref<72x256xbf16, #tpu.memory_space<vmem>>, vector<4x256xbf16>
    tpu.vector_store %arg7[%c16, %c0_25], %51 {strides = array<i32>} : memref<72x256xbf16, #tpu.memory_space<vmem>>, vector<4x256xbf16>,
    %c1_i32_26 = arith.constant 1 : i32
    %53 = tpu.dynamic_rotate %6 by %c1_i32_26 dim 1 : vector<4x256xf32>, i32 -> vector<4x256xf32>
    %c1_i32_27 = arith.constant 1 : i32
    %54 = vector.broadcast %c1_i32_27 : i32 to vector<1x256xi32>
    %55 = arith.cmpi sge, %9, %54 : vector<1x256xi32>
    %cst_28 = arith.constant 0.000000e+00 : f32
    %56 = vector.shape_cast %55 : vector<1x256xi1> to vector<1x256xi1>
    %57 = vector.broadcast %56 : vector<1x256xi1> to vector<4x256xi1>
    %58 = vector.broadcast %cst_28 : f32 to vector<4x256xf32>
    %59 = arith.select %57, %53, %58 : vector<4x256xi1>, vector<4x256xf32>
    %60 = arith.truncf %59 : vector<4x256xf32> to vector<4x256xbf16>
    %c24 = arith.constant 24 : index
    %c0_29 = arith.constant 0 : index
    %61 = vector.load %arg7[%c24, %c0_29] : memref<72x256xbf16, #tpu.memory_space<vmem>>, vector<4x256xbf16>
    tpu.vector_store %arg7[%c24, %c0_29], %60 {strides = array<i32>} : memref<72x256xbf16, #tpu.memory_space<vmem>>, vector<4x256xbf16>,
    %62 = arith.truncf %6 : vector<4x256xf32> to vector<4x256xbf16>
    %c32 = arith.constant 32 : index
    %c0_30 = arith.constant 0 : index
    %63 = vector.load %arg7[%c32, %c0_30] : memref<72x256xbf16, #tpu.memory_space<vmem>>, vector<4x256xbf16>
    tpu.vector_store %arg7[%c32, %c0_30], %62 {strides = array<i32>} : memref<72x256xbf16, #tpu.memory_space<vmem>>, vector<4x256xbf16>,
    %c255_i32 = arith.constant 255 : i32
    %64 = tpu.dynamic_rotate %6 by %c255_i32 dim 1 : vector<4x256xf32>, i32 -> vector<4x256xf32>
    %c15_i32_31 = arith.constant 15 : i32
    %65 = vector.broadcast %c15_i32_31 : i32 to vector<1x256xi32>
    %66 = arith.cmpi slt, %9, %65 : vector<1x256xi32>
    %cst_32 = arith.constant 0.000000e+00 : f32
    %67 = vector.shape_cast %66 : vector<1x256xi1> to vector<1x256xi1>
    %68 = vector.broadcast %67 : vector<1x256xi1> to vector<4x256xi1>
    %69 = vector.broadcast %cst_32 : f32 to vector<4x256xf32>
    %70 = arith.select %68, %64, %69 : vector<4x256xi1>, vector<4x256xf32>
    %71 = arith.truncf %70 : vector<4x256xf32> to vector<4x256xbf16>
    %c40 = arith.constant 40 : index
    %c0_33 = arith.constant 0 : index
    %72 = vector.load %arg7[%c40, %c0_33] : memref<72x256xbf16, #tpu.memory_space<vmem>>, vector<4x256xbf16>
    tpu.vector_store %arg7[%c40, %c0_33], %71 {strides = array<i32>} : memref<72x256xbf16, #tpu.memory_space<vmem>>, vector<4x256xbf16>,
    %c241_i32 = arith.constant 241 : i32
    %73 = tpu.dynamic_rotate %6 by %c241_i32 dim 1 : vector<4x256xf32>, i32 -> vector<4x256xf32>
    %c240_i32 = arith.constant 240 : i32
    %74 = vector.broadcast %c240_i32 : i32 to vector<1x256xi32>
    %75 = arith.cmpi slt, %7, %74 : vector<1x256xi32>
    %c1_i32_34 = arith.constant 1 : i32
    %76 = vector.broadcast %c1_i32_34 : i32 to vector<1x256xi32>
    %77 = arith.cmpi sge, %9, %76 : vector<1x256xi32>
    %78 = arith.andi %75, %77 : vector<1x256xi1>
    %cst_35 = arith.constant 0.000000e+00 : f32
    %79 = vector.shape_cast %78 : vector<1x256xi1> to vector<1x256xi1>
    %80 = vector.broadcast %79 : vector<1x256xi1> to vector<4x256xi1>
    %81 = vector.broadcast %cst_35 : f32 to vector<4x256xf32>
    %82 = arith.select %80, %73, %81 : vector<4x256xi1>, vector<4x256xf32>
    %83 = arith.truncf %82 : vector<4x256xf32> to vector<4x256xbf16>
    %c48 = arith.constant 48 : index
    %c0_36 = arith.constant 0 : index
    %84 = vector.load %arg7[%c48, %c0_36] : memref<72x256xbf16, #tpu.memory_space<vmem>>, vector<4x256xbf16>
    tpu.vector_store %arg7[%c48, %c0_36], %83 {strides = array<i32>} : memref<72x256xbf16, #tpu.memory_space<vmem>>, vector<4x256xbf16>,
    %c240_i32_37 = arith.constant 240 : i32
    %85 = tpu.dynamic_rotate %6 by %c240_i32_37 dim 1 : vector<4x256xf32>, i32 -> vector<4x256xf32>
    %c240_i32_38 = arith.constant 240 : i32
    %86 = vector.broadcast %c240_i32_38 : i32 to vector<1x256xi32>
    %87 = arith.cmpi slt, %7, %86 : vector<1x256xi32>
    %cst_39 = arith.constant 0.000000e+00 : f32
    %88 = vector.shape_cast %87 : vector<1x256xi1> to vector<1x256xi1>
    %89 = vector.broadcast %88 : vector<1x256xi1> to vector<4x256xi1>
    %90 = vector.broadcast %cst_39 : f32 to vector<4x256xf32>
    %91 = arith.select %89, %85, %90 : vector<4x256xi1>, vector<4x256xf32>
    %92 = arith.truncf %91 : vector<4x256xf32> to vector<4x256xbf16>
    %c56 = arith.constant 56 : index
    %c0_40 = arith.constant 0 : index
    %93 = vector.load %arg7[%c56, %c0_40] : memref<72x256xbf16, #tpu.memory_space<vmem>>, vector<4x256xbf16>
    tpu.vector_store %arg7[%c56, %c0_40], %92 {strides = array<i32>} : memref<72x256xbf16, #tpu.memory_space<vmem>>, vector<4x256xbf16>,
    %c239_i32 = arith.constant 239 : i32
    %94 = tpu.dynamic_rotate %6 by %c239_i32 dim 1 : vector<4x256xf32>, i32 -> vector<4x256xf32>
    %c240_i32_41 = arith.constant 240 : i32
    %95 = vector.broadcast %c240_i32_41 : i32 to vector<1x256xi32>
    %96 = arith.cmpi slt, %7, %95 : vector<1x256xi32>
    %c15_i32_42 = arith.constant 15 : i32
    %97 = vector.broadcast %c15_i32_42 : i32 to vector<1x256xi32>
    %98 = arith.cmpi slt, %9, %97 : vector<1x256xi32>
    %99 = arith.andi %96, %98 : vector<1x256xi1>
    %cst_43 = arith.constant 0.000000e+00 : f32
    %100 = vector.shape_cast %99 : vector<1x256xi1> to vector<1x256xi1>
    %101 = vector.broadcast %100 : vector<1x256xi1> to vector<4x256xi1>
    %102 = vector.broadcast %cst_43 : f32 to vector<4x256xf32>
    %103 = arith.select %101, %94, %102 : vector<4x256xi1>, vector<4x256xf32>
    %104 = arith.truncf %103 : vector<4x256xf32> to vector<4x256xbf16>
    %c64 = arith.constant 64 : index
    %c0_44 = arith.constant 0 : index
    %105 = vector.load %arg7[%c64, %c0_44] : memref<72x256xbf16, #tpu.memory_space<vmem>>, vector<4x256xbf16>
    tpu.vector_store %arg7[%c64, %c0_44], %104 {strides = array<i32>} : memref<72x256xbf16, #tpu.memory_space<vmem>>, vector<4x256xbf16>,
    %c0_45 = arith.constant 0 : index
    %c0_46 = arith.constant 0 : index
    %106 = vector.load %arg3[%c0_45, %c0_46] : memref<4x72xbf16, #tpu.memory_space<vmem>>, vector<4x72xbf16>
    %c0_47 = arith.constant 0 : index
    %c0_48 = arith.constant 0 : index
    %107 = vector.load %arg7[%c0_47, %c0_48] : memref<72x256xbf16, #tpu.memory_space<vmem>>, vector<72x256xbf16>
    %cst_49 = arith.constant dense<0.000000e+00> : vector<4x256xf32>
    %108 = tpu.matmul %106, %107, %cst_49 {dimension_numbers = #tpu.dot_dimension_numbers<[1], [0], [0], [1], [0, 0, 1, 1], [], []>} : vector<4x72xbf16>, vector<72x256xbf16>, vector<4x256xf32> -> vector<4x256xf32>
    %c0_50 = arith.constant 0 : index
    %c0_51 = arith.constant 0 : index
    %109 = vector.load %arg4[%c0_50, %c0_51] : memref<4x1xf32, #tpu.memory_space<vmem>>, vector<4x1xf32>
    %110 = vector.broadcast %109 : vector<4x1xf32> to vector<4x256xf32>
    %111 = arith.addf %108, %110 : vector<4x256xf32>
    %112 = arith.truncf %111 : vector<4x256xf32> to vector<4x256xbf16>
    %c0_52 = arith.constant 0 : index
    %c0_53 = arith.constant 0 : index
    %c0_54 = arith.constant 0 : index
    %113 = vector.load %arg5[%c0_52, %c0_53, %c0_54] : memref<1x4x256xbf16, #tpu.memory_space<vmem>>, vector<1x4x256xbf16>
    %114 = vector.shape_cast %113 : vector<1x4x256xbf16> to vector<4x256xbf16>
    %115 = vector.shape_cast %112 : vector<4x256xbf16> to vector<1x4x256xbf16>
    tpu.vector_store %arg5[%c0_52, %c0_53, %c0_54], %115 {strides = array<i32>} : memref<1x4x256xbf16, #tpu.memory_space<vmem>>, vector<1x4x256xbf16>,
    %c0_i32 = arith.constant 0 : i32
    %116 = arith.cmpi eq, %arg0, %c0_i32 : i32
    %117 = arith.extui %116 : i1 to i32
    %c0_i32_55 = arith.constant 0 : i32
    %118 = arith.cmpi ne, %117, %c0_i32_55 : i32
    scf.if %118 {
      %cst_69 = arith.constant 0.000000e+00 : f32
      %137 = vector.broadcast %cst_69 : f32 to vector<2x4x1xf32>
      %c0_70 = arith.constant 0 : index
      %c0_71 = arith.constant 0 : index
      %c0_72 = arith.constant 0 : index
      %138 = vector.load %arg6[%c0_70, %c0_71, %c0_72] : memref<2x4x1xf32, #tpu.memory_space<vmem>>, vector<2x4x1xf32>
      tpu.vector_store %arg6[%c0_70, %c0_71, %c0_72], %137 {strides = array<i32>} : memref<2x4x1xf32, #tpu.memory_space<vmem>>, vector<2x4x1xf32>,
    } else {
    }
    %119 = arith.extf %112 : vector<4x256xbf16> to vector<4x256xf32>
    %c0_56 = arith.constant 0 : index
    %c0_57 = arith.constant 0 : index
    %c0_58 = arith.constant 0 : index
    %120 = vector.load %arg6[%c0_56, %c0_57, %c0_58] : memref<2x4x1xf32, #tpu.memory_space<vmem>>, vector<1x4x1xf32>
    %121 = vector.shape_cast %120 : vector<1x4x1xf32> to vector<4x1xf32>
    %cst_59 = arith.constant dense<0.000000e+00> : vector<4xf32>
    %122 = vector.multi_reduction <add>, %119, %cst_59 [1] : vector<4x256xf32> to vector<4xf32>
    %123 = vector.shape_cast %122 : vector<4xf32> to vector<4x1xf32>
    %124 = arith.addf %121, %123 : vector<4x1xf32>
    %c0_60 = arith.constant 0 : index
    %c0_61 = arith.constant 0 : index
    %c0_62 = arith.constant 0 : index
    %125 = vector.load %arg6[%c0_60, %c0_61, %c0_62] : memref<2x4x1xf32, #tpu.memory_space<vmem>>, vector<1x4x1xf32>
    %126 = vector.shape_cast %125 : vector<1x4x1xf32> to vector<4x1xf32>
    %127 = vector.shape_cast %124 : vector<4x1xf32> to vector<1x4x1xf32>
    tpu.vector_store %arg6[%c0_60, %c0_61, %c0_62], %127 {strides = array<i32>} : memref<2x4x1xf32, #tpu.memory_space<vmem>>, vector<1x4x1xf32>,
    %c1 = arith.constant 1 : index
    %c0_63 = arith.constant 0 : index
    %c0_64 = arith.constant 0 : index
    %128 = vector.load %arg6[%c1, %c0_63, %c0_64] : memref<2x4x1xf32, #tpu.memory_space<vmem>>, vector<1x4x1xf32>
    %129 = vector.shape_cast %128 : vector<1x4x1xf32> to vector<4x1xf32>
    %130 = arith.mulf %119, %119 : vector<4x256xf32>
    %cst_65 = arith.constant dense<0.000000e+00> : vector<4xf32>
    %131 = vector.multi_reduction <add>, %130, %cst_65 [1] : vector<4x256xf32> to vector<4xf32>
    %132 = vector.shape_cast %131 : vector<4xf32> to vector<4x1xf32>
    %133 = arith.addf %129, %132 : vector<4x1xf32>
    %c1_66 = arith.constant 1 : index
    %c0_67 = arith.constant 0 : index
    %c0_68 = arith.constant 0 : index
    %134 = vector.load %arg6[%c1_66, %c0_67, %c0_68] : memref<2x4x1xf32, #tpu.memory_space<vmem>>, vector<1x4x1xf32>
    %135 = vector.shape_cast %134 : vector<1x4x1xf32> to vector<4x1xf32>
    %136 = vector.shape_cast %133 : vector<4x1xf32> to vector<1x4x1xf32>
    tpu.vector_store %arg6[%c1_66, %c0_67, %c0_68], %136 {strides = array<i32>} : memref<2x4x1xf32, #tpu.memory_space<vmem>>, vector<1x4x1xf32>,
    return
  }
  func.func @transform_0(%arg0: i32) -> (i32, i32, i32) {
    %c0_i32 = arith.constant 0 : i32
    %c0_i32_0 = arith.constant 0 : i32
    %c0_i32_1 = arith.constant 0 : i32
    return %arg0, %c0_i32, %c0_i32_0 : i32, i32, i32
  }
  func.func @transform_1(%arg0: i32) -> (i32, i32, i32) {
    %c0_i32 = arith.constant 0 : i32
    %c0_i32_0 = arith.constant 0 : i32
    %c0_i32_1 = arith.constant 0 : i32
    return %arg0, %c0_i32, %c0_i32_0 : i32, i32, i32
  }
  func.func @transform_2(%arg0: i32) -> (i32, i32) {
    %c0_i32 = arith.constant 0 : i32
    %c0_i32_0 = arith.constant 0 : i32
    %c0_i32_1 = arith.constant 0 : i32
    return %c0_i32, %c0_i32_0 : i32, i32
  }
  func.func @transform_3(%arg0: i32) -> (i32, i32) {
    %c0_i32 = arith.constant 0 : i32
    %c0_i32_0 = arith.constant 0 : i32
    %c0_i32_1 = arith.constant 0 : i32
    return %c0_i32, %c0_i32_0 : i32, i32
  }
  func.func @transform_4(%arg0: i32) -> (i32, i32, i32) {
    %c0_i32 = arith.constant 0 : i32
    %c0_i32_0 = arith.constant 0 : i32
    %c0_i32_1 = arith.constant 0 : i32
    return %arg0, %c0_i32, %c0_i32_0 : i32, i32, i32
  }
  func.func @transform_5(%arg0: i32) -> (i32, i32, i32) {
    %c0_i32 = arith.constant 0 : i32
    %c0_i32_0 = arith.constant 0 : i32
    %c0_i32_1 = arith.constant 0 : i32
    %c0_i32_2 = arith.constant 0 : i32
    return %c0_i32, %c0_i32_0, %c0_i32_1 : i32, i32, i32
  }
}

module attributes {stable_mosaic.version = 11 : i64} {
  func.func @kernel(%arg0: i32, %arg1: memref<1x4x256xbf16, #tpu.memory_space<vmem>>, %arg2: memref<2x4x1xf32, #tpu.memory_space<vmem>>, %arg3: memref<4x72xbf16, #tpu.memory_space<vmem>>, %arg4: memref<4x1xf32, #tpu.memory_space<vmem>>, %arg5: memref<1x4x256xbf16, #tpu.memory_space<vmem>>, %arg6: memref<1x4x256xbf16, #tpu.memory_space<vmem>>, %arg7: memref<2x4x1xf32, #tpu.memory_space<vmem>>, %arg8: memref<72x256xbf16, #tpu.memory_space<vmem>>) attributes {dimension_semantics = [#tpu.dimension_semantics<arbitrary>], iteration_bounds = array<i64: 2>, scalar_prefetch = 0 : i64, scratch_operands = 1 : i64, tpu.core_type = #tpu.core_type<tc>, window_params = [{transform_indices = @transform_0, window_bounds = array<i64: 1, 4, 256>}, {pipeline_mode = #tpu.pipeline_mode<synchronous>, transform_indices = @transform_1, window_bounds = array<i64: 2, 4, 1>}, {pipeline_mode = #tpu.pipeline_mode<synchronous>, transform_indices = @transform_2, window_bounds = array<i64: 4, 72>}, {pipeline_mode = #tpu.pipeline_mode<synchronous>, transform_indices = @transform_3, window_bounds = array<i64: 4, 1>}, {transform_indices = @transform_4, window_bounds = array<i64: 1, 4, 256>}, {transform_indices = @transform_5, window_bounds = array<i64: 1, 4, 256>}, {pipeline_mode = #tpu.pipeline_mode<synchronous>, transform_indices = @transform_6, window_bounds = array<i64: 2, 4, 1>}]} {
    %c0 = arith.constant 0 : index
    %c0_0 = arith.constant 0 : index
    %c0_1 = arith.constant 0 : index
    %0 = vector.load %arg1[%c0, %c0_0, %c0_1] : memref<1x4x256xbf16, #tpu.memory_space<vmem>>, vector<1x4x256xbf16>
    %1 = vector.shape_cast %0 : vector<1x4x256xbf16> to vector<4x256xbf16>
    %2 = arith.extf %1 : vector<4x256xbf16> to vector<4x256xf32>
    %c0_2 = arith.constant 0 : index
    %c0_3 = arith.constant 0 : index
    %c0_4 = arith.constant 0 : index
    %3 = vector.load %arg2[%c0_2, %c0_3, %c0_4] : memref<2x4x1xf32, #tpu.memory_space<vmem>>, vector<1x4x1xf32>
    %4 = vector.shape_cast %3 : vector<1x4x1xf32> to vector<4x1xf32>
    %5 = vector.broadcast %4 : vector<4x1xf32> to vector<4x256xf32>
    %6 = arith.mulf %2, %5 : vector<4x256xf32>
    %c1 = arith.constant 1 : index
    %c0_5 = arith.constant 0 : index
    %c0_6 = arith.constant 0 : index
    %7 = vector.load %arg2[%c1, %c0_5, %c0_6] : memref<2x4x1xf32, #tpu.memory_space<vmem>>, vector<1x4x1xf32>
    %8 = vector.shape_cast %7 : vector<1x4x1xf32> to vector<4x1xf32>
    %9 = vector.broadcast %8 : vector<4x1xf32> to vector<4x256xf32>
    %10 = arith.addf %6, %9 : vector<4x256xf32>
    %cst = arith.constant 0.000000e+00 : f32
    %11 = vector.broadcast %cst : f32 to vector<4x256xf32>
    %12 = arith.maximumf %10, %11 : vector<4x256xf32>
    %13 = tpu.iota {dimensions = array<i32: 1>} : vector<1x256xi32>
    %c15_i32 = arith.constant 15 : i32
    %14 = vector.broadcast %c15_i32 : i32 to vector<1x256xi32>
    %15 = arith.andi %13, %14 : vector<1x256xi32>
    %cst_7 = arith.constant 0.000000e+00 : bf16
    %16 = vector.broadcast %cst_7 : bf16 to vector<4x256xbf16>
    %c4 = arith.constant 4 : index
    %c0_8 = arith.constant 0 : index
    %17 = vector.load %arg8[%c4, %c0_8] : memref<72x256xbf16, #tpu.memory_space<vmem>>, vector<4x256xbf16>
    tpu.vector_store %arg8[%c4, %c0_8], %16 {strides = array<i32>} : memref<72x256xbf16, #tpu.memory_space<vmem>>, vector<4x256xbf16>,
    %c12 = arith.constant 12 : index
    %c0_9 = arith.constant 0 : index
    %18 = vector.load %arg8[%c12, %c0_9] : memref<72x256xbf16, #tpu.memory_space<vmem>>, vector<4x256xbf16>
    tpu.vector_store %arg8[%c12, %c0_9], %16 {strides = array<i32>} : memref<72x256xbf16, #tpu.memory_space<vmem>>, vector<4x256xbf16>,
    %c20 = arith.constant 20 : index
    %c0_10 = arith.constant 0 : index
    %19 = vector.load %arg8[%c20, %c0_10] : memref<72x256xbf16, #tpu.memory_space<vmem>>, vector<4x256xbf16>
    tpu.vector_store %arg8[%c20, %c0_10], %16 {strides = array<i32>} : memref<72x256xbf16, #tpu.memory_space<vmem>>, vector<4x256xbf16>,
    %c28 = arith.constant 28 : index
    %c0_11 = arith.constant 0 : index
    %20 = vector.load %arg8[%c28, %c0_11] : memref<72x256xbf16, #tpu.memory_space<vmem>>, vector<4x256xbf16>
    tpu.vector_store %arg8[%c28, %c0_11], %16 {strides = array<i32>} : memref<72x256xbf16, #tpu.memory_space<vmem>>, vector<4x256xbf16>,
    %c36 = arith.constant 36 : index
    %c0_12 = arith.constant 0 : index
    %21 = vector.load %arg8[%c36, %c0_12] : memref<72x256xbf16, #tpu.memory_space<vmem>>, vector<4x256xbf16>
    tpu.vector_store %arg8[%c36, %c0_12], %16 {strides = array<i32>} : memref<72x256xbf16, #tpu.memory_space<vmem>>, vector<4x256xbf16>,
    %c44 = arith.constant 44 : index
    %c0_13 = arith.constant 0 : index
    %22 = vector.load %arg8[%c44, %c0_13] : memref<72x256xbf16, #tpu.memory_space<vmem>>, vector<4x256xbf16>
    tpu.vector_store %arg8[%c44, %c0_13], %16 {strides = array<i32>} : memref<72x256xbf16, #tpu.memory_space<vmem>>, vector<4x256xbf16>,
    %c52 = arith.constant 52 : index
    %c0_14 = arith.constant 0 : index
    %23 = vector.load %arg8[%c52, %c0_14] : memref<72x256xbf16, #tpu.memory_space<vmem>>, vector<4x256xbf16>
    tpu.vector_store %arg8[%c52, %c0_14], %16 {strides = array<i32>} : memref<72x256xbf16, #tpu.memory_space<vmem>>, vector<4x256xbf16>,
    %c60 = arith.constant 60 : index
    %c0_15 = arith.constant 0 : index
    %24 = vector.load %arg8[%c60, %c0_15] : memref<72x256xbf16, #tpu.memory_space<vmem>>, vector<4x256xbf16>
    tpu.vector_store %arg8[%c60, %c0_15], %16 {strides = array<i32>} : memref<72x256xbf16, #tpu.memory_space<vmem>>, vector<4x256xbf16>,
    %c68 = arith.constant 68 : index
    %c0_16 = arith.constant 0 : index
    %25 = vector.load %arg8[%c68, %c0_16] : memref<72x256xbf16, #tpu.memory_space<vmem>>, vector<4x256xbf16>
    tpu.vector_store %arg8[%c68, %c0_16], %16 {strides = array<i32>} : memref<72x256xbf16, #tpu.memory_space<vmem>>, vector<4x256xbf16>,
    %c17_i32 = arith.constant 17 : i32
    %26 = tpu.dynamic_rotate %12 by %c17_i32 dim 1 : vector<4x256xf32>, i32 -> vector<4x256xf32>
    %c16_i32 = arith.constant 16 : i32
    %27 = vector.broadcast %c16_i32 : i32 to vector<1x256xi32>
    %28 = arith.cmpi sge, %13, %27 : vector<1x256xi32>
    %c1_i32 = arith.constant 1 : i32
    %29 = vector.broadcast %c1_i32 : i32 to vector<1x256xi32>
    %30 = arith.cmpi sge, %15, %29 : vector<1x256xi32>
    %31 = arith.andi %28, %30 : vector<1x256xi1>
    %cst_17 = arith.constant 0.000000e+00 : f32
    %32 = vector.shape_cast %31 : vector<1x256xi1> to vector<1x256xi1>
    %33 = vector.broadcast %32 : vector<1x256xi1> to vector<4x256xi1>
    %34 = vector.broadcast %cst_17 : f32 to vector<4x256xf32>
    %35 = arith.select %33, %26, %34 : vector<4x256xi1>, vector<4x256xf32>
    %36 = arith.truncf %35 : vector<4x256xf32> to vector<4x256xbf16>
    %c0_18 = arith.constant 0 : index
    %c0_19 = arith.constant 0 : index
    %37 = vector.load %arg8[%c0_18, %c0_19] : memref<72x256xbf16, #tpu.memory_space<vmem>>, vector<4x256xbf16>
    tpu.vector_store %arg8[%c0_18, %c0_19], %36 {strides = array<i32>} : memref<72x256xbf16, #tpu.memory_space<vmem>>, vector<4x256xbf16>,
    %c16_i32_20 = arith.constant 16 : i32
    %38 = tpu.dynamic_rotate %12 by %c16_i32_20 dim 1 : vector<4x256xf32>, i32 -> vector<4x256xf32>
    %c16_i32_21 = arith.constant 16 : i32
    %39 = vector.broadcast %c16_i32_21 : i32 to vector<1x256xi32>
    %40 = arith.cmpi sge, %13, %39 : vector<1x256xi32>
    %cst_22 = arith.constant 0.000000e+00 : f32
    %41 = vector.shape_cast %40 : vector<1x256xi1> to vector<1x256xi1>
    %42 = vector.broadcast %41 : vector<1x256xi1> to vector<4x256xi1>
    %43 = vector.broadcast %cst_22 : f32 to vector<4x256xf32>
    %44 = arith.select %42, %38, %43 : vector<4x256xi1>, vector<4x256xf32>
    %45 = arith.truncf %44 : vector<4x256xf32> to vector<4x256xbf16>
    %c8 = arith.constant 8 : index
    %c0_23 = arith.constant 0 : index
    %46 = vector.load %arg8[%c8, %c0_23] : memref<72x256xbf16, #tpu.memory_space<vmem>>, vector<4x256xbf16>
    tpu.vector_store %arg8[%c8, %c0_23], %45 {strides = array<i32>} : memref<72x256xbf16, #tpu.memory_space<vmem>>, vector<4x256xbf16>,
    %c15_i32_24 = arith.constant 15 : i32
    %47 = tpu.dynamic_rotate %12 by %c15_i32_24 dim 1 : vector<4x256xf32>, i32 -> vector<4x256xf32>
    %c16_i32_25 = arith.constant 16 : i32
    %48 = vector.broadcast %c16_i32_25 : i32 to vector<1x256xi32>
    %49 = arith.cmpi sge, %13, %48 : vector<1x256xi32>
    %c15_i32_26 = arith.constant 15 : i32
    %50 = vector.broadcast %c15_i32_26 : i32 to vector<1x256xi32>
    %51 = arith.cmpi slt, %15, %50 : vector<1x256xi32>
    %52 = arith.andi %49, %51 : vector<1x256xi1>
    %cst_27 = arith.constant 0.000000e+00 : f32
    %53 = vector.shape_cast %52 : vector<1x256xi1> to vector<1x256xi1>
    %54 = vector.broadcast %53 : vector<1x256xi1> to vector<4x256xi1>
    %55 = vector.broadcast %cst_27 : f32 to vector<4x256xf32>
    %56 = arith.select %54, %47, %55 : vector<4x256xi1>, vector<4x256xf32>
    %57 = arith.truncf %56 : vector<4x256xf32> to vector<4x256xbf16>
    %c16 = arith.constant 16 : index
    %c0_28 = arith.constant 0 : index
    %58 = vector.load %arg8[%c16, %c0_28] : memref<72x256xbf16, #tpu.memory_space<vmem>>, vector<4x256xbf16>
    tpu.vector_store %arg8[%c16, %c0_28], %57 {strides = array<i32>} : memref<72x256xbf16, #tpu.memory_space<vmem>>, vector<4x256xbf16>,
    %c1_i32_29 = arith.constant 1 : i32
    %59 = tpu.dynamic_rotate %12 by %c1_i32_29 dim 1 : vector<4x256xf32>, i32 -> vector<4x256xf32>
    %c1_i32_30 = arith.constant 1 : i32
    %60 = vector.broadcast %c1_i32_30 : i32 to vector<1x256xi32>
    %61 = arith.cmpi sge, %15, %60 : vector<1x256xi32>
    %cst_31 = arith.constant 0.000000e+00 : f32
    %62 = vector.shape_cast %61 : vector<1x256xi1> to vector<1x256xi1>
    %63 = vector.broadcast %62 : vector<1x256xi1> to vector<4x256xi1>
    %64 = vector.broadcast %cst_31 : f32 to vector<4x256xf32>
    %65 = arith.select %63, %59, %64 : vector<4x256xi1>, vector<4x256xf32>
    %66 = arith.truncf %65 : vector<4x256xf32> to vector<4x256xbf16>
    %c24 = arith.constant 24 : index
    %c0_32 = arith.constant 0 : index
    %67 = vector.load %arg8[%c24, %c0_32] : memref<72x256xbf16, #tpu.memory_space<vmem>>, vector<4x256xbf16>
    tpu.vector_store %arg8[%c24, %c0_32], %66 {strides = array<i32>} : memref<72x256xbf16, #tpu.memory_space<vmem>>, vector<4x256xbf16>,
    %68 = arith.truncf %12 : vector<4x256xf32> to vector<4x256xbf16>
    %c32 = arith.constant 32 : index
    %c0_33 = arith.constant 0 : index
    %69 = vector.load %arg8[%c32, %c0_33] : memref<72x256xbf16, #tpu.memory_space<vmem>>, vector<4x256xbf16>
    tpu.vector_store %arg8[%c32, %c0_33], %68 {strides = array<i32>} : memref<72x256xbf16, #tpu.memory_space<vmem>>, vector<4x256xbf16>,
    %c255_i32 = arith.constant 255 : i32
    %70 = tpu.dynamic_rotate %12 by %c255_i32 dim 1 : vector<4x256xf32>, i32 -> vector<4x256xf32>
    %c15_i32_34 = arith.constant 15 : i32
    %71 = vector.broadcast %c15_i32_34 : i32 to vector<1x256xi32>
    %72 = arith.cmpi slt, %15, %71 : vector<1x256xi32>
    %cst_35 = arith.constant 0.000000e+00 : f32
    %73 = vector.shape_cast %72 : vector<1x256xi1> to vector<1x256xi1>
    %74 = vector.broadcast %73 : vector<1x256xi1> to vector<4x256xi1>
    %75 = vector.broadcast %cst_35 : f32 to vector<4x256xf32>
    %76 = arith.select %74, %70, %75 : vector<4x256xi1>, vector<4x256xf32>
    %77 = arith.truncf %76 : vector<4x256xf32> to vector<4x256xbf16>
    %c40 = arith.constant 40 : index
    %c0_36 = arith.constant 0 : index
    %78 = vector.load %arg8[%c40, %c0_36] : memref<72x256xbf16, #tpu.memory_space<vmem>>, vector<4x256xbf16>
    tpu.vector_store %arg8[%c40, %c0_36], %77 {strides = array<i32>} : memref<72x256xbf16, #tpu.memory_space<vmem>>, vector<4x256xbf16>,
    %c241_i32 = arith.constant 241 : i32
    %79 = tpu.dynamic_rotate %12 by %c241_i32 dim 1 : vector<4x256xf32>, i32 -> vector<4x256xf32>
    %c240_i32 = arith.constant 240 : i32
    %80 = vector.broadcast %c240_i32 : i32 to vector<1x256xi32>
    %81 = arith.cmpi slt, %13, %80 : vector<1x256xi32>
    %c1_i32_37 = arith.constant 1 : i32
    %82 = vector.broadcast %c1_i32_37 : i32 to vector<1x256xi32>
    %83 = arith.cmpi sge, %15, %82 : vector<1x256xi32>
    %84 = arith.andi %81, %83 : vector<1x256xi1>
    %cst_38 = arith.constant 0.000000e+00 : f32
    %85 = vector.shape_cast %84 : vector<1x256xi1> to vector<1x256xi1>
    %86 = vector.broadcast %85 : vector<1x256xi1> to vector<4x256xi1>
    %87 = vector.broadcast %cst_38 : f32 to vector<4x256xf32>
    %88 = arith.select %86, %79, %87 : vector<4x256xi1>, vector<4x256xf32>
    %89 = arith.truncf %88 : vector<4x256xf32> to vector<4x256xbf16>
    %c48 = arith.constant 48 : index
    %c0_39 = arith.constant 0 : index
    %90 = vector.load %arg8[%c48, %c0_39] : memref<72x256xbf16, #tpu.memory_space<vmem>>, vector<4x256xbf16>
    tpu.vector_store %arg8[%c48, %c0_39], %89 {strides = array<i32>} : memref<72x256xbf16, #tpu.memory_space<vmem>>, vector<4x256xbf16>,
    %c240_i32_40 = arith.constant 240 : i32
    %91 = tpu.dynamic_rotate %12 by %c240_i32_40 dim 1 : vector<4x256xf32>, i32 -> vector<4x256xf32>
    %c240_i32_41 = arith.constant 240 : i32
    %92 = vector.broadcast %c240_i32_41 : i32 to vector<1x256xi32>
    %93 = arith.cmpi slt, %13, %92 : vector<1x256xi32>
    %cst_42 = arith.constant 0.000000e+00 : f32
    %94 = vector.shape_cast %93 : vector<1x256xi1> to vector<1x256xi1>
    %95 = vector.broadcast %94 : vector<1x256xi1> to vector<4x256xi1>
    %96 = vector.broadcast %cst_42 : f32 to vector<4x256xf32>
    %97 = arith.select %95, %91, %96 : vector<4x256xi1>, vector<4x256xf32>
    %98 = arith.truncf %97 : vector<4x256xf32> to vector<4x256xbf16>
    %c56 = arith.constant 56 : index
    %c0_43 = arith.constant 0 : index
    %99 = vector.load %arg8[%c56, %c0_43] : memref<72x256xbf16, #tpu.memory_space<vmem>>, vector<4x256xbf16>
    tpu.vector_store %arg8[%c56, %c0_43], %98 {strides = array<i32>} : memref<72x256xbf16, #tpu.memory_space<vmem>>, vector<4x256xbf16>,
    %c239_i32 = arith.constant 239 : i32
    %100 = tpu.dynamic_rotate %12 by %c239_i32 dim 1 : vector<4x256xf32>, i32 -> vector<4x256xf32>
    %c240_i32_44 = arith.constant 240 : i32
    %101 = vector.broadcast %c240_i32_44 : i32 to vector<1x256xi32>
    %102 = arith.cmpi slt, %13, %101 : vector<1x256xi32>
    %c15_i32_45 = arith.constant 15 : i32
    %103 = vector.broadcast %c15_i32_45 : i32 to vector<1x256xi32>
    %104 = arith.cmpi slt, %15, %103 : vector<1x256xi32>
    %105 = arith.andi %102, %104 : vector<1x256xi1>
    %cst_46 = arith.constant 0.000000e+00 : f32
    %106 = vector.shape_cast %105 : vector<1x256xi1> to vector<1x256xi1>
    %107 = vector.broadcast %106 : vector<1x256xi1> to vector<4x256xi1>
    %108 = vector.broadcast %cst_46 : f32 to vector<4x256xf32>
    %109 = arith.select %107, %100, %108 : vector<4x256xi1>, vector<4x256xf32>
    %110 = arith.truncf %109 : vector<4x256xf32> to vector<4x256xbf16>
    %c64 = arith.constant 64 : index
    %c0_47 = arith.constant 0 : index
    %111 = vector.load %arg8[%c64, %c0_47] : memref<72x256xbf16, #tpu.memory_space<vmem>>, vector<4x256xbf16>
    tpu.vector_store %arg8[%c64, %c0_47], %110 {strides = array<i32>} : memref<72x256xbf16, #tpu.memory_space<vmem>>, vector<4x256xbf16>,
    %c0_48 = arith.constant 0 : index
    %c0_49 = arith.constant 0 : index
    %112 = vector.load %arg3[%c0_48, %c0_49] : memref<4x72xbf16, #tpu.memory_space<vmem>>, vector<4x72xbf16>
    %c0_50 = arith.constant 0 : index
    %c0_51 = arith.constant 0 : index
    %113 = vector.load %arg8[%c0_50, %c0_51] : memref<72x256xbf16, #tpu.memory_space<vmem>>, vector<72x256xbf16>
    %cst_52 = arith.constant dense<0.000000e+00> : vector<4x256xf32>
    %114 = tpu.matmul %112, %113, %cst_52 {dimension_numbers = #tpu.dot_dimension_numbers<[1], [0], [0], [1], [0, 0, 1, 1], [], []>} : vector<4x72xbf16>, vector<72x256xbf16>, vector<4x256xf32> -> vector<4x256xf32>
    %c0_53 = arith.constant 0 : index
    %c0_54 = arith.constant 0 : index
    %115 = vector.load %arg4[%c0_53, %c0_54] : memref<4x1xf32, #tpu.memory_space<vmem>>, vector<4x1xf32>
    %116 = vector.broadcast %115 : vector<4x1xf32> to vector<4x256xf32>
    %117 = arith.addf %114, %116 : vector<4x256xf32>
    %c0_55 = arith.constant 0 : index
    %c0_56 = arith.constant 0 : index
    %c0_57 = arith.constant 0 : index
    %118 = vector.load %arg5[%c0_55, %c0_56, %c0_57] : memref<1x4x256xbf16, #tpu.memory_space<vmem>>, vector<1x4x256xbf16>
    %119 = vector.shape_cast %118 : vector<1x4x256xbf16> to vector<4x256xbf16>
    %120 = arith.extf %119 : vector<4x256xbf16> to vector<4x256xf32>
    %121 = arith.addf %117, %120 : vector<4x256xf32>
    %122 = arith.truncf %121 : vector<4x256xf32> to vector<4x256xbf16>
    %c0_58 = arith.constant 0 : index
    %c0_59 = arith.constant 0 : index
    %c0_60 = arith.constant 0 : index
    %123 = vector.load %arg6[%c0_58, %c0_59, %c0_60] : memref<1x4x256xbf16, #tpu.memory_space<vmem>>, vector<1x4x256xbf16>
    %124 = vector.shape_cast %123 : vector<1x4x256xbf16> to vector<4x256xbf16>
    %125 = vector.shape_cast %122 : vector<4x256xbf16> to vector<1x4x256xbf16>
    tpu.vector_store %arg6[%c0_58, %c0_59, %c0_60], %125 {strides = array<i32>} : memref<1x4x256xbf16, #tpu.memory_space<vmem>>, vector<1x4x256xbf16>,
    %c0_i32 = arith.constant 0 : i32
    %126 = arith.cmpi eq, %arg0, %c0_i32 : i32
    %127 = arith.extui %126 : i1 to i32
    %c0_i32_61 = arith.constant 0 : i32
    %128 = arith.cmpi ne, %127, %c0_i32_61 : i32
    scf.if %128 {
      %cst_76 = arith.constant 0.000000e+00 : f32
      %147 = vector.broadcast %cst_76 : f32 to vector<2x4x1xf32>
      %c0_77 = arith.constant 0 : index
      %c0_78 = arith.constant 0 : index
      %c0_79 = arith.constant 0 : index
      %148 = vector.load %arg7[%c0_77, %c0_78, %c0_79] : memref<2x4x1xf32, #tpu.memory_space<vmem>>, vector<2x4x1xf32>
      tpu.vector_store %arg7[%c0_77, %c0_78, %c0_79], %147 {strides = array<i32>} : memref<2x4x1xf32, #tpu.memory_space<vmem>>, vector<2x4x1xf32>,
    } else {
    }
    %129 = arith.extf %122 : vector<4x256xbf16> to vector<4x256xf32>
    %c0_62 = arith.constant 0 : index
    %c0_63 = arith.constant 0 : index
    %c0_64 = arith.constant 0 : index
    %130 = vector.load %arg7[%c0_62, %c0_63, %c0_64] : memref<2x4x1xf32, #tpu.memory_space<vmem>>, vector<1x4x1xf32>
    %131 = vector.shape_cast %130 : vector<1x4x1xf32> to vector<4x1xf32>
    %cst_65 = arith.constant dense<0.000000e+00> : vector<4xf32>
    %132 = vector.multi_reduction <add>, %129, %cst_65 [1] : vector<4x256xf32> to vector<4xf32>
    %133 = vector.shape_cast %132 : vector<4xf32> to vector<4x1xf32>
    %134 = arith.addf %131, %133 : vector<4x1xf32>
    %c0_66 = arith.constant 0 : index
    %c0_67 = arith.constant 0 : index
    %c0_68 = arith.constant 0 : index
    %135 = vector.load %arg7[%c0_66, %c0_67, %c0_68] : memref<2x4x1xf32, #tpu.memory_space<vmem>>, vector<1x4x1xf32>
    %136 = vector.shape_cast %135 : vector<1x4x1xf32> to vector<4x1xf32>
    %137 = vector.shape_cast %134 : vector<4x1xf32> to vector<1x4x1xf32>
    tpu.vector_store %arg7[%c0_66, %c0_67, %c0_68], %137 {strides = array<i32>} : memref<2x4x1xf32, #tpu.memory_space<vmem>>, vector<1x4x1xf32>,
    %c1_69 = arith.constant 1 : index
    %c0_70 = arith.constant 0 : index
    %c0_71 = arith.constant 0 : index
    %138 = vector.load %arg7[%c1_69, %c0_70, %c0_71] : memref<2x4x1xf32, #tpu.memory_space<vmem>>, vector<1x4x1xf32>
    %139 = vector.shape_cast %138 : vector<1x4x1xf32> to vector<4x1xf32>
    %140 = arith.mulf %129, %129 : vector<4x256xf32>
    %cst_72 = arith.constant dense<0.000000e+00> : vector<4xf32>
    %141 = vector.multi_reduction <add>, %140, %cst_72 [1] : vector<4x256xf32> to vector<4xf32>
    %142 = vector.shape_cast %141 : vector<4xf32> to vector<4x1xf32>
    %143 = arith.addf %139, %142 : vector<4x1xf32>
    %c1_73 = arith.constant 1 : index
    %c0_74 = arith.constant 0 : index
    %c0_75 = arith.constant 0 : index
    %144 = vector.load %arg7[%c1_73, %c0_74, %c0_75] : memref<2x4x1xf32, #tpu.memory_space<vmem>>, vector<1x4x1xf32>
    %145 = vector.shape_cast %144 : vector<1x4x1xf32> to vector<4x1xf32>
    %146 = vector.shape_cast %143 : vector<4x1xf32> to vector<1x4x1xf32>
    tpu.vector_store %arg7[%c1_73, %c0_74, %c0_75], %146 {strides = array<i32>} : memref<2x4x1xf32, #tpu.memory_space<vmem>>, vector<1x4x1xf32>,
    return
  }
  func.func @transform_0(%arg0: i32) -> (i32, i32, i32) {
    %c0_i32 = arith.constant 0 : i32
    %c0_i32_0 = arith.constant 0 : i32
    %c0_i32_1 = arith.constant 0 : i32
    return %arg0, %c0_i32, %c0_i32_0 : i32, i32, i32
  }
  func.func @transform_1(%arg0: i32) -> (i32, i32, i32) {
    %c0_i32 = arith.constant 0 : i32
    %c0_i32_0 = arith.constant 0 : i32
    %c0_i32_1 = arith.constant 0 : i32
    %c0_i32_2 = arith.constant 0 : i32
    return %c0_i32, %c0_i32_0, %c0_i32_1 : i32, i32, i32
  }
  func.func @transform_2(%arg0: i32) -> (i32, i32) {
    %c0_i32 = arith.constant 0 : i32
    %c0_i32_0 = arith.constant 0 : i32
    %c0_i32_1 = arith.constant 0 : i32
    return %c0_i32, %c0_i32_0 : i32, i32
  }
  func.func @transform_3(%arg0: i32) -> (i32, i32) {
    %c0_i32 = arith.constant 0 : i32
    %c0_i32_0 = arith.constant 0 : i32
    %c0_i32_1 = arith.constant 0 : i32
    return %c0_i32, %c0_i32_0 : i32, i32
  }
  func.func @transform_4(%arg0: i32) -> (i32, i32, i32) {
    %c0_i32 = arith.constant 0 : i32
    %c0_i32_0 = arith.constant 0 : i32
    %c0_i32_1 = arith.constant 0 : i32
    return %arg0, %c0_i32, %c0_i32_0 : i32, i32, i32
  }
  func.func @transform_5(%arg0: i32) -> (i32, i32, i32) {
    %c0_i32 = arith.constant 0 : i32
    %c0_i32_0 = arith.constant 0 : i32
    %c0_i32_1 = arith.constant 0 : i32
    return %arg0, %c0_i32, %c0_i32_0 : i32, i32, i32
  }
  func.func @transform_6(%arg0: i32) -> (i32, i32, i32) {
    %c0_i32 = arith.constant 0 : i32
    %c0_i32_0 = arith.constant 0 : i32
    %c0_i32_1 = arith.constant 0 : i32
    %c0_i32_2 = arith.constant 0 : i32
    return %c0_i32, %c0_i32_0, %c0_i32_1 : i32, i32, i32
  }
}

module attributes {stable_mosaic.version = 11 : i64} {
  func.func @kernel(%arg0: i32, %arg1: memref<1x4x256xbf16, #tpu.memory_space<vmem>>, %arg2: memref<2x4x1xf32, #tpu.memory_space<vmem>>, %arg3: memref<4x72xbf16, #tpu.memory_space<vmem>>, %arg4: memref<4x1xf32, #tpu.memory_space<vmem>>, %arg5: memref<1x4x256xbf16, #tpu.memory_space<vmem>>, %arg6: memref<2x4x1xf32, #tpu.memory_space<vmem>>, %arg7: memref<72x256xbf16, #tpu.memory_space<vmem>>) attributes {dimension_semantics = [#tpu.dimension_semantics<arbitrary>], iteration_bounds = array<i64: 2>, scalar_prefetch = 0 : i64, scratch_operands = 1 : i64, tpu.core_type = #tpu.core_type<tc>, window_params = [{transform_indices = @transform_0, window_bounds = array<i64: 1, 4, 256>}, {pipeline_mode = #tpu.pipeline_mode<synchronous>, transform_indices = @transform_1, window_bounds = array<i64: 2, 4, 1>}, {pipeline_mode = #tpu.pipeline_mode<synchronous>, transform_indices = @transform_2, window_bounds = array<i64: 4, 72>}, {pipeline_mode = #tpu.pipeline_mode<synchronous>, transform_indices = @transform_3, window_bounds = array<i64: 4, 1>}, {transform_indices = @transform_4, window_bounds = array<i64: 1, 4, 256>}, {pipeline_mode = #tpu.pipeline_mode<synchronous>, transform_indices = @transform_5, window_bounds = array<i64: 2, 4, 1>}]} {
    %c0 = arith.constant 0 : index
    %c0_0 = arith.constant 0 : index
    %c0_1 = arith.constant 0 : index
    %0 = vector.load %arg1[%c0, %c0_0, %c0_1] : memref<1x4x256xbf16, #tpu.memory_space<vmem>>, vector<1x4x256xbf16>
    %1 = vector.shape_cast %0 : vector<1x4x256xbf16> to vector<4x256xbf16>
    %2 = arith.extf %1 : vector<4x256xbf16> to vector<4x256xf32>
    %c0_2 = arith.constant 0 : index
    %c0_3 = arith.constant 0 : index
    %c0_4 = arith.constant 0 : index
    %3 = vector.load %arg2[%c0_2, %c0_3, %c0_4] : memref<2x4x1xf32, #tpu.memory_space<vmem>>, vector<1x4x1xf32>
    %4 = vector.shape_cast %3 : vector<1x4x1xf32> to vector<4x1xf32>
    %5 = vector.broadcast %4 : vector<4x1xf32> to vector<4x256xf32>
    %6 = arith.mulf %2, %5 : vector<4x256xf32>
    %c1 = arith.constant 1 : index
    %c0_5 = arith.constant 0 : index
    %c0_6 = arith.constant 0 : index
    %7 = vector.load %arg2[%c1, %c0_5, %c0_6] : memref<2x4x1xf32, #tpu.memory_space<vmem>>, vector<1x4x1xf32>
    %8 = vector.shape_cast %7 : vector<1x4x1xf32> to vector<4x1xf32>
    %9 = vector.broadcast %8 : vector<4x1xf32> to vector<4x256xf32>
    %10 = arith.addf %6, %9 : vector<4x256xf32>
    %cst = arith.constant 0.000000e+00 : f32
    %11 = vector.broadcast %cst : f32 to vector<4x256xf32>
    %12 = arith.maximumf %10, %11 : vector<4x256xf32>
    %13 = tpu.iota {dimensions = array<i32: 1>} : vector<1x256xi32>
    %c15_i32 = arith.constant 15 : i32
    %14 = vector.broadcast %c15_i32 : i32 to vector<1x256xi32>
    %15 = arith.andi %13, %14 : vector<1x256xi32>
    %cst_7 = arith.constant 0.000000e+00 : bf16
    %16 = vector.broadcast %cst_7 : bf16 to vector<4x256xbf16>
    %c4 = arith.constant 4 : index
    %c0_8 = arith.constant 0 : index
    %17 = vector.load %arg7[%c4, %c0_8] : memref<72x256xbf16, #tpu.memory_space<vmem>>, vector<4x256xbf16>
    tpu.vector_store %arg7[%c4, %c0_8], %16 {strides = array<i32>} : memref<72x256xbf16, #tpu.memory_space<vmem>>, vector<4x256xbf16>,
    %c12 = arith.constant 12 : index
    %c0_9 = arith.constant 0 : index
    %18 = vector.load %arg7[%c12, %c0_9] : memref<72x256xbf16, #tpu.memory_space<vmem>>, vector<4x256xbf16>
    tpu.vector_store %arg7[%c12, %c0_9], %16 {strides = array<i32>} : memref<72x256xbf16, #tpu.memory_space<vmem>>, vector<4x256xbf16>,
    %c20 = arith.constant 20 : index
    %c0_10 = arith.constant 0 : index
    %19 = vector.load %arg7[%c20, %c0_10] : memref<72x256xbf16, #tpu.memory_space<vmem>>, vector<4x256xbf16>
    tpu.vector_store %arg7[%c20, %c0_10], %16 {strides = array<i32>} : memref<72x256xbf16, #tpu.memory_space<vmem>>, vector<4x256xbf16>,
    %c28 = arith.constant 28 : index
    %c0_11 = arith.constant 0 : index
    %20 = vector.load %arg7[%c28, %c0_11] : memref<72x256xbf16, #tpu.memory_space<vmem>>, vector<4x256xbf16>
    tpu.vector_store %arg7[%c28, %c0_11], %16 {strides = array<i32>} : memref<72x256xbf16, #tpu.memory_space<vmem>>, vector<4x256xbf16>,
    %c36 = arith.constant 36 : index
    %c0_12 = arith.constant 0 : index
    %21 = vector.load %arg7[%c36, %c0_12] : memref<72x256xbf16, #tpu.memory_space<vmem>>, vector<4x256xbf16>
    tpu.vector_store %arg7[%c36, %c0_12], %16 {strides = array<i32>} : memref<72x256xbf16, #tpu.memory_space<vmem>>, vector<4x256xbf16>,
    %c44 = arith.constant 44 : index
    %c0_13 = arith.constant 0 : index
    %22 = vector.load %arg7[%c44, %c0_13] : memref<72x256xbf16, #tpu.memory_space<vmem>>, vector<4x256xbf16>
    tpu.vector_store %arg7[%c44, %c0_13], %16 {strides = array<i32>} : memref<72x256xbf16, #tpu.memory_space<vmem>>, vector<4x256xbf16>,
    %c52 = arith.constant 52 : index
    %c0_14 = arith.constant 0 : index
    %23 = vector.load %arg7[%c52, %c0_14] : memref<72x256xbf16, #tpu.memory_space<vmem>>, vector<4x256xbf16>
    tpu.vector_store %arg7[%c52, %c0_14], %16 {strides = array<i32>} : memref<72x256xbf16, #tpu.memory_space<vmem>>, vector<4x256xbf16>,
    %c60 = arith.constant 60 : index
    %c0_15 = arith.constant 0 : index
    %24 = vector.load %arg7[%c60, %c0_15] : memref<72x256xbf16, #tpu.memory_space<vmem>>, vector<4x256xbf16>
    tpu.vector_store %arg7[%c60, %c0_15], %16 {strides = array<i32>} : memref<72x256xbf16, #tpu.memory_space<vmem>>, vector<4x256xbf16>,
    %c68 = arith.constant 68 : index
    %c0_16 = arith.constant 0 : index
    %25 = vector.load %arg7[%c68, %c0_16] : memref<72x256xbf16, #tpu.memory_space<vmem>>, vector<4x256xbf16>
    tpu.vector_store %arg7[%c68, %c0_16], %16 {strides = array<i32>} : memref<72x256xbf16, #tpu.memory_space<vmem>>, vector<4x256xbf16>,
    %c17_i32 = arith.constant 17 : i32
    %26 = tpu.dynamic_rotate %12 by %c17_i32 dim 1 : vector<4x256xf32>, i32 -> vector<4x256xf32>
    %c16_i32 = arith.constant 16 : i32
    %27 = vector.broadcast %c16_i32 : i32 to vector<1x256xi32>
    %28 = arith.cmpi sge, %13, %27 : vector<1x256xi32>
    %c1_i32 = arith.constant 1 : i32
    %29 = vector.broadcast %c1_i32 : i32 to vector<1x256xi32>
    %30 = arith.cmpi sge, %15, %29 : vector<1x256xi32>
    %31 = arith.andi %28, %30 : vector<1x256xi1>
    %cst_17 = arith.constant 0.000000e+00 : f32
    %32 = vector.shape_cast %31 : vector<1x256xi1> to vector<1x256xi1>
    %33 = vector.broadcast %32 : vector<1x256xi1> to vector<4x256xi1>
    %34 = vector.broadcast %cst_17 : f32 to vector<4x256xf32>
    %35 = arith.select %33, %26, %34 : vector<4x256xi1>, vector<4x256xf32>
    %36 = arith.truncf %35 : vector<4x256xf32> to vector<4x256xbf16>
    %c0_18 = arith.constant 0 : index
    %c0_19 = arith.constant 0 : index
    %37 = vector.load %arg7[%c0_18, %c0_19] : memref<72x256xbf16, #tpu.memory_space<vmem>>, vector<4x256xbf16>
    tpu.vector_store %arg7[%c0_18, %c0_19], %36 {strides = array<i32>} : memref<72x256xbf16, #tpu.memory_space<vmem>>, vector<4x256xbf16>,
    %c16_i32_20 = arith.constant 16 : i32
    %38 = tpu.dynamic_rotate %12 by %c16_i32_20 dim 1 : vector<4x256xf32>, i32 -> vector<4x256xf32>
    %c16_i32_21 = arith.constant 16 : i32
    %39 = vector.broadcast %c16_i32_21 : i32 to vector<1x256xi32>
    %40 = arith.cmpi sge, %13, %39 : vector<1x256xi32>
    %cst_22 = arith.constant 0.000000e+00 : f32
    %41 = vector.shape_cast %40 : vector<1x256xi1> to vector<1x256xi1>
    %42 = vector.broadcast %41 : vector<1x256xi1> to vector<4x256xi1>
    %43 = vector.broadcast %cst_22 : f32 to vector<4x256xf32>
    %44 = arith.select %42, %38, %43 : vector<4x256xi1>, vector<4x256xf32>
    %45 = arith.truncf %44 : vector<4x256xf32> to vector<4x256xbf16>
    %c8 = arith.constant 8 : index
    %c0_23 = arith.constant 0 : index
    %46 = vector.load %arg7[%c8, %c0_23] : memref<72x256xbf16, #tpu.memory_space<vmem>>, vector<4x256xbf16>
    tpu.vector_store %arg7[%c8, %c0_23], %45 {strides = array<i32>} : memref<72x256xbf16, #tpu.memory_space<vmem>>, vector<4x256xbf16>,
    %c15_i32_24 = arith.constant 15 : i32
    %47 = tpu.dynamic_rotate %12 by %c15_i32_24 dim 1 : vector<4x256xf32>, i32 -> vector<4x256xf32>
    %c16_i32_25 = arith.constant 16 : i32
    %48 = vector.broadcast %c16_i32_25 : i32 to vector<1x256xi32>
    %49 = arith.cmpi sge, %13, %48 : vector<1x256xi32>
    %c15_i32_26 = arith.constant 15 : i32
    %50 = vector.broadcast %c15_i32_26 : i32 to vector<1x256xi32>
    %51 = arith.cmpi slt, %15, %50 : vector<1x256xi32>
    %52 = arith.andi %49, %51 : vector<1x256xi1>
    %cst_27 = arith.constant 0.000000e+00 : f32
    %53 = vector.shape_cast %52 : vector<1x256xi1> to vector<1x256xi1>
    %54 = vector.broadcast %53 : vector<1x256xi1> to vector<4x256xi1>
    %55 = vector.broadcast %cst_27 : f32 to vector<4x256xf32>
    %56 = arith.select %54, %47, %55 : vector<4x256xi1>, vector<4x256xf32>
    %57 = arith.truncf %56 : vector<4x256xf32> to vector<4x256xbf16>
    %c16 = arith.constant 16 : index
    %c0_28 = arith.constant 0 : index
    %58 = vector.load %arg7[%c16, %c0_28] : memref<72x256xbf16, #tpu.memory_space<vmem>>, vector<4x256xbf16>
    tpu.vector_store %arg7[%c16, %c0_28], %57 {strides = array<i32>} : memref<72x256xbf16, #tpu.memory_space<vmem>>, vector<4x256xbf16>,
    %c1_i32_29 = arith.constant 1 : i32
    %59 = tpu.dynamic_rotate %12 by %c1_i32_29 dim 1 : vector<4x256xf32>, i32 -> vector<4x256xf32>
    %c1_i32_30 = arith.constant 1 : i32
    %60 = vector.broadcast %c1_i32_30 : i32 to vector<1x256xi32>
    %61 = arith.cmpi sge, %15, %60 : vector<1x256xi32>
    %cst_31 = arith.constant 0.000000e+00 : f32
    %62 = vector.shape_cast %61 : vector<1x256xi1> to vector<1x256xi1>
    %63 = vector.broadcast %62 : vector<1x256xi1> to vector<4x256xi1>
    %64 = vector.broadcast %cst_31 : f32 to vector<4x256xf32>
    %65 = arith.select %63, %59, %64 : vector<4x256xi1>, vector<4x256xf32>
    %66 = arith.truncf %65 : vector<4x256xf32> to vector<4x256xbf16>
    %c24 = arith.constant 24 : index
    %c0_32 = arith.constant 0 : index
    %67 = vector.load %arg7[%c24, %c0_32] : memref<72x256xbf16, #tpu.memory_space<vmem>>, vector<4x256xbf16>
    tpu.vector_store %arg7[%c24, %c0_32], %66 {strides = array<i32>} : memref<72x256xbf16, #tpu.memory_space<vmem>>, vector<4x256xbf16>,
    %68 = arith.truncf %12 : vector<4x256xf32> to vector<4x256xbf16>
    %c32 = arith.constant 32 : index
    %c0_33 = arith.constant 0 : index
    %69 = vector.load %arg7[%c32, %c0_33] : memref<72x256xbf16, #tpu.memory_space<vmem>>, vector<4x256xbf16>
    tpu.vector_store %arg7[%c32, %c0_33], %68 {strides = array<i32>} : memref<72x256xbf16, #tpu.memory_space<vmem>>, vector<4x256xbf16>,
    %c255_i32 = arith.constant 255 : i32
    %70 = tpu.dynamic_rotate %12 by %c255_i32 dim 1 : vector<4x256xf32>, i32 -> vector<4x256xf32>
    %c15_i32_34 = arith.constant 15 : i32
    %71 = vector.broadcast %c15_i32_34 : i32 to vector<1x256xi32>
    %72 = arith.cmpi slt, %15, %71 : vector<1x256xi32>
    %cst_35 = arith.constant 0.000000e+00 : f32
    %73 = vector.shape_cast %72 : vector<1x256xi1> to vector<1x256xi1>
    %74 = vector.broadcast %73 : vector<1x256xi1> to vector<4x256xi1>
    %75 = vector.broadcast %cst_35 : f32 to vector<4x256xf32>
    %76 = arith.select %74, %70, %75 : vector<4x256xi1>, vector<4x256xf32>
    %77 = arith.truncf %76 : vector<4x256xf32> to vector<4x256xbf16>
    %c40 = arith.constant 40 : index
    %c0_36 = arith.constant 0 : index
    %78 = vector.load %arg7[%c40, %c0_36] : memref<72x256xbf16, #tpu.memory_space<vmem>>, vector<4x256xbf16>
    tpu.vector_store %arg7[%c40, %c0_36], %77 {strides = array<i32>} : memref<72x256xbf16, #tpu.memory_space<vmem>>, vector<4x256xbf16>,
    %c241_i32 = arith.constant 241 : i32
    %79 = tpu.dynamic_rotate %12 by %c241_i32 dim 1 : vector<4x256xf32>, i32 -> vector<4x256xf32>
    %c240_i32 = arith.constant 240 : i32
    %80 = vector.broadcast %c240_i32 : i32 to vector<1x256xi32>
    %81 = arith.cmpi slt, %13, %80 : vector<1x256xi32>
    %c1_i32_37 = arith.constant 1 : i32
    %82 = vector.broadcast %c1_i32_37 : i32 to vector<1x256xi32>
    %83 = arith.cmpi sge, %15, %82 : vector<1x256xi32>
    %84 = arith.andi %81, %83 : vector<1x256xi1>
    %cst_38 = arith.constant 0.000000e+00 : f32
    %85 = vector.shape_cast %84 : vector<1x256xi1> to vector<1x256xi1>
    %86 = vector.broadcast %85 : vector<1x256xi1> to vector<4x256xi1>
    %87 = vector.broadcast %cst_38 : f32 to vector<4x256xf32>
    %88 = arith.select %86, %79, %87 : vector<4x256xi1>, vector<4x256xf32>
    %89 = arith.truncf %88 : vector<4x256xf32> to vector<4x256xbf16>
    %c48 = arith.constant 48 : index
    %c0_39 = arith.constant 0 : index
    %90 = vector.load %arg7[%c48, %c0_39] : memref<72x256xbf16, #tpu.memory_space<vmem>>, vector<4x256xbf16>
    tpu.vector_store %arg7[%c48, %c0_39], %89 {strides = array<i32>} : memref<72x256xbf16, #tpu.memory_space<vmem>>, vector<4x256xbf16>,
    %c240_i32_40 = arith.constant 240 : i32
    %91 = tpu.dynamic_rotate %12 by %c240_i32_40 dim 1 : vector<4x256xf32>, i32 -> vector<4x256xf32>
    %c240_i32_41 = arith.constant 240 : i32
    %92 = vector.broadcast %c240_i32_41 : i32 to vector<1x256xi32>
    %93 = arith.cmpi slt, %13, %92 : vector<1x256xi32>
    %cst_42 = arith.constant 0.000000e+00 : f32
    %94 = vector.shape_cast %93 : vector<1x256xi1> to vector<1x256xi1>
    %95 = vector.broadcast %94 : vector<1x256xi1> to vector<4x256xi1>
    %96 = vector.broadcast %cst_42 : f32 to vector<4x256xf32>
    %97 = arith.select %95, %91, %96 : vector<4x256xi1>, vector<4x256xf32>
    %98 = arith.truncf %97 : vector<4x256xf32> to vector<4x256xbf16>
    %c56 = arith.constant 56 : index
    %c0_43 = arith.constant 0 : index
    %99 = vector.load %arg7[%c56, %c0_43] : memref<72x256xbf16, #tpu.memory_space<vmem>>, vector<4x256xbf16>
    tpu.vector_store %arg7[%c56, %c0_43], %98 {strides = array<i32>} : memref<72x256xbf16, #tpu.memory_space<vmem>>, vector<4x256xbf16>,
    %c239_i32 = arith.constant 239 : i32
    %100 = tpu.dynamic_rotate %12 by %c239_i32 dim 1 : vector<4x256xf32>, i32 -> vector<4x256xf32>
    %c240_i32_44 = arith.constant 240 : i32
    %101 = vector.broadcast %c240_i32_44 : i32 to vector<1x256xi32>
    %102 = arith.cmpi slt, %13, %101 : vector<1x256xi32>
    %c15_i32_45 = arith.constant 15 : i32
    %103 = vector.broadcast %c15_i32_45 : i32 to vector<1x256xi32>
    %104 = arith.cmpi slt, %15, %103 : vector<1x256xi32>
    %105 = arith.andi %102, %104 : vector<1x256xi1>
    %cst_46 = arith.constant 0.000000e+00 : f32
    %106 = vector.shape_cast %105 : vector<1x256xi1> to vector<1x256xi1>
    %107 = vector.broadcast %106 : vector<1x256xi1> to vector<4x256xi1>
    %108 = vector.broadcast %cst_46 : f32 to vector<4x256xf32>
    %109 = arith.select %107, %100, %108 : vector<4x256xi1>, vector<4x256xf32>
    %110 = arith.truncf %109 : vector<4x256xf32> to vector<4x256xbf16>
    %c64 = arith.constant 64 : index
    %c0_47 = arith.constant 0 : index
    %111 = vector.load %arg7[%c64, %c0_47] : memref<72x256xbf16, #tpu.memory_space<vmem>>, vector<4x256xbf16>
    tpu.vector_store %arg7[%c64, %c0_47], %110 {strides = array<i32>} : memref<72x256xbf16, #tpu.memory_space<vmem>>, vector<4x256xbf16>,
    %c0_48 = arith.constant 0 : index
    %c0_49 = arith.constant 0 : index
    %112 = vector.load %arg3[%c0_48, %c0_49] : memref<4x72xbf16, #tpu.memory_space<vmem>>, vector<4x72xbf16>
    %c0_50 = arith.constant 0 : index
    %c0_51 = arith.constant 0 : index
    %113 = vector.load %arg7[%c0_50, %c0_51] : memref<72x256xbf16, #tpu.memory_space<vmem>>, vector<72x256xbf16>
    %cst_52 = arith.constant dense<0.000000e+00> : vector<4x256xf32>
    %114 = tpu.matmul %112, %113, %cst_52 {dimension_numbers = #tpu.dot_dimension_numbers<[1], [0], [0], [1], [0, 0, 1, 1], [], []>} : vector<4x72xbf16>, vector<72x256xbf16>, vector<4x256xf32> -> vector<4x256xf32>
    %c0_53 = arith.constant 0 : index
    %c0_54 = arith.constant 0 : index
    %115 = vector.load %arg4[%c0_53, %c0_54] : memref<4x1xf32, #tpu.memory_space<vmem>>, vector<4x1xf32>
    %116 = vector.broadcast %115 : vector<4x1xf32> to vector<4x256xf32>
    %117 = arith.addf %114, %116 : vector<4x256xf32>
    %118 = arith.truncf %117 : vector<4x256xf32> to vector<4x256xbf16>
    %c0_55 = arith.constant 0 : index
    %c0_56 = arith.constant 0 : index
    %c0_57 = arith.constant 0 : index
    %119 = vector.load %arg5[%c0_55, %c0_56, %c0_57] : memref<1x4x256xbf16, #tpu.memory_space<vmem>>, vector<1x4x256xbf16>
    %120 = vector.shape_cast %119 : vector<1x4x256xbf16> to vector<4x256xbf16>
    %121 = vector.shape_cast %118 : vector<4x256xbf16> to vector<1x4x256xbf16>
    tpu.vector_store %arg5[%c0_55, %c0_56, %c0_57], %121 {strides = array<i32>} : memref<1x4x256xbf16, #tpu.memory_space<vmem>>, vector<1x4x256xbf16>,
    %c0_i32 = arith.constant 0 : i32
    %122 = arith.cmpi eq, %arg0, %c0_i32 : i32
    %123 = arith.extui %122 : i1 to i32
    %c0_i32_58 = arith.constant 0 : i32
    %124 = arith.cmpi ne, %123, %c0_i32_58 : i32
    scf.if %124 {
      %cst_73 = arith.constant 0.000000e+00 : f32
      %143 = vector.broadcast %cst_73 : f32 to vector<2x4x1xf32>
      %c0_74 = arith.constant 0 : index
      %c0_75 = arith.constant 0 : index
      %c0_76 = arith.constant 0 : index
      %144 = vector.load %arg6[%c0_74, %c0_75, %c0_76] : memref<2x4x1xf32, #tpu.memory_space<vmem>>, vector<2x4x1xf32>
      tpu.vector_store %arg6[%c0_74, %c0_75, %c0_76], %143 {strides = array<i32>} : memref<2x4x1xf32, #tpu.memory_space<vmem>>, vector<2x4x1xf32>,
    } else {
    }
    %125 = arith.extf %118 : vector<4x256xbf16> to vector<4x256xf32>
    %c0_59 = arith.constant 0 : index
    %c0_60 = arith.constant 0 : index
    %c0_61 = arith.constant 0 : index
    %126 = vector.load %arg6[%c0_59, %c0_60, %c0_61] : memref<2x4x1xf32, #tpu.memory_space<vmem>>, vector<1x4x1xf32>
    %127 = vector.shape_cast %126 : vector<1x4x1xf32> to vector<4x1xf32>
    %cst_62 = arith.constant dense<0.000000e+00> : vector<4xf32>
    %128 = vector.multi_reduction <add>, %125, %cst_62 [1] : vector<4x256xf32> to vector<4xf32>
    %129 = vector.shape_cast %128 : vector<4xf32> to vector<4x1xf32>
    %130 = arith.addf %127, %129 : vector<4x1xf32>
    %c0_63 = arith.constant 0 : index
    %c0_64 = arith.constant 0 : index
    %c0_65 = arith.constant 0 : index
    %131 = vector.load %arg6[%c0_63, %c0_64, %c0_65] : memref<2x4x1xf32, #tpu.memory_space<vmem>>, vector<1x4x1xf32>
    %132 = vector.shape_cast %131 : vector<1x4x1xf32> to vector<4x1xf32>
    %133 = vector.shape_cast %130 : vector<4x1xf32> to vector<1x4x1xf32>
    tpu.vector_store %arg6[%c0_63, %c0_64, %c0_65], %133 {strides = array<i32>} : memref<2x4x1xf32, #tpu.memory_space<vmem>>, vector<1x4x1xf32>,
    %c1_66 = arith.constant 1 : index
    %c0_67 = arith.constant 0 : index
    %c0_68 = arith.constant 0 : index
    %134 = vector.load %arg6[%c1_66, %c0_67, %c0_68] : memref<2x4x1xf32, #tpu.memory_space<vmem>>, vector<1x4x1xf32>
    %135 = vector.shape_cast %134 : vector<1x4x1xf32> to vector<4x1xf32>
    %136 = arith.mulf %125, %125 : vector<4x256xf32>
    %cst_69 = arith.constant dense<0.000000e+00> : vector<4xf32>
    %137 = vector.multi_reduction <add>, %136, %cst_69 [1] : vector<4x256xf32> to vector<4xf32>
    %138 = vector.shape_cast %137 : vector<4xf32> to vector<4x1xf32>
    %139 = arith.addf %135, %138 : vector<4x1xf32>
    %c1_70 = arith.constant 1 : index
    %c0_71 = arith.constant 0 : index
    %c0_72 = arith.constant 0 : index
    %140 = vector.load %arg6[%c1_70, %c0_71, %c0_72] : memref<2x4x1xf32, #tpu.memory_space<vmem>>, vector<1x4x1xf32>
    %141 = vector.shape_cast %140 : vector<1x4x1xf32> to vector<4x1xf32>
    %142 = vector.shape_cast %139 : vector<4x1xf32> to vector<1x4x1xf32>
    tpu.vector_store %arg6[%c1_70, %c0_71, %c0_72], %142 {strides = array<i32>} : memref<2x4x1xf32, #tpu.memory_space<vmem>>, vector<1x4x1xf32>,
    return
  }
  func.func @transform_0(%arg0: i32) -> (i32, i32, i32) {
    %c0_i32 = arith.constant 0 : i32
    %c0_i32_0 = arith.constant 0 : i32
    %c0_i32_1 = arith.constant 0 : i32
    return %arg0, %c0_i32, %c0_i32_0 : i32, i32, i32
  }
  func.func @transform_1(%arg0: i32) -> (i32, i32, i32) {
    %c0_i32 = arith.constant 0 : i32
    %c0_i32_0 = arith.constant 0 : i32
    %c0_i32_1 = arith.constant 0 : i32
    %c0_i32_2 = arith.constant 0 : i32
    return %c0_i32, %c0_i32_0, %c0_i32_1 : i32, i32, i32
  }
  func.func @transform_2(%arg0: i32) -> (i32, i32) {
    %c0_i32 = arith.constant 0 : i32
    %c0_i32_0 = arith.constant 0 : i32
    %c0_i32_1 = arith.constant 0 : i32
    return %c0_i32, %c0_i32_0 : i32, i32
  }
  func.func @transform_3(%arg0: i32) -> (i32, i32) {
    %c0_i32 = arith.constant 0 : i32
    %c0_i32_0 = arith.constant 0 : i32
    %c0_i32_1 = arith.constant 0 : i32
    return %c0_i32, %c0_i32_0 : i32, i32
  }
  func.func @transform_4(%arg0: i32) -> (i32, i32, i32) {
    %c0_i32 = arith.constant 0 : i32
    %c0_i32_0 = arith.constant 0 : i32
    %c0_i32_1 = arith.constant 0 : i32
    return %arg0, %c0_i32, %c0_i32_0 : i32, i32, i32
  }
  func.func @transform_5(%arg0: i32) -> (i32, i32, i32) {
    %c0_i32 = arith.constant 0 : i32
    %c0_i32_0 = arith.constant 0 : i32
    %c0_i32_1 = arith.constant 0 : i32
    %c0_i32_2 = arith.constant 0 : i32
    return %c0_i32, %c0_i32_0, %c0_i32_1 : i32, i32, i32
  }
}

module attributes {stable_mosaic.version = 11 : i64} {
  func.func @kernel(%arg0: i32, %arg1: memref<1x4x256xbf16, #tpu.memory_space<vmem>>, %arg2: memref<2x4x1xf32, #tpu.memory_space<vmem>>, %arg3: memref<4x72xbf16, #tpu.memory_space<vmem>>, %arg4: memref<4x1xf32, #tpu.memory_space<vmem>>, %arg5: memref<1x4x256xbf16, #tpu.memory_space<vmem>>, %arg6: memref<1x4x256xbf16, #tpu.memory_space<vmem>>, %arg7: memref<72x256xbf16, #tpu.memory_space<vmem>>) attributes {dimension_semantics = [#tpu.dimension_semantics<parallel>], iteration_bounds = array<i64: 2>, scalar_prefetch = 0 : i64, scratch_operands = 1 : i64, tpu.core_type = #tpu.core_type<tc>, window_params = [{transform_indices = @transform_0, window_bounds = array<i64: 1, 4, 256>}, {pipeline_mode = #tpu.pipeline_mode<synchronous>, transform_indices = @transform_1, window_bounds = array<i64: 2, 4, 1>}, {pipeline_mode = #tpu.pipeline_mode<synchronous>, transform_indices = @transform_2, window_bounds = array<i64: 4, 72>}, {pipeline_mode = #tpu.pipeline_mode<synchronous>, transform_indices = @transform_3, window_bounds = array<i64: 4, 1>}, {transform_indices = @transform_4, window_bounds = array<i64: 1, 4, 256>}, {transform_indices = @transform_5, window_bounds = array<i64: 1, 4, 256>}]} {
    %c0 = arith.constant 0 : index
    %c0_0 = arith.constant 0 : index
    %c0_1 = arith.constant 0 : index
    %0 = vector.load %arg1[%c0, %c0_0, %c0_1] : memref<1x4x256xbf16, #tpu.memory_space<vmem>>, vector<1x4x256xbf16>
    %1 = vector.shape_cast %0 : vector<1x4x256xbf16> to vector<4x256xbf16>
    %2 = arith.extf %1 : vector<4x256xbf16> to vector<4x256xf32>
    %c0_2 = arith.constant 0 : index
    %c0_3 = arith.constant 0 : index
    %c0_4 = arith.constant 0 : index
    %3 = vector.load %arg2[%c0_2, %c0_3, %c0_4] : memref<2x4x1xf32, #tpu.memory_space<vmem>>, vector<1x4x1xf32>
    %4 = vector.shape_cast %3 : vector<1x4x1xf32> to vector<4x1xf32>
    %5 = vector.broadcast %4 : vector<4x1xf32> to vector<4x256xf32>
    %6 = arith.mulf %2, %5 : vector<4x256xf32>
    %c1 = arith.constant 1 : index
    %c0_5 = arith.constant 0 : index
    %c0_6 = arith.constant 0 : index
    %7 = vector.load %arg2[%c1, %c0_5, %c0_6] : memref<2x4x1xf32, #tpu.memory_space<vmem>>, vector<1x4x1xf32>
    %8 = vector.shape_cast %7 : vector<1x4x1xf32> to vector<4x1xf32>
    %9 = vector.broadcast %8 : vector<4x1xf32> to vector<4x256xf32>
    %10 = arith.addf %6, %9 : vector<4x256xf32>
    %cst = arith.constant 0.000000e+00 : f32
    %11 = vector.broadcast %cst : f32 to vector<4x256xf32>
    %12 = arith.maximumf %10, %11 : vector<4x256xf32>
    %13 = tpu.iota {dimensions = array<i32: 1>} : vector<1x256xi32>
    %c15_i32 = arith.constant 15 : i32
    %14 = vector.broadcast %c15_i32 : i32 to vector<1x256xi32>
    %15 = arith.andi %13, %14 : vector<1x256xi32>
    %cst_7 = arith.constant 0.000000e+00 : bf16
    %16 = vector.broadcast %cst_7 : bf16 to vector<4x256xbf16>
    %c4 = arith.constant 4 : index
    %c0_8 = arith.constant 0 : index
    %17 = vector.load %arg7[%c4, %c0_8] : memref<72x256xbf16, #tpu.memory_space<vmem>>, vector<4x256xbf16>
    tpu.vector_store %arg7[%c4, %c0_8], %16 {strides = array<i32>} : memref<72x256xbf16, #tpu.memory_space<vmem>>, vector<4x256xbf16>,
    %c12 = arith.constant 12 : index
    %c0_9 = arith.constant 0 : index
    %18 = vector.load %arg7[%c12, %c0_9] : memref<72x256xbf16, #tpu.memory_space<vmem>>, vector<4x256xbf16>
    tpu.vector_store %arg7[%c12, %c0_9], %16 {strides = array<i32>} : memref<72x256xbf16, #tpu.memory_space<vmem>>, vector<4x256xbf16>,
    %c20 = arith.constant 20 : index
    %c0_10 = arith.constant 0 : index
    %19 = vector.load %arg7[%c20, %c0_10] : memref<72x256xbf16, #tpu.memory_space<vmem>>, vector<4x256xbf16>
    tpu.vector_store %arg7[%c20, %c0_10], %16 {strides = array<i32>} : memref<72x256xbf16, #tpu.memory_space<vmem>>, vector<4x256xbf16>,
    %c28 = arith.constant 28 : index
    %c0_11 = arith.constant 0 : index
    %20 = vector.load %arg7[%c28, %c0_11] : memref<72x256xbf16, #tpu.memory_space<vmem>>, vector<4x256xbf16>
    tpu.vector_store %arg7[%c28, %c0_11], %16 {strides = array<i32>} : memref<72x256xbf16, #tpu.memory_space<vmem>>, vector<4x256xbf16>,
    %c36 = arith.constant 36 : index
    %c0_12 = arith.constant 0 : index
    %21 = vector.load %arg7[%c36, %c0_12] : memref<72x256xbf16, #tpu.memory_space<vmem>>, vector<4x256xbf16>
    tpu.vector_store %arg7[%c36, %c0_12], %16 {strides = array<i32>} : memref<72x256xbf16, #tpu.memory_space<vmem>>, vector<4x256xbf16>,
    %c44 = arith.constant 44 : index
    %c0_13 = arith.constant 0 : index
    %22 = vector.load %arg7[%c44, %c0_13] : memref<72x256xbf16, #tpu.memory_space<vmem>>, vector<4x256xbf16>
    tpu.vector_store %arg7[%c44, %c0_13], %16 {strides = array<i32>} : memref<72x256xbf16, #tpu.memory_space<vmem>>, vector<4x256xbf16>,
    %c52 = arith.constant 52 : index
    %c0_14 = arith.constant 0 : index
    %23 = vector.load %arg7[%c52, %c0_14] : memref<72x256xbf16, #tpu.memory_space<vmem>>, vector<4x256xbf16>
    tpu.vector_store %arg7[%c52, %c0_14], %16 {strides = array<i32>} : memref<72x256xbf16, #tpu.memory_space<vmem>>, vector<4x256xbf16>,
    %c60 = arith.constant 60 : index
    %c0_15 = arith.constant 0 : index
    %24 = vector.load %arg7[%c60, %c0_15] : memref<72x256xbf16, #tpu.memory_space<vmem>>, vector<4x256xbf16>
    tpu.vector_store %arg7[%c60, %c0_15], %16 {strides = array<i32>} : memref<72x256xbf16, #tpu.memory_space<vmem>>, vector<4x256xbf16>,
    %c68 = arith.constant 68 : index
    %c0_16 = arith.constant 0 : index
    %25 = vector.load %arg7[%c68, %c0_16] : memref<72x256xbf16, #tpu.memory_space<vmem>>, vector<4x256xbf16>
    tpu.vector_store %arg7[%c68, %c0_16], %16 {strides = array<i32>} : memref<72x256xbf16, #tpu.memory_space<vmem>>, vector<4x256xbf16>,
    %c17_i32 = arith.constant 17 : i32
    %26 = tpu.dynamic_rotate %12 by %c17_i32 dim 1 : vector<4x256xf32>, i32 -> vector<4x256xf32>
    %c16_i32 = arith.constant 16 : i32
    %27 = vector.broadcast %c16_i32 : i32 to vector<1x256xi32>
    %28 = arith.cmpi sge, %13, %27 : vector<1x256xi32>
    %c1_i32 = arith.constant 1 : i32
    %29 = vector.broadcast %c1_i32 : i32 to vector<1x256xi32>
    %30 = arith.cmpi sge, %15, %29 : vector<1x256xi32>
    %31 = arith.andi %28, %30 : vector<1x256xi1>
    %cst_17 = arith.constant 0.000000e+00 : f32
    %32 = vector.shape_cast %31 : vector<1x256xi1> to vector<1x256xi1>
    %33 = vector.broadcast %32 : vector<1x256xi1> to vector<4x256xi1>
    %34 = vector.broadcast %cst_17 : f32 to vector<4x256xf32>
    %35 = arith.select %33, %26, %34 : vector<4x256xi1>, vector<4x256xf32>
    %36 = arith.truncf %35 : vector<4x256xf32> to vector<4x256xbf16>
    %c0_18 = arith.constant 0 : index
    %c0_19 = arith.constant 0 : index
    %37 = vector.load %arg7[%c0_18, %c0_19] : memref<72x256xbf16, #tpu.memory_space<vmem>>, vector<4x256xbf16>
    tpu.vector_store %arg7[%c0_18, %c0_19], %36 {strides = array<i32>} : memref<72x256xbf16, #tpu.memory_space<vmem>>, vector<4x256xbf16>,
    %c16_i32_20 = arith.constant 16 : i32
    %38 = tpu.dynamic_rotate %12 by %c16_i32_20 dim 1 : vector<4x256xf32>, i32 -> vector<4x256xf32>
    %c16_i32_21 = arith.constant 16 : i32
    %39 = vector.broadcast %c16_i32_21 : i32 to vector<1x256xi32>
    %40 = arith.cmpi sge, %13, %39 : vector<1x256xi32>
    %cst_22 = arith.constant 0.000000e+00 : f32
    %41 = vector.shape_cast %40 : vector<1x256xi1> to vector<1x256xi1>
    %42 = vector.broadcast %41 : vector<1x256xi1> to vector<4x256xi1>
    %43 = vector.broadcast %cst_22 : f32 to vector<4x256xf32>
    %44 = arith.select %42, %38, %43 : vector<4x256xi1>, vector<4x256xf32>
    %45 = arith.truncf %44 : vector<4x256xf32> to vector<4x256xbf16>
    %c8 = arith.constant 8 : index
    %c0_23 = arith.constant 0 : index
    %46 = vector.load %arg7[%c8, %c0_23] : memref<72x256xbf16, #tpu.memory_space<vmem>>, vector<4x256xbf16>
    tpu.vector_store %arg7[%c8, %c0_23], %45 {strides = array<i32>} : memref<72x256xbf16, #tpu.memory_space<vmem>>, vector<4x256xbf16>,
    %c15_i32_24 = arith.constant 15 : i32
    %47 = tpu.dynamic_rotate %12 by %c15_i32_24 dim 1 : vector<4x256xf32>, i32 -> vector<4x256xf32>
    %c16_i32_25 = arith.constant 16 : i32
    %48 = vector.broadcast %c16_i32_25 : i32 to vector<1x256xi32>
    %49 = arith.cmpi sge, %13, %48 : vector<1x256xi32>
    %c15_i32_26 = arith.constant 15 : i32
    %50 = vector.broadcast %c15_i32_26 : i32 to vector<1x256xi32>
    %51 = arith.cmpi slt, %15, %50 : vector<1x256xi32>
    %52 = arith.andi %49, %51 : vector<1x256xi1>
    %cst_27 = arith.constant 0.000000e+00 : f32
    %53 = vector.shape_cast %52 : vector<1x256xi1> to vector<1x256xi1>
    %54 = vector.broadcast %53 : vector<1x256xi1> to vector<4x256xi1>
    %55 = vector.broadcast %cst_27 : f32 to vector<4x256xf32>
    %56 = arith.select %54, %47, %55 : vector<4x256xi1>, vector<4x256xf32>
    %57 = arith.truncf %56 : vector<4x256xf32> to vector<4x256xbf16>
    %c16 = arith.constant 16 : index
    %c0_28 = arith.constant 0 : index
    %58 = vector.load %arg7[%c16, %c0_28] : memref<72x256xbf16, #tpu.memory_space<vmem>>, vector<4x256xbf16>
    tpu.vector_store %arg7[%c16, %c0_28], %57 {strides = array<i32>} : memref<72x256xbf16, #tpu.memory_space<vmem>>, vector<4x256xbf16>,
    %c1_i32_29 = arith.constant 1 : i32
    %59 = tpu.dynamic_rotate %12 by %c1_i32_29 dim 1 : vector<4x256xf32>, i32 -> vector<4x256xf32>
    %c1_i32_30 = arith.constant 1 : i32
    %60 = vector.broadcast %c1_i32_30 : i32 to vector<1x256xi32>
    %61 = arith.cmpi sge, %15, %60 : vector<1x256xi32>
    %cst_31 = arith.constant 0.000000e+00 : f32
    %62 = vector.shape_cast %61 : vector<1x256xi1> to vector<1x256xi1>
    %63 = vector.broadcast %62 : vector<1x256xi1> to vector<4x256xi1>
    %64 = vector.broadcast %cst_31 : f32 to vector<4x256xf32>
    %65 = arith.select %63, %59, %64 : vector<4x256xi1>, vector<4x256xf32>
    %66 = arith.truncf %65 : vector<4x256xf32> to vector<4x256xbf16>
    %c24 = arith.constant 24 : index
    %c0_32 = arith.constant 0 : index
    %67 = vector.load %arg7[%c24, %c0_32] : memref<72x256xbf16, #tpu.memory_space<vmem>>, vector<4x256xbf16>
    tpu.vector_store %arg7[%c24, %c0_32], %66 {strides = array<i32>} : memref<72x256xbf16, #tpu.memory_space<vmem>>, vector<4x256xbf16>,
    %68 = arith.truncf %12 : vector<4x256xf32> to vector<4x256xbf16>
    %c32 = arith.constant 32 : index
    %c0_33 = arith.constant 0 : index
    %69 = vector.load %arg7[%c32, %c0_33] : memref<72x256xbf16, #tpu.memory_space<vmem>>, vector<4x256xbf16>
    tpu.vector_store %arg7[%c32, %c0_33], %68 {strides = array<i32>} : memref<72x256xbf16, #tpu.memory_space<vmem>>, vector<4x256xbf16>,
    %c255_i32 = arith.constant 255 : i32
    %70 = tpu.dynamic_rotate %12 by %c255_i32 dim 1 : vector<4x256xf32>, i32 -> vector<4x256xf32>
    %c15_i32_34 = arith.constant 15 : i32
    %71 = vector.broadcast %c15_i32_34 : i32 to vector<1x256xi32>
    %72 = arith.cmpi slt, %15, %71 : vector<1x256xi32>
    %cst_35 = arith.constant 0.000000e+00 : f32
    %73 = vector.shape_cast %72 : vector<1x256xi1> to vector<1x256xi1>
    %74 = vector.broadcast %73 : vector<1x256xi1> to vector<4x256xi1>
    %75 = vector.broadcast %cst_35 : f32 to vector<4x256xf32>
    %76 = arith.select %74, %70, %75 : vector<4x256xi1>, vector<4x256xf32>
    %77 = arith.truncf %76 : vector<4x256xf32> to vector<4x256xbf16>
    %c40 = arith.constant 40 : index
    %c0_36 = arith.constant 0 : index
    %78 = vector.load %arg7[%c40, %c0_36] : memref<72x256xbf16, #tpu.memory_space<vmem>>, vector<4x256xbf16>
    tpu.vector_store %arg7[%c40, %c0_36], %77 {strides = array<i32>} : memref<72x256xbf16, #tpu.memory_space<vmem>>, vector<4x256xbf16>,
    %c241_i32 = arith.constant 241 : i32
    %79 = tpu.dynamic_rotate %12 by %c241_i32 dim 1 : vector<4x256xf32>, i32 -> vector<4x256xf32>
    %c240_i32 = arith.constant 240 : i32
    %80 = vector.broadcast %c240_i32 : i32 to vector<1x256xi32>
    %81 = arith.cmpi slt, %13, %80 : vector<1x256xi32>
    %c1_i32_37 = arith.constant 1 : i32
    %82 = vector.broadcast %c1_i32_37 : i32 to vector<1x256xi32>
    %83 = arith.cmpi sge, %15, %82 : vector<1x256xi32>
    %84 = arith.andi %81, %83 : vector<1x256xi1>
    %cst_38 = arith.constant 0.000000e+00 : f32
    %85 = vector.shape_cast %84 : vector<1x256xi1> to vector<1x256xi1>
    %86 = vector.broadcast %85 : vector<1x256xi1> to vector<4x256xi1>
    %87 = vector.broadcast %cst_38 : f32 to vector<4x256xf32>
    %88 = arith.select %86, %79, %87 : vector<4x256xi1>, vector<4x256xf32>
    %89 = arith.truncf %88 : vector<4x256xf32> to vector<4x256xbf16>
    %c48 = arith.constant 48 : index
    %c0_39 = arith.constant 0 : index
    %90 = vector.load %arg7[%c48, %c0_39] : memref<72x256xbf16, #tpu.memory_space<vmem>>, vector<4x256xbf16>
    tpu.vector_store %arg7[%c48, %c0_39], %89 {strides = array<i32>} : memref<72x256xbf16, #tpu.memory_space<vmem>>, vector<4x256xbf16>,
    %c240_i32_40 = arith.constant 240 : i32
    %91 = tpu.dynamic_rotate %12 by %c240_i32_40 dim 1 : vector<4x256xf32>, i32 -> vector<4x256xf32>
    %c240_i32_41 = arith.constant 240 : i32
    %92 = vector.broadcast %c240_i32_41 : i32 to vector<1x256xi32>
    %93 = arith.cmpi slt, %13, %92 : vector<1x256xi32>
    %cst_42 = arith.constant 0.000000e+00 : f32
    %94 = vector.shape_cast %93 : vector<1x256xi1> to vector<1x256xi1>
    %95 = vector.broadcast %94 : vector<1x256xi1> to vector<4x256xi1>
    %96 = vector.broadcast %cst_42 : f32 to vector<4x256xf32>
    %97 = arith.select %95, %91, %96 : vector<4x256xi1>, vector<4x256xf32>
    %98 = arith.truncf %97 : vector<4x256xf32> to vector<4x256xbf16>
    %c56 = arith.constant 56 : index
    %c0_43 = arith.constant 0 : index
    %99 = vector.load %arg7[%c56, %c0_43] : memref<72x256xbf16, #tpu.memory_space<vmem>>, vector<4x256xbf16>
    tpu.vector_store %arg7[%c56, %c0_43], %98 {strides = array<i32>} : memref<72x256xbf16, #tpu.memory_space<vmem>>, vector<4x256xbf16>,
    %c239_i32 = arith.constant 239 : i32
    %100 = tpu.dynamic_rotate %12 by %c239_i32 dim 1 : vector<4x256xf32>, i32 -> vector<4x256xf32>
    %c240_i32_44 = arith.constant 240 : i32
    %101 = vector.broadcast %c240_i32_44 : i32 to vector<1x256xi32>
    %102 = arith.cmpi slt, %13, %101 : vector<1x256xi32>
    %c15_i32_45 = arith.constant 15 : i32
    %103 = vector.broadcast %c15_i32_45 : i32 to vector<1x256xi32>
    %104 = arith.cmpi slt, %15, %103 : vector<1x256xi32>
    %105 = arith.andi %102, %104 : vector<1x256xi1>
    %cst_46 = arith.constant 0.000000e+00 : f32
    %106 = vector.shape_cast %105 : vector<1x256xi1> to vector<1x256xi1>
    %107 = vector.broadcast %106 : vector<1x256xi1> to vector<4x256xi1>
    %108 = vector.broadcast %cst_46 : f32 to vector<4x256xf32>
    %109 = arith.select %107, %100, %108 : vector<4x256xi1>, vector<4x256xf32>
    %110 = arith.truncf %109 : vector<4x256xf32> to vector<4x256xbf16>
    %c64 = arith.constant 64 : index
    %c0_47 = arith.constant 0 : index
    %111 = vector.load %arg7[%c64, %c0_47] : memref<72x256xbf16, #tpu.memory_space<vmem>>, vector<4x256xbf16>
    tpu.vector_store %arg7[%c64, %c0_47], %110 {strides = array<i32>} : memref<72x256xbf16, #tpu.memory_space<vmem>>, vector<4x256xbf16>,
    %c0_48 = arith.constant 0 : index
    %c0_49 = arith.constant 0 : index
    %112 = vector.load %arg3[%c0_48, %c0_49] : memref<4x72xbf16, #tpu.memory_space<vmem>>, vector<4x72xbf16>
    %c0_50 = arith.constant 0 : index
    %c0_51 = arith.constant 0 : index
    %113 = vector.load %arg7[%c0_50, %c0_51] : memref<72x256xbf16, #tpu.memory_space<vmem>>, vector<72x256xbf16>
    %cst_52 = arith.constant dense<0.000000e+00> : vector<4x256xf32>
    %114 = tpu.matmul %112, %113, %cst_52 {dimension_numbers = #tpu.dot_dimension_numbers<[1], [0], [0], [1], [0, 0, 1, 1], [], []>} : vector<4x72xbf16>, vector<72x256xbf16>, vector<4x256xf32> -> vector<4x256xf32>
    %c0_53 = arith.constant 0 : index
    %c0_54 = arith.constant 0 : index
    %115 = vector.load %arg4[%c0_53, %c0_54] : memref<4x1xf32, #tpu.memory_space<vmem>>, vector<4x1xf32>
    %116 = vector.broadcast %115 : vector<4x1xf32> to vector<4x256xf32>
    %117 = arith.addf %114, %116 : vector<4x256xf32>
    %c0_55 = arith.constant 0 : index
    %c0_56 = arith.constant 0 : index
    %c0_57 = arith.constant 0 : index
    %118 = vector.load %arg5[%c0_55, %c0_56, %c0_57] : memref<1x4x256xbf16, #tpu.memory_space<vmem>>, vector<1x4x256xbf16>
    %119 = vector.shape_cast %118 : vector<1x4x256xbf16> to vector<4x256xbf16>
    %120 = arith.extf %119 : vector<4x256xbf16> to vector<4x256xf32>
    %121 = arith.addf %117, %120 : vector<4x256xf32>
    %122 = arith.truncf %121 : vector<4x256xf32> to vector<4x256xbf16>
    %c0_58 = arith.constant 0 : index
    %c0_59 = arith.constant 0 : index
    %c0_60 = arith.constant 0 : index
    %123 = vector.load %arg6[%c0_58, %c0_59, %c0_60] : memref<1x4x256xbf16, #tpu.memory_space<vmem>>, vector<1x4x256xbf16>
    %124 = vector.shape_cast %123 : vector<1x4x256xbf16> to vector<4x256xbf16>
    %125 = vector.shape_cast %122 : vector<4x256xbf16> to vector<1x4x256xbf16>
    tpu.vector_store %arg6[%c0_58, %c0_59, %c0_60], %125 {strides = array<i32>} : memref<1x4x256xbf16, #tpu.memory_space<vmem>>, vector<1x4x256xbf16>,
    return
  }
  func.func @transform_0(%arg0: i32) -> (i32, i32, i32) {
    %c0_i32 = arith.constant 0 : i32
    %c0_i32_0 = arith.constant 0 : i32
    %c0_i32_1 = arith.constant 0 : i32
    return %arg0, %c0_i32, %c0_i32_0 : i32, i32, i32
  }
  func.func @transform_1(%arg0: i32) -> (i32, i32, i32) {
    %c0_i32 = arith.constant 0 : i32
    %c0_i32_0 = arith.constant 0 : i32
    %c0_i32_1 = arith.constant 0 : i32
    %c0_i32_2 = arith.constant 0 : i32
    return %c0_i32, %c0_i32_0, %c0_i32_1 : i32, i32, i32
  }
  func.func @transform_2(%arg0: i32) -> (i32, i32) {
    %c0_i32 = arith.constant 0 : i32
    %c0_i32_0 = arith.constant 0 : i32
    %c0_i32_1 = arith.constant 0 : i32
    return %c0_i32, %c0_i32_0 : i32, i32
  }
  func.func @transform_3(%arg0: i32) -> (i32, i32) {
    %c0_i32 = arith.constant 0 : i32
    %c0_i32_0 = arith.constant 0 : i32
    %c0_i32_1 = arith.constant 0 : i32
    return %c0_i32, %c0_i32_0 : i32, i32
  }
  func.func @transform_4(%arg0: i32) -> (i32, i32, i32) {
    %c0_i32 = arith.constant 0 : i32
    %c0_i32_0 = arith.constant 0 : i32
    %c0_i32_1 = arith.constant 0 : i32
    return %arg0, %c0_i32, %c0_i32_0 : i32, i32, i32
  }
  func.func @transform_5(%arg0: i32) -> (i32, i32, i32) {
    %c0_i32 = arith.constant 0 : i32
    %c0_i32_0 = arith.constant 0 : i32
    %c0_i32_1 = arith.constant 0 : i32
    return %arg0, %c0_i32, %c0_i32_0 : i32, i32, i32
  }
}

module attributes {stable_mosaic.version = 11 : i64} {
  func.func @kernel(%arg0: i32, %arg1: memref<1x4x256xbf16, #tpu.memory_space<vmem>>, %arg2: memref<2x72xbf16, #tpu.memory_space<vmem>>, %arg3: memref<2x1xf32, #tpu.memory_space<vmem>>, %arg4: memref<1x2x256xf32, #tpu.memory_space<vmem>>, %arg5: memref<72x256xbf16, #tpu.memory_space<vmem>>) attributes {dimension_semantics = [#tpu.dimension_semantics<parallel>], iteration_bounds = array<i64: 2>, scalar_prefetch = 0 : i64, scratch_operands = 1 : i64, tpu.core_type = #tpu.core_type<tc>, window_params = [{transform_indices = @transform_0, window_bounds = array<i64: 1, 4, 256>}, {pipeline_mode = #tpu.pipeline_mode<synchronous>, transform_indices = @transform_1, window_bounds = array<i64: 2, 72>}, {pipeline_mode = #tpu.pipeline_mode<synchronous>, transform_indices = @transform_2, window_bounds = array<i64: 2, 1>}, {transform_indices = @transform_3, window_bounds = array<i64: 1, 2, 256>}]} {
    %c0 = arith.constant 0 : index
    %c0_0 = arith.constant 0 : index
    %c0_1 = arith.constant 0 : index
    %0 = vector.load %arg1[%c0, %c0_0, %c0_1] : memref<1x4x256xbf16, #tpu.memory_space<vmem>>, vector<1x4x256xbf16>
    %1 = vector.shape_cast %0 : vector<1x4x256xbf16> to vector<4x256xbf16>
    %2 = arith.extf %1 : vector<4x256xbf16> to vector<4x256xf32>
    %3 = tpu.iota {dimensions = array<i32: 1>} : vector<1x256xi32>
    %c15_i32 = arith.constant 15 : i32
    %4 = vector.broadcast %c15_i32 : i32 to vector<1x256xi32>
    %5 = arith.andi %3, %4 : vector<1x256xi32>
    %cst = arith.constant 0.000000e+00 : bf16
    %6 = vector.broadcast %cst : bf16 to vector<4x256xbf16>
    %c4 = arith.constant 4 : index
    %c0_2 = arith.constant 0 : index
    %7 = vector.load %arg5[%c4, %c0_2] : memref<72x256xbf16, #tpu.memory_space<vmem>>, vector<4x256xbf16>
    tpu.vector_store %arg5[%c4, %c0_2], %6 {strides = array<i32>} : memref<72x256xbf16, #tpu.memory_space<vmem>>, vector<4x256xbf16>,
    %c12 = arith.constant 12 : index
    %c0_3 = arith.constant 0 : index
    %8 = vector.load %arg5[%c12, %c0_3] : memref<72x256xbf16, #tpu.memory_space<vmem>>, vector<4x256xbf16>
    tpu.vector_store %arg5[%c12, %c0_3], %6 {strides = array<i32>} : memref<72x256xbf16, #tpu.memory_space<vmem>>, vector<4x256xbf16>,
    %c20 = arith.constant 20 : index
    %c0_4 = arith.constant 0 : index
    %9 = vector.load %arg5[%c20, %c0_4] : memref<72x256xbf16, #tpu.memory_space<vmem>>, vector<4x256xbf16>
    tpu.vector_store %arg5[%c20, %c0_4], %6 {strides = array<i32>} : memref<72x256xbf16, #tpu.memory_space<vmem>>, vector<4x256xbf16>,
    %c28 = arith.constant 28 : index
    %c0_5 = arith.constant 0 : index
    %10 = vector.load %arg5[%c28, %c0_5] : memref<72x256xbf16, #tpu.memory_space<vmem>>, vector<4x256xbf16>
    tpu.vector_store %arg5[%c28, %c0_5], %6 {strides = array<i32>} : memref<72x256xbf16, #tpu.memory_space<vmem>>, vector<4x256xbf16>,
    %c36 = arith.constant 36 : index
    %c0_6 = arith.constant 0 : index
    %11 = vector.load %arg5[%c36, %c0_6] : memref<72x256xbf16, #tpu.memory_space<vmem>>, vector<4x256xbf16>
    tpu.vector_store %arg5[%c36, %c0_6], %6 {strides = array<i32>} : memref<72x256xbf16, #tpu.memory_space<vmem>>, vector<4x256xbf16>,
    %c44 = arith.constant 44 : index
    %c0_7 = arith.constant 0 : index
    %12 = vector.load %arg5[%c44, %c0_7] : memref<72x256xbf16, #tpu.memory_space<vmem>>, vector<4x256xbf16>
    tpu.vector_store %arg5[%c44, %c0_7], %6 {strides = array<i32>} : memref<72x256xbf16, #tpu.memory_space<vmem>>, vector<4x256xbf16>,
    %c52 = arith.constant 52 : index
    %c0_8 = arith.constant 0 : index
    %13 = vector.load %arg5[%c52, %c0_8] : memref<72x256xbf16, #tpu.memory_space<vmem>>, vector<4x256xbf16>
    tpu.vector_store %arg5[%c52, %c0_8], %6 {strides = array<i32>} : memref<72x256xbf16, #tpu.memory_space<vmem>>, vector<4x256xbf16>,
    %c60 = arith.constant 60 : index
    %c0_9 = arith.constant 0 : index
    %14 = vector.load %arg5[%c60, %c0_9] : memref<72x256xbf16, #tpu.memory_space<vmem>>, vector<4x256xbf16>
    tpu.vector_store %arg5[%c60, %c0_9], %6 {strides = array<i32>} : memref<72x256xbf16, #tpu.memory_space<vmem>>, vector<4x256xbf16>,
    %c68 = arith.constant 68 : index
    %c0_10 = arith.constant 0 : index
    %15 = vector.load %arg5[%c68, %c0_10] : memref<72x256xbf16, #tpu.memory_space<vmem>>, vector<4x256xbf16>
    tpu.vector_store %arg5[%c68, %c0_10], %6 {strides = array<i32>} : memref<72x256xbf16, #tpu.memory_space<vmem>>, vector<4x256xbf16>,
    %c17_i32 = arith.constant 17 : i32
    %16 = tpu.dynamic_rotate %2 by %c17_i32 dim 1 : vector<4x256xf32>, i32 -> vector<4x256xf32>
    %c16_i32 = arith.constant 16 : i32
    %17 = vector.broadcast %c16_i32 : i32 to vector<1x256xi32>
    %18 = arith.cmpi sge, %3, %17 : vector<1x256xi32>
    %c1_i32 = arith.constant 1 : i32
    %19 = vector.broadcast %c1_i32 : i32 to vector<1x256xi32>
    %20 = arith.cmpi sge, %5, %19 : vector<1x256xi32>
    %21 = arith.andi %18, %20 : vector<1x256xi1>
    %cst_11 = arith.constant 0.000000e+00 : f32
    %22 = vector.shape_cast %21 : vector<1x256xi1> to vector<1x256xi1>
    %23 = vector.broadcast %22 : vector<1x256xi1> to vector<4x256xi1>
    %24 = vector.broadcast %cst_11 : f32 to vector<4x256xf32>
    %25 = arith.select %23, %16, %24 : vector<4x256xi1>, vector<4x256xf32>
    %26 = arith.truncf %25 : vector<4x256xf32> to vector<4x256xbf16>
    %c0_12 = arith.constant 0 : index
    %c0_13 = arith.constant 0 : index
    %27 = vector.load %arg5[%c0_12, %c0_13] : memref<72x256xbf16, #tpu.memory_space<vmem>>, vector<4x256xbf16>
    tpu.vector_store %arg5[%c0_12, %c0_13], %26 {strides = array<i32>} : memref<72x256xbf16, #tpu.memory_space<vmem>>, vector<4x256xbf16>,
    %c16_i32_14 = arith.constant 16 : i32
    %28 = tpu.dynamic_rotate %2 by %c16_i32_14 dim 1 : vector<4x256xf32>, i32 -> vector<4x256xf32>
    %c16_i32_15 = arith.constant 16 : i32
    %29 = vector.broadcast %c16_i32_15 : i32 to vector<1x256xi32>
    %30 = arith.cmpi sge, %3, %29 : vector<1x256xi32>
    %cst_16 = arith.constant 0.000000e+00 : f32
    %31 = vector.shape_cast %30 : vector<1x256xi1> to vector<1x256xi1>
    %32 = vector.broadcast %31 : vector<1x256xi1> to vector<4x256xi1>
    %33 = vector.broadcast %cst_16 : f32 to vector<4x256xf32>
    %34 = arith.select %32, %28, %33 : vector<4x256xi1>, vector<4x256xf32>
    %35 = arith.truncf %34 : vector<4x256xf32> to vector<4x256xbf16>
    %c8 = arith.constant 8 : index
    %c0_17 = arith.constant 0 : index
    %36 = vector.load %arg5[%c8, %c0_17] : memref<72x256xbf16, #tpu.memory_space<vmem>>, vector<4x256xbf16>
    tpu.vector_store %arg5[%c8, %c0_17], %35 {strides = array<i32>} : memref<72x256xbf16, #tpu.memory_space<vmem>>, vector<4x256xbf16>,
    %c15_i32_18 = arith.constant 15 : i32
    %37 = tpu.dynamic_rotate %2 by %c15_i32_18 dim 1 : vector<4x256xf32>, i32 -> vector<4x256xf32>
    %c16_i32_19 = arith.constant 16 : i32
    %38 = vector.broadcast %c16_i32_19 : i32 to vector<1x256xi32>
    %39 = arith.cmpi sge, %3, %38 : vector<1x256xi32>
    %c15_i32_20 = arith.constant 15 : i32
    %40 = vector.broadcast %c15_i32_20 : i32 to vector<1x256xi32>
    %41 = arith.cmpi slt, %5, %40 : vector<1x256xi32>
    %42 = arith.andi %39, %41 : vector<1x256xi1>
    %cst_21 = arith.constant 0.000000e+00 : f32
    %43 = vector.shape_cast %42 : vector<1x256xi1> to vector<1x256xi1>
    %44 = vector.broadcast %43 : vector<1x256xi1> to vector<4x256xi1>
    %45 = vector.broadcast %cst_21 : f32 to vector<4x256xf32>
    %46 = arith.select %44, %37, %45 : vector<4x256xi1>, vector<4x256xf32>
    %47 = arith.truncf %46 : vector<4x256xf32> to vector<4x256xbf16>
    %c16 = arith.constant 16 : index
    %c0_22 = arith.constant 0 : index
    %48 = vector.load %arg5[%c16, %c0_22] : memref<72x256xbf16, #tpu.memory_space<vmem>>, vector<4x256xbf16>
    tpu.vector_store %arg5[%c16, %c0_22], %47 {strides = array<i32>} : memref<72x256xbf16, #tpu.memory_space<vmem>>, vector<4x256xbf16>,
    %c1_i32_23 = arith.constant 1 : i32
    %49 = tpu.dynamic_rotate %2 by %c1_i32_23 dim 1 : vector<4x256xf32>, i32 -> vector<4x256xf32>
    %c1_i32_24 = arith.constant 1 : i32
    %50 = vector.broadcast %c1_i32_24 : i32 to vector<1x256xi32>
    %51 = arith.cmpi sge, %5, %50 : vector<1x256xi32>
    %cst_25 = arith.constant 0.000000e+00 : f32
    %52 = vector.shape_cast %51 : vector<1x256xi1> to vector<1x256xi1>
    %53 = vector.broadcast %52 : vector<1x256xi1> to vector<4x256xi1>
    %54 = vector.broadcast %cst_25 : f32 to vector<4x256xf32>
    %55 = arith.select %53, %49, %54 : vector<4x256xi1>, vector<4x256xf32>
    %56 = arith.truncf %55 : vector<4x256xf32> to vector<4x256xbf16>
    %c24 = arith.constant 24 : index
    %c0_26 = arith.constant 0 : index
    %57 = vector.load %arg5[%c24, %c0_26] : memref<72x256xbf16, #tpu.memory_space<vmem>>, vector<4x256xbf16>
    tpu.vector_store %arg5[%c24, %c0_26], %56 {strides = array<i32>} : memref<72x256xbf16, #tpu.memory_space<vmem>>, vector<4x256xbf16>,
    %58 = arith.truncf %2 : vector<4x256xf32> to vector<4x256xbf16>
    %c32 = arith.constant 32 : index
    %c0_27 = arith.constant 0 : index
    %59 = vector.load %arg5[%c32, %c0_27] : memref<72x256xbf16, #tpu.memory_space<vmem>>, vector<4x256xbf16>
    tpu.vector_store %arg5[%c32, %c0_27], %58 {strides = array<i32>} : memref<72x256xbf16, #tpu.memory_space<vmem>>, vector<4x256xbf16>,
    %c255_i32 = arith.constant 255 : i32
    %60 = tpu.dynamic_rotate %2 by %c255_i32 dim 1 : vector<4x256xf32>, i32 -> vector<4x256xf32>
    %c15_i32_28 = arith.constant 15 : i32
    %61 = vector.broadcast %c15_i32_28 : i32 to vector<1x256xi32>
    %62 = arith.cmpi slt, %5, %61 : vector<1x256xi32>
    %cst_29 = arith.constant 0.000000e+00 : f32
    %63 = vector.shape_cast %62 : vector<1x256xi1> to vector<1x256xi1>
    %64 = vector.broadcast %63 : vector<1x256xi1> to vector<4x256xi1>
    %65 = vector.broadcast %cst_29 : f32 to vector<4x256xf32>
    %66 = arith.select %64, %60, %65 : vector<4x256xi1>, vector<4x256xf32>
    %67 = arith.truncf %66 : vector<4x256xf32> to vector<4x256xbf16>
    %c40 = arith.constant 40 : index
    %c0_30 = arith.constant 0 : index
    %68 = vector.load %arg5[%c40, %c0_30] : memref<72x256xbf16, #tpu.memory_space<vmem>>, vector<4x256xbf16>
    tpu.vector_store %arg5[%c40, %c0_30], %67 {strides = array<i32>} : memref<72x256xbf16, #tpu.memory_space<vmem>>, vector<4x256xbf16>,
    %c241_i32 = arith.constant 241 : i32
    %69 = tpu.dynamic_rotate %2 by %c241_i32 dim 1 : vector<4x256xf32>, i32 -> vector<4x256xf32>
    %c240_i32 = arith.constant 240 : i32
    %70 = vector.broadcast %c240_i32 : i32 to vector<1x256xi32>
    %71 = arith.cmpi slt, %3, %70 : vector<1x256xi32>
    %c1_i32_31 = arith.constant 1 : i32
    %72 = vector.broadcast %c1_i32_31 : i32 to vector<1x256xi32>
    %73 = arith.cmpi sge, %5, %72 : vector<1x256xi32>
    %74 = arith.andi %71, %73 : vector<1x256xi1>
    %cst_32 = arith.constant 0.000000e+00 : f32
    %75 = vector.shape_cast %74 : vector<1x256xi1> to vector<1x256xi1>
    %76 = vector.broadcast %75 : vector<1x256xi1> to vector<4x256xi1>
    %77 = vector.broadcast %cst_32 : f32 to vector<4x256xf32>
    %78 = arith.select %76, %69, %77 : vector<4x256xi1>, vector<4x256xf32>
    %79 = arith.truncf %78 : vector<4x256xf32> to vector<4x256xbf16>
    %c48 = arith.constant 48 : index
    %c0_33 = arith.constant 0 : index
    %80 = vector.load %arg5[%c48, %c0_33] : memref<72x256xbf16, #tpu.memory_space<vmem>>, vector<4x256xbf16>
    tpu.vector_store %arg5[%c48, %c0_33], %79 {strides = array<i32>} : memref<72x256xbf16, #tpu.memory_space<vmem>>, vector<4x256xbf16>,
    %c240_i32_34 = arith.constant 240 : i32
    %81 = tpu.dynamic_rotate %2 by %c240_i32_34 dim 1 : vector<4x256xf32>, i32 -> vector<4x256xf32>
    %c240_i32_35 = arith.constant 240 : i32
    %82 = vector.broadcast %c240_i32_35 : i32 to vector<1x256xi32>
    %83 = arith.cmpi slt, %3, %82 : vector<1x256xi32>
    %cst_36 = arith.constant 0.000000e+00 : f32
    %84 = vector.shape_cast %83 : vector<1x256xi1> to vector<1x256xi1>
    %85 = vector.broadcast %84 : vector<1x256xi1> to vector<4x256xi1>
    %86 = vector.broadcast %cst_36 : f32 to vector<4x256xf32>
    %87 = arith.select %85, %81, %86 : vector<4x256xi1>, vector<4x256xf32>
    %88 = arith.truncf %87 : vector<4x256xf32> to vector<4x256xbf16>
    %c56 = arith.constant 56 : index
    %c0_37 = arith.constant 0 : index
    %89 = vector.load %arg5[%c56, %c0_37] : memref<72x256xbf16, #tpu.memory_space<vmem>>, vector<4x256xbf16>
    tpu.vector_store %arg5[%c56, %c0_37], %88 {strides = array<i32>} : memref<72x256xbf16, #tpu.memory_space<vmem>>, vector<4x256xbf16>,
    %c239_i32 = arith.constant 239 : i32
    %90 = tpu.dynamic_rotate %2 by %c239_i32 dim 1 : vector<4x256xf32>, i32 -> vector<4x256xf32>
    %c240_i32_38 = arith.constant 240 : i32
    %91 = vector.broadcast %c240_i32_38 : i32 to vector<1x256xi32>
    %92 = arith.cmpi slt, %3, %91 : vector<1x256xi32>
    %c15_i32_39 = arith.constant 15 : i32
    %93 = vector.broadcast %c15_i32_39 : i32 to vector<1x256xi32>
    %94 = arith.cmpi slt, %5, %93 : vector<1x256xi32>
    %95 = arith.andi %92, %94 : vector<1x256xi1>
    %cst_40 = arith.constant 0.000000e+00 : f32
    %96 = vector.shape_cast %95 : vector<1x256xi1> to vector<1x256xi1>
    %97 = vector.broadcast %96 : vector<1x256xi1> to vector<4x256xi1>
    %98 = vector.broadcast %cst_40 : f32 to vector<4x256xf32>
    %99 = arith.select %97, %90, %98 : vector<4x256xi1>, vector<4x256xf32>
    %100 = arith.truncf %99 : vector<4x256xf32> to vector<4x256xbf16>
    %c64 = arith.constant 64 : index
    %c0_41 = arith.constant 0 : index
    %101 = vector.load %arg5[%c64, %c0_41] : memref<72x256xbf16, #tpu.memory_space<vmem>>, vector<4x256xbf16>
    tpu.vector_store %arg5[%c64, %c0_41], %100 {strides = array<i32>} : memref<72x256xbf16, #tpu.memory_space<vmem>>, vector<4x256xbf16>,
    %c0_42 = arith.constant 0 : index
    %c0_43 = arith.constant 0 : index
    %102 = vector.load %arg2[%c0_42, %c0_43] : memref<2x72xbf16, #tpu.memory_space<vmem>>, vector<2x72xbf16>
    %c0_44 = arith.constant 0 : index
    %c0_45 = arith.constant 0 : index
    %103 = vector.load %arg5[%c0_44, %c0_45] : memref<72x256xbf16, #tpu.memory_space<vmem>>, vector<72x256xbf16>
    %cst_46 = arith.constant dense<0.000000e+00> : vector<2x256xf32>
    %104 = tpu.matmul %102, %103, %cst_46 {dimension_numbers = #tpu.dot_dimension_numbers<[1], [0], [0], [1], [0, 0, 1, 1], [], []>} : vector<2x72xbf16>, vector<72x256xbf16>, vector<2x256xf32> -> vector<2x256xf32>
    %c0_47 = arith.constant 0 : index
    %c0_48 = arith.constant 0 : index
    %105 = vector.load %arg3[%c0_47, %c0_48] : memref<2x1xf32, #tpu.memory_space<vmem>>, vector<2x1xf32>
    %106 = vector.broadcast %105 : vector<2x1xf32> to vector<2x256xf32>
    %107 = arith.addf %104, %106 : vector<2x256xf32>
    %cst_49 = arith.constant 0.000000e+00 : f32
    %108 = vector.broadcast %cst_49 : f32 to vector<2x256xf32>
    %109 = arith.subf %108, %107 : vector<2x256xf32>
    %110 = math.exp %109 : vector<2x256xf32>
    %cst_50 = arith.constant 1.000000e+00 : f32
    %111 = vector.broadcast %cst_50 : f32 to vector<2x256xf32>
    %112 = arith.addf %111, %110 : vector<2x256xf32>
    %cst_51 = arith.constant 1.000000e+00 : f32
    %113 = vector.broadcast %cst_51 : f32 to vector<2x256xf32>
    %114 = arith.divf %113, %112 : vector<2x256xf32>
    %c0_52 = arith.constant 0 : index
    %c0_53 = arith.constant 0 : index
    %c0_54 = arith.constant 0 : index
    %115 = vector.load %arg4[%c0_52, %c0_53, %c0_54] : memref<1x2x256xf32, #tpu.memory_space<vmem>>, vector<1x2x256xf32>
    %116 = vector.shape_cast %115 : vector<1x2x256xf32> to vector<2x256xf32>
    %117 = vector.shape_cast %114 : vector<2x256xf32> to vector<1x2x256xf32>
    tpu.vector_store %arg4[%c0_52, %c0_53, %c0_54], %117 {strides = array<i32>} : memref<1x2x256xf32, #tpu.memory_space<vmem>>, vector<1x2x256xf32>,
    return
  }
  func.func @transform_0(%arg0: i32) -> (i32, i32, i32) {
    %c0_i32 = arith.constant 0 : i32
    %c0_i32_0 = arith.constant 0 : i32
    %c0_i32_1 = arith.constant 0 : i32
    return %arg0, %c0_i32, %c0_i32_0 : i32, i32, i32
  }
  func.func @transform_1(%arg0: i32) -> (i32, i32) {
    %c0_i32 = arith.constant 0 : i32
    %c0_i32_0 = arith.constant 0 : i32
    %c0_i32_1 = arith.constant 0 : i32
    return %c0_i32, %c0_i32_0 : i32, i32
  }
  func.func @transform_2(%arg0: i32) -> (i32, i32) {
    %c0_i32 = arith.constant 0 : i32
    %c0_i32_0 = arith.constant 0 : i32
    %c0_i32_1 = arith.constant 0 : i32
    return %c0_i32, %c0_i32_0 : i32, i32
  }
  func.func @transform_3(%arg0: i32) -> (i32, i32, i32) {
    %c0_i32 = arith.constant 0 : i32
    %c0_i32_0 = arith.constant 0 : i32
    %c0_i32_1 = arith.constant 0 : i32
    return %arg0, %c0_i32, %c0_i32_0 : i32, i32, i32
  }
}

</mosaic_0001>

<bundles_post_ra>
// kernel: last_block_forward.7
= control target key start
LH: loop header
LB: loop body
LE: loop exit
PB: predicated region body
PF: predicated region fallthrough
CT: control target
= control target key end

     0   :  { %8 = vsyncpa [#allocation4], 0  ;;  %s986_s0 = inlined_call_operand.hbm [shape: bf16[2,4,128], index: 0, kind: input, shape index: {}]   ;;  %s987_s1 = inlined_call_operand.hbm [shape: bf16[16,32], index: 1, kind: input, shape index: {}]   ;;  %s988_s2 = inlined_call_operand.hbm [shape: f32[16,1], index: 2, kind: input, shape index: {}]   ;;  %s989_s3 = inlined_call_operand.hbm [shape: bf16[2,16,128], index: 3, kind: output, shape index: {}]  }
   0x1   :  { %10 = vsyncpa [#allocation4 + $0x1], 0 }
   0x2   :  { %11 = vsyncpa [#allocation7], 0 }
   0x3   :  { %12 = vsyncpa [#allocation5], 0 }
   0x4   :  { %14 = vsyncpa [#allocation5 + $0x1], 0  ;;  %s754_s12 = smov 0   ;;  %s756_s13 = smov 0  }
   0x5   :  { %s758_s14 = smov 0   ;;  %s760_s15 = smov 0  }
   0x6 LB: > { %s775_s16 = sadd.s32 4294967295, %s716_s15   ;;  %s438_s17 = sadd.s32 4294967294, %s716_s15   ;;  %s716_s15 = sphi %s760_s15, %s1009_s15   ;;  %s712_s14 = sphi %s758_s14, %s1008_s14   ;;  %s708_s13 = sphi %s756_s13, %s1007_s13   ;;  %s704_s12 = sphi %s754_s12, %s1006_s12  }
   0x7   : > { %p40_p0 = scmp.ne.s32.totalorder %s708_s13, %s704_s12  ;;  %p990_p1 = scmp.eq.s32.totalorder %s775_s16, 0 }
   0x8   : > { %p112_p3 = scmp.eq.s32.totalorder %s438_s17, 1  ;;  %p439_p5 = scmp.ge.s32.totalorder %s716_s15, 1 }
   0x9   : > { %p784_p4 = por %p990_p1, %p40_p0  ;;  %p119_p7 = scmp.lt.s32.totalorder %s716_s15, 3 }
   0xa   : > { %p789_p6 = por %p112_p3, %p40_p0  ;;  %s718_s21 = smov [#allocation6]  }
   0xb   : > { %s993_s18 = scalar_select %p784_p4, 1, 0 }
   0xc   : > { %s994_s19 = scalar_select %p789_p6, 1, 0 }
   0xd   : > { %p794_p8 = pnand %p439_p5, %p119_p7  ;;  %s131_s22 = sshll.u32 %s718_s21, 4  ;;  %s798_s22 = int_to_ptr.vmem [resolvable:$true] %s131_s22 }
   0xe   : > { %s719_s24 = smov [#allocation8]   ;;  %s560_s28 = scalar_lea.hbm %s987_s1, 128 }
   0xf   : > { %p490_p9 = pneg %p794_p8  ;;  %s144_s25 = sshll.u32 %s719_s24, 4  ;;  %s809_s25 = int_to_ptr.vmem [resolvable:$true] %s144_s25 }
  0x10   : > { %p561_p12 = scmp.ne.s32.totalorder %s987_s1, %s560_s28  ;;  %p567_p5 = scmp.lt.u32.totalorder %s560_s28, %s987_s1 }
  0x11   : > { %p805_p11 = pnand %p490_p9, %p990_p1 }
  0x13   : > { %p562_p13 = pneg %p805_p11 }
  0x15   : > { %p563_p0 = pnand %p562_p13, %p561_p12 }
  0x17   : > { %p564_p3 = pneg %p563_p0 }
  0x19   : > { %p569_p7 = pnand %p567_p5, %p564_p3 }
  0x1b   : > { %572 = shalt.err (!%p569_p7)
}
  0x1c   : > { %s573_s6 = scalar_lea.vmem %s798_s22, 128  ;;  %p581_p2 = scmp.lt.s32.totalorder %s798_s22, %s798_s22 }
  0x1d   : > { %p574_p9 = scmp.ne.s32.totalorder %s798_s22, %s573_s6  ;;  %p582_p12 = scmp.lt.s32.totalorder %s573_s6, %s573_s6 }
  0x1f   : > { %p576_p10 = pnand %p574_p9, %p562_p13  ;;  %p583_p0 = por %p582_p12, %p581_p2 }
  0x21   : > { %p577_p1 = pneg %p576_p10 }
  0x23   : > { %p584_p6 = pnand %p583_p0, %p577_p1 }
  0x25   : > { %587 = shalt.err (!%p584_p6)
}
  0x26   : > { %s720_s7 = smov 64   ;;  %s721_s8 = smov 4  }
  0x27   : > { %493 = dma.hbm_to_vmem [thread:$0]  (!%p805_p11), %s987_s1, 128, %s798_s22, [#allocation7], %s720_s7, %s720_s7, %s721_s8  }
  0x28   : > { %s588_s21 = scalar_lea.hbm %s988_s2, 256 }
  0x29   : > { %p589_p2 = scmp.ne.s32.totalorder %s988_s2, %s588_s21  ;;  %p595_p10 = scmp.lt.u32.totalorder %s588_s21, %s988_s2 }
  0x2b   : > { %p591_p1 = pnand %p589_p2, %p562_p13 }
  0x2d   : > { %p592_p6 = pneg %p591_p1 }
  0x2f   : > { %p597_p3 = pnand %p595_p10, %p592_p6 }
  0x31   : > { %600 = shalt.err (!%p597_p3)
}
  0x32   : > { %s601_s22 = scalar_lea.vmem %s809_s25, 256  ;;  %p609_p12 = scmp.lt.s32.totalorder %s809_s25, %s809_s25 }
  0x33   : > { %p602_p5 = scmp.ne.s32.totalorder %s809_s25, %s601_s22  ;;  %p610_p0 = scmp.lt.s32.totalorder %s601_s22, %s601_s22 }
  0x35   : > { %p604_p7 = pnand %p602_p5, %p562_p13  ;;  %p611_p2 = por %p610_p0, %p609_p12 }
  0x37   : > { %p605_p9 = pneg %p604_p7 }
  0x39   : > { %p612_p1 = pnand %p611_p2, %p605_p9 }
  0x3b   : > { %615 = shalt.err (!%p612_p1)
}
  0x3c   : > { %s722_s29 = smov 128   ;;  %s723_s30 = smov 8  }
  0x3d   : > { %496 = dma.hbm_to_vmem [thread:$0]  (!%p805_p11), %s988_s2, 256, %s809_s25, [#allocation7], %s722_s29, %s722_s29, %s723_s30  }
  0x3e   : > { %s864_s6 = sadd.s32 1, %s716_s15   ;;  %s27_s8 = sadd.s32 1, %s712_s14 }
  0x3f   : > { %s24_s7 = ssub.s32 %s716_s15, %s864_s6  ;;  %p34_p6 = scmp.ne.s32.totalorder %s712_s14, %s708_s13 }
  0x40   : > { %p25_p13 = scmp.eq.s32.totalorder %s24_s7, 0  ;;  %p35_p10 = scmp.eq.s32.totalorder %s716_s15, 0 }
  0x41   : > { %p997_p5 = scmp.eq.s32.totalorder %s775_s16, 1  ;;  %p507_p9 = scmp.lt.s32.totalorder %s716_s15, 2 }
  0x42   : > { %s873_s9 = scalar_select %p25_p13, %s712_s14, %s27_s8  }
  0x43   : > { %p36_p3 = por %p35_p10, %p34_p6  ;;  %p877_p7 = por %p997_p5, %p34_p6 }
  0x44   : > { %s158_s23 = sand.u32 1, %s712_s14   ;;  %s444_s25 = sshll.u32 %s716_s15, 5 }
  0x45   : > { %s998_s10 = scalar_select %p877_p7, 1, 0 }
  0x46   : > { %s443_s11 = sshll.u32 %s158_s23, 1  ;;  %s887_s24 = scalar_lea.hbm %s986_s0, %s444_s25 }
  0x47   : > { %s162_s26 = scalar_lea.vmem [#allocation3], %s443_s11  ;;  %p891_p11 = pnand %p507_p9, %p36_p3 }
  0x48   : > { %s169_s27 = sshll.u32 %s162_s26, 4  ;;  %s159_s22 = scalar_lea.sflag [#allocation4], %s158_s23  ;;  %s889_s27 = int_to_ptr.vmem [resolvable:$true] %s169_s27 }
  0x49   : > { %s616_s29 = scalar_lea.hbm %s887_s24, 32  ;;  %p618_p0 = pneg %p891_p11 }
  0x4a   : > { %p617_p12 = scmp.ne.s32.totalorder %s887_s24, %s616_s29  ;;  %s621_s5 = scalar_lea.hbm %s986_s0, 64 }
  0x4b   : > { %p622_p13 = scmp.lt.u32.totalorder %s887_s24, %s986_s0  ;;  %p623_p6 = scmp.lt.u32.totalorder %s621_s5, %s616_s29 }
  0x4c   : > { %p619_p2 = pnand %p618_p0, %p617_p12  ;;  %p625_p3 = scmp.lt.u32.totalorder %s616_s29, %s887_s24 }
  0x4d   : > { %p624_p10 = por %p623_p6, %p622_p13 }
  0x4e   : > { %p620_p1 = pneg %p619_p2 }
  0x4f   : > { %p626_p5 = por %p625_p3, %p624_p10 }
  0x51   : > { %p627_p9 = pnand %p626_p5, %p620_p1 }
  0x53   : > { %630 = shalt.err (!%p627_p9)
}
  0x54   : > { %s631_s23 = scalar_lea.vmem %s889_s27, 32  ;;  %s724_s11 = smov [#allocation3]  }
  0x55   : > { %p632_p12 = scmp.ne.s32.totalorder %s889_s27, %s631_s23  ;;  %s636_s25 = sshll.u32 %s724_s11, 4  ;;  %s637_s25 = int_to_ptr.vmem [resolvable:$false] %s636_s25 }
  0x56   : > { %s638_s17 = scalar_lea.vmem %s637_s25, 64  ;;  %p639_p4 = scmp.lt.s32.totalorder %s889_s27, %s637_s25 }
  0x57   : > { %p634_p2 = pnand %p632_p12, %p618_p0  ;;  %p640_p13 = scmp.lt.s32.totalorder %s638_s17, %s631_s23 }
  0x59   : > { %p635_p7 = pneg %p634_p2  ;;  %p641_p6 = por %p640_p13, %p639_p4 }
  0x5b   : > { %p642_p10 = pnand %p641_p6, %p635_p7 }
  0x5d   : > { %645 = shalt.err (!%p642_p10)
}
  0x5e   : > { %500 = dma.hbm_to_vmem [thread:$0]  (!%p891_p11), %s887_s24, 32, %s889_s27, %s159_s22  }
  0x5f   : > { %178 = sbr.rel (%p794_p8) target bundleno = 477 (0x1dd), region = 32  ;;  %s923_s21 = sand.u32 (!%p794_p8), 1, %s708_s13  }
  0x60   : > { %s446_s26 = sshll.u32 (!%p794_p8), %s923_s21, 1  ;;  %s181_s29 = scalar_lea.sflag (!%p794_p8), [#allocation4], %s923_s21 }
  0x61   : > { %s184_s30 = scalar_lea.vmem (!%p794_p8), [#allocation3], %s446_s26  ;;  %p1000_p4 = scmp.ne.s32.totalorder (!%p794_p8), %s993_s18, 0 }
  0x66   : > { %691 = dma.done.wait (%p1000_p4), %s181_s29, 32  }
  0x67   : > { %693 = vsyncadd (%p1000_p4), %s181_s29, 4294967264  ;;  %p1001_p7 = scmp.eq.s32.totalorder %s775_s16, 0 }
  0x69   : > { %695 = dma.done.wait (%p1001_p7), [#allocation7], 384   ;;  %p1002_p11 = pmov %p1001_p7 }
  0x6a   : > { %v725_v0 = vmov 0   ;;  %v216_v1 = vld [vmem:[%s184_s30] sm:$0x3]  ;;  %v726_v2 = vmov 0.0   ;;  %s727_s18 = smov 127   ;;  %s728_s20 = smov 120   ;;  %v218_v6 = vlaneseq }
  0x6b   : > { %697 = vsyncadd (%p1002_p11), [#allocation7], 4294966912  ;;  %221 = vst [vmem:[#allocation2] sm:$0xc] %v725_v0  ;;  %557 = vset.pattern.permute.xlu1 %v725_v0  ;;  %558 = vset.pattern.permute.xlu0 %v725_v0  ;;  %v217_v3 = vunpack.c.l.bf16 %v216_v1  ;;  %s729_s24 = smov 119   ;;  %vm730_vm0 = vmmov 0  }
  0x6c   : > { %222 = vst [vmem:[#allocation2] sm:$0xc0] %v725_v0  ;;  %223 = vst [vmem:[#allocation2 + $0x8] sm:$0xc] %v725_v0  ;;  %470 = vmatprep.subr.bf16.mxu0 %v726_v2  ;;  %474 = vmatprep.mubr.msk.bf16.mxu0 %vm730_vm0, %v726_v2  ;;  %v260_v4 = vld [vmem:[#allocation8] sm:$0xff]  ;;  %v261_v5 = vld [vmem:[#allocation8 + $0x8] sm:$0xff] }
  0x6d   : > { %224 = vst [vmem:[#allocation2 + $0x8] sm:$0xc0] %v725_v0  ;;  %225 = vst [vmem:[#allocation2] sm:$0x3] %v216_v1  ;;  %226 = vrot.lane.b32.xlu0 %v217_v3, %s727_s18  ;;  %237 = vrot.lane.b32.xlu1 %v217_v3, %s728_s20  ;;  %v219_v7 = vand.u32 127, %v218_v6  ;;  %v559_v22 = vld [vmem:[#allocation6] sm:$0xff]  }
  0x6e   : > { %vm277_vm4 = vcmask 261120   ;;  %s449_s27 = sshll.u32 %s923_s21, 3  ;;  %s461_s4 = sshll.u32 %s775_s16, 7 }
  0x6f   : > { %v220_v8 = vand.u32 7, %v219_v7  ;;  %vm239_vm2 = vcmp.lt.s32.totalorder %v219_v7, 56  ;;  %s214_s28 = scalar_lea.vmem [#allocation9], %s449_s27  ;;  %s942_s8 = scalar_lea.hbm %s989_s3, %s461_s4 }
  0x70   : > { %s346_s22 = sshll.u32 %s214_s28, 4  ;;  %s333_s23 = scalar_lea.sflag [#allocation5], %s923_s21  ;;  %s937_s22 = int_to_ptr.vmem [resolvable:$true] %s346_s22 }
  0x71   : > { %245 = vrot.lane.b32.xlu0 %v217_v3, %s729_s24  ;;  %264 = vperm.xlu1 %557, %v260_v4   ;;  %vm228_vm1 = vcmp.lt.s32.totalorder %v220_v8, 7  ;;  %s646_s11 = scalar_lea.vmem %s937_s22, 128  ;;  %p1003_p0 = scmp.ne.s32.totalorder %s998_s10, 0 }
  0x72   : > { %vm247_vm3 = vmand %vm239_vm2, %vm228_vm1  ;;  %p647_p8 = scmp.ne.s32.totalorder %s937_s22, %s646_s11  ;;  %s731_s16 = smov [#allocation9]  }
  0x73   : > { %s650_s25 = sshll.u32 %s731_s16, 4  ;;  %s651_s25 = int_to_ptr.vmem [resolvable:$false] %s650_s25 }
  0x74   : > { %p648_p1 = pnand %p647_p8, %p1003_p0  ;;  %s652_s17 = scalar_lea.vmem %s651_s25, 256 }
  0x75   : > { %269 = vperm.xlu0 %558, %v261_v5   ;;  %p653_p5 = scmp.lt.s32.totalorder %s937_s22, %s651_s25  ;;  %p654_p9 = scmp.lt.s32.totalorder %s652_s17, %s646_s11 }
  0x76   : > { %p649_p3 = pneg %p648_p1 }
  0x77   : > { %p655_p12 = por %p654_p9, %p653_p5 }
  0x79   : > { %p656_p2 = pnand %p655_p12, %p649_p3 }
  0xdf   : > { %v227_v9 = vpop.permute.xlu0 %226  ;;  %v238_v10 = vpop.permute.xlu1 %237 }
  0xe0   : > { %v231_v11 = vsel %vm228_vm1, %v227_v9, 0.0  ;;  %v242_v12 = vsel %vm239_vm2, %v238_v10, 0.0 }
  0xe1   : > { %v232_v13 = vpack.c.bf16 %v231_v11, %v231_v11  ;;  %v243_v14 = vpack.c.bf16 %v242_v12, %v242_v12 }
  0xe3   : > { %v234_v15 = vrot.slane %v232_v13, 4  ;;  %v246_v16 = vpop.permute.xlu0 %245  ;;  %244 = vst [vmem:[#allocation2 + $0x8] sm:$0x3] %v243_v14 }
  0xe4   : > { %v250_v17 = vsel %vm247_vm3, %v246_v16, 0.0 }
  0xe5   : > { %236 = vst [vmem:[#allocation2] sm:$0x30] %v234_v15  ;;  %v251_v18 = vpack.c.bf16 %v250_v17, %v250_v17 }
  0xe7   : > { %v253_v19 = vrot.slane %v251_v18, 4 }
  0xe9   : > { %255 = vst [vmem:[#allocation2 + $0x8] sm:$0x30] %v253_v19 }
  0xec   : > { %v258_v20 = vld [vmem:[#allocation2] sm:$0xff] }
  0xed   : > { %471 = vmatpush3.bf16.msra.mxu0 %v258_v20 }
  0xee   : > { %472 = vmatprep.subr.bf16.mxu0 %v726_v2 }
  0xf0   : > { %v259_v21 = vld [vmem:[#allocation2 + $0x8] sm:$0xff]  ;;  %v265_v23 = vpop.permute.xlu1 %264 }
  0xf1   : > { %473 = vmatpush3.bf16.msra.mxu0 %v259_v21 }
  0xf4   : > { %475 = vmatmul.mubr.msk.bf16.vlgmr.msra.gmra.mrb[0].mxu0 %vm277_vm4, %v559_v22  ;;  %v270_v25 = vpop.permute.xlu0 %269 }
 0x1c7   : > { %v315_v24 = vpop.f32.mrb[0].mxu0 }
 0x1c8   : > { %v476_v26 = vpop.f32.mrb[1].mxu0  ;;  %v316_v28 = vadd.f32 %v315_v24, %v265_v23 }
 0x1c9   : > { %v318_v27 = vpop.f32.mrb[2].mxu0 }
 0x1ca   : > { %v319_v29 = vadd.f32 %v318_v27, %v270_v25  ;;  %v477_v30 = vpop.f32.mrb[3].mxu0 }
 0x1cc   : > { %v465_v31 = vpack.c.bf16 %v319_v29, %v316_v28 }
 0x1ce   : > { %466 = vst [vmem:[%s214_s28] sm:$0xff] %v465_v31  }
 0x1cf   : > { %659 = shalt.err (!%p656_p2)
}
 0x1d0   : > { %s660_s26 = scalar_lea.hbm %s942_s8, 128  ;;  %s664_s18 = scalar_lea.hbm %s989_s3, 256 }
 0x1d1   : > { %p661_p13 = scmp.ne.s32.totalorder %s942_s8, %s660_s26  ;;  %p665_p4 = scmp.lt.u32.totalorder %s942_s8, %s989_s3 }
 0x1d2   : > { %p666_p7 = scmp.lt.u32.totalorder %s664_s18, %s660_s26  ;;  %p668_p8 = scmp.lt.u32.totalorder %s660_s26, %s942_s8 }
 0x1d3   : > { %p662_p6 = pnand %p661_p13, %p1003_p0 }
 0x1d4   : > { %p667_p11 = por %p666_p7, %p665_p4 }
 0x1d5   : > { %p663_p10 = pneg %p662_p6 }
 0x1d6   : > { %p669_p1 = por %p668_p8, %p667_p11 }
 0x1d8   : > { %p670_p3 = pnand %p669_p1, %p663_p10 }
 0x1da   : > { %673 = shalt.err (!%p670_p3)
}
 0x1db   : > { %s732_s27 = smov 64   ;;  %s733_s28 = smov 4  }
 0x1dc   : > { %488 = dma.vmem_to_hbm [thread:$0]  (%p1003_p0), %s937_s22, 128, %s942_s8, %s333_s23, %s732_s27, %s732_s27, %s733_s28  }
 0x1dd PF: > { %s361_s4 = sand.u32 1, %s704_s12   ;;  %p1004_p5 = scmp.ne.s32.totalorder %s994_s19, 0 }
 0x1de   : > { %p1005_p9 = scmp.ge.s32.totalorder %s716_s15, 2  ;;  %s362_s5 = scalar_lea.sflag [#allocation5], %s361_s4 }
 0x1e0   : > { %p502_p12 = pnand %p1005_p9, %p1004_p5 }
 0x1e2   : > { %699 = dma.done.wait (!%p502_p12), %s362_s5, 128  }
 0x1e3   : > { %701 = vsyncadd (!%p502_p12), %s362_s5, 4294967168  ;;  %p17_p2 = scmp.ge.s32.totalorder %s864_s6, 4   ;;  %s1006_s12 = smov %s708_s13 }
 0x1e4   : > { %s1007_s13 = smov %s712_s14  ;;  %s1008_s14 = smov %s873_s9 }
 0x1e5   : > { %s1009_s15 = smov %s864_s6  ;;  %19 = sbr.rel (!%p17_p2) target bundleno = 6 (0x6), region = 85 }
 0x1ec   :  { %367 = vsyncpa [#allocation4], 1 }
 0x1ed   :  { %369 = vsyncpa [#allocation4 + $0x1], 1 }
 0x1ee   :  { %370 = vsyncpa [#allocation7], 1 }
 0x1ef   :  { %371 = vsyncpa [#allocation5], 1 }
 0x1f0   :  { %373 = vsyncpa [#allocation5 + $0x1], 1 }

// kernel: last_block_forward.8
= control target key start
LH: loop header
LB: loop body
LE: loop exit
PB: predicated region body
PF: predicated region fallthrough
CT: control target
= control target key end

     0   :  { %s1720_s0 = inlined_call_operand.hbm [shape: bf16[2,4,256], index: 0, kind: input, shape index: {}]   ;;  %s1721_s1 = inlined_call_operand.hbm [shape: bf16[2,4,256], index: 1, kind: input, shape index: {}]   ;;  %s1722_s2 = inlined_call_operand.hbm [shape: bf16[4,72], index: 2, kind: input, shape index: {}]   ;;  %s1723_s3 = inlined_call_operand.hbm [shape: f32[4,1], index: 3, kind: input, shape index: {}]   ;;  %s1724_s4 = inlined_call_operand.hbm [shape: bf16[2,4,256], index: 4, kind: output, shape index: {0}]   ;;  %s1725_s5 = inlined_call_operand.hbm [shape: f32[2,4,1], index: 5, kind: output, shape index: {1}]  }
   0x1   :  { %1730 = sst [smem:[#allocation20_spill]] %s1722_s2 }
   0x2   :  { %1731 = sst [smem:[#allocation21_spill]] %s1723_s3 }
   0x3   :  { %11 = vsyncpa [#allocation4], 0 }
   0x4   :  { %13 = vsyncpa [#allocation4 + $0x1], 0 }
   0x5   :  { %14 = vsyncpa [#allocation7], 0 }
   0x6   :  { %16 = vsyncpa [#allocation7 + $0x1], 0 }
   0x7   :  { %17 = vsyncpa [#allocation10], 0 }
   0x8   :  { %18 = vsyncpa [#allocation5], 0 }
   0x9   :  { %20 = vsyncpa [#allocation5 + $0x1], 0 }
   0xa   :  { %21 = vsyncpa [#allocation13], 0  ;;  %s1314_s18 = smov 0   ;;  %s1316_s19 = smov 0  }
   0xb   :  { %s1318_s20 = smov 0   ;;  %s1320_s21 = smov 0  }
   0xc LB: > { %s1335_s22 = sadd.s32 4294967295, %s1264_s21   ;;  %s834_s23 = sadd.s32 4294967294, %s1264_s21   ;;  %s1264_s21 = sphi %s1320_s21, %s1772_s21   ;;  %s1260_s20 = sphi %s1318_s20, %s1771_s20   ;;  %s1256_s19 = sphi %s1316_s19, %s1770_s19   ;;  %s1252_s18 = sphi %s1314_s18, %s1769_s18  }
   0xd   : > { %p47_p0 = scmp.ne.s32.totalorder %s1256_s19, %s1252_s18  ;;  %p1726_p1 = scmp.eq.s32.totalorder %s1335_s22, 0 }
   0xe   : > { %p145_p3 = scmp.eq.s32.totalorder %s834_s23, 1  ;;  %p835_p5 = scmp.ge.s32.totalorder %s1264_s21, 1 }
   0xf   : > { %p1344_p4 = por %p1726_p1, %p47_p0  ;;  %p173_p7 = scmp.lt.s32.totalorder %s1264_s21, 3 }
  0x10   : > { %p1349_p6 = por %p145_p3, %p47_p0  ;;  %s1266_s27 = smov [#allocation8]  }
  0x11   : > { %s1732_s24 = scalar_select %p1344_p4, 1, 0 }
  0x12   : > { %s1733_s25 = scalar_select %p1349_p6, 1, 0 }
  0x13   : > { %p1355_p9 = pnand %p835_p5, %p173_p7  ;;  %s186_s28 = sshll.u32 %s1266_s27, 4  ;;  %s187_s28 = int_to_ptr.vmem [resolvable:$true] %s186_s28 }
  0x14   : > { %s1267_s29 = smov [#allocation9]   ;;  %s1371_s7 = sadd.s32 1, %s1264_s21  }
  0x15   : > { %s1734_s26 = scalar_select %p1355_p9, 1, 0 }
  0x16   : > { %p912_p11 = pneg %p1355_p9  ;;  %s197_s30 = sshll.u32 %s1267_s29, 4  ;;  %s1368_s30 = int_to_ptr.vmem [resolvable:$true] %s197_s30 }
  0x17   : > { %s31_s8 = ssub.s32 %s1264_s21, %s1371_s7  ;;  %s1736_s2 = sld [smem:[#allocation20_spill]] }
  0x18   : > { %p1364_p12 = pnand %p912_p11, %p1726_p1 }
  0x1a   : > { %p1042_p0 = pneg %p1364_p12 }
  0x1d   : > { %s1040_s11 = scalar_lea.hbm %s1736_s2, 32 }
  0x1e   : > { %p1041_p13 = scmp.ne.s32.totalorder %s1736_s2, %s1040_s11  ;;  %p1047_p7 = scmp.lt.u32.totalorder %s1040_s11, %s1736_s2 }
  0x20   : > { %p1043_p3 = pnand %p1042_p0, %p1041_p13 }
  0x22   : > { %p1044_p5 = pneg %p1043_p3 }
  0x24   : > { %p1049_p11 = pnand %p1047_p7, %p1044_p5 }
  0x26   : > { %1052 = shalt.err (!%p1049_p11)
}
  0x27   : > { %s1053_s16 = scalar_lea.vmem %s187_s28, 32  ;;  %p1061_p2 = scmp.lt.s32.totalorder %s187_s28, %s187_s28 }
  0x28   : > { %p1054_p10 = scmp.ne.s32.totalorder %s187_s28, %s1053_s16  ;;  %p1062_p6 = scmp.lt.s32.totalorder %s1053_s16, %s1053_s16 }
  0x2a   : > { %p1056_p8 = pnand %p1054_p10, %p1042_p0  ;;  %p1063_p4 = por %p1062_p6, %p1061_p2 }
  0x2c   : > { %p1057_p1 = pneg %p1056_p8 }
  0x2e   : > { %p1064_p9 = pnand %p1063_p4, %p1057_p1 }
  0x30   : > { %1067 = shalt.err (!%p1064_p9)
}
  0x31   : > { %915 = dma.hbm_to_vmem [thread:$0]  (!%p1364_p12), %s1736_s2, 32, %s187_s28, [#allocation7]  }
  0x32   : > { %s1737_s3 = sld [smem:[#allocation21_spill]] }
  0x38   : > { %s1068_s9 = scalar_lea.hbm %s1737_s3, 64 }
  0x39   : > { %p1069_p8 = scmp.ne.s32.totalorder %s1737_s3, %s1068_s9  ;;  %p1075_p4 = scmp.lt.u32.totalorder %s1068_s9, %s1737_s3 }
  0x3b   : > { %p1071_p2 = pnand %p1069_p8, %p1042_p0 }
  0x3d   : > { %p1072_p1 = pneg %p1071_p2 }
  0x3f   : > { %p1077_p6 = pnand %p1075_p4, %p1072_p1 }
  0x41   : > { %1080 = shalt.err (!%p1077_p6)
}
  0x42   : > { %s1081_s28 = scalar_lea.vmem %s1368_s30, 64  ;;  %p1089_p3 = scmp.lt.s32.totalorder %s1368_s30, %s1368_s30 }
  0x43   : > { %p1082_p9 = scmp.ne.s32.totalorder %s1368_s30, %s1081_s28  ;;  %p1090_p5 = scmp.lt.s32.totalorder %s1081_s28, %s1081_s28 }
  0x45   : > { %p1084_p10 = pnand %p1082_p9, %p1042_p0  ;;  %p1091_p7 = por %p1090_p5, %p1089_p3 }
  0x47   : > { %p1085_p13 = pneg %p1084_p10 }
  0x49   : > { %p1092_p11 = pnand %p1091_p7, %p1085_p13 }
  0x4b   : > { %1095 = shalt.err (!%p1092_p11)
}
  0x4c   : > { %918 = dma.hbm_to_vmem [thread:$0]  (!%p1364_p12), %s1737_s3, 64, %s1368_s30, [#allocation10]  }
  0x4d   : > { %p32_p0 = scmp.eq.s32.totalorder %s31_s8, 0  ;;  %s34_s16 = sadd.s32 1, %s1260_s20 }
  0x4e   : > { %p41_p8 = scmp.ne.s32.totalorder %s1260_s20, %s1256_s19  ;;  %p42_p2 = scmp.eq.s32.totalorder %s1264_s21, 0 }
  0x4f   : > { %s1430_s6 = scalar_select %p32_p0, %s1260_s20, %s34_s16  }
  0x50   : > { %p43_p1 = por %p42_p2, %p41_p8  ;;  %p1738_p4 = scmp.eq.s32.totalorder %s1335_s22, 1 }
  0x51   : > { %p932_p9 = scmp.lt.s32.totalorder %s1264_s21, 2  ;;  %s208_s23 = sand.u32 1, %s1260_s20  }
  0x52   : > { %p1434_p6 = por %p1738_p4, %p41_p8  ;;  %s1440_s27 = sshll.u32 %s208_s23, 2 }
  0x53   : > { %s882_s30 = sshll.u32 %s1264_s21, 6  ;;  %s212_s10 = scalar_lea.vmem [#allocation3], %s1440_s27 }
  0x54   : > { %s1739_s17 = scalar_select %p1434_p6, 1, 0 }
  0x55   : > { %s1446_s9 = scalar_lea.hbm %s1720_s0, %s882_s30  ;;  %s220_s11 = sshll.u32 %s212_s10, 4  ;;  %s1449_s11 = int_to_ptr.vmem [resolvable:$true] %s220_s11 }
  0x56   : > { %p1451_p12 = pnand %p932_p9, %p43_p1  ;;  %s1458_s14 = scalar_lea.hbm %s1721_s1, %s882_s30 }
  0x57   : > { %s227_s15 = sand.u32 1, %s1264_s21   ;;  %s209_s16 = scalar_lea.sflag [#allocation4], %s208_s23 }
  0x58   : > { %s1096_s29 = scalar_lea.hbm %s1446_s9, 64  ;;  %p1098_p13 = pneg %p1451_p12 }
  0x59   : > { %p1097_p10 = scmp.ne.s32.totalorder %s1446_s9, %s1096_s29  ;;  %s1101_s2 = scalar_lea.hbm %s1720_s0, 128 }
  0x5a   : > { %p1102_p7 = scmp.lt.u32.totalorder %s1446_s9, %s1720_s0  ;;  %p1103_p11 = scmp.lt.u32.totalorder %s1101_s2, %s1096_s29 }
  0x5b   : > { %p1099_p3 = pnand %p1098_p13, %p1097_p10  ;;  %p1105_p8 = scmp.lt.u32.totalorder %s1096_s29, %s1446_s9 }
  0x5c   : > { %p1104_p0 = por %p1103_p11, %p1102_p7 }
  0x5d   : > { %p1100_p5 = pneg %p1099_p3 }
  0x5e   : > { %p1106_p2 = por %p1105_p8, %p1104_p0 }
  0x60   : > { %p1107_p1 = pnand %p1106_p2, %p1100_p5 }
  0x62   : > { %1110 = shalt.err (!%p1107_p1)
}
  0x63   : > { %s1111_s23 = scalar_lea.vmem %s1449_s11, 64  ;;  %s1268_s30 = smov [#allocation3]  }
  0x64   : > { %p1112_p4 = scmp.ne.s32.totalorder %s1449_s11, %s1111_s23  ;;  %s1116_s28 = sshll.u32 %s1268_s30, 4  ;;  %s1117_s28 = int_to_ptr.vmem [resolvable:$false] %s1116_s28 }
  0x65   : > { %s1118_s3 = scalar_lea.vmem %s1117_s28, 128  ;;  %p1119_p3 = scmp.lt.s32.totalorder %s1449_s11, %s1117_s28 }
  0x66   : > { %p1114_p9 = pnand %p1112_p4, %p1098_p13  ;;  %p1120_p7 = scmp.lt.s32.totalorder %s1118_s3, %s1111_s23 }
  0x68   : > { %p1115_p10 = pneg %p1114_p9  ;;  %p1121_p11 = por %p1120_p7, %p1119_p3 }
  0x6a   : > { %p1122_p0 = pnand %p1121_p11, %p1115_p10 }
  0x6c   : > { %1125 = shalt.err (!%p1122_p0)
}
  0x6d   : > { %922 = dma.hbm_to_vmem [thread:$0]  (!%p1451_p12), %s1446_s9, 64, %s1449_s11, %s209_s16  }
  0x6e   : > { %s231_s2 = scalar_lea.vmem [#allocation6], %s1440_s27  ;;  %s228_s8 = scalar_lea.sflag [#allocation7], %s227_s15 }
  0x6f   : > { %s239_s29 = sshll.u32 %s231_s2, 4  ;;  %s1126_s10 = scalar_lea.hbm %s1458_s14, 64  ;;  %s240_s29 = int_to_ptr.vmem [resolvable:$true] %s239_s29 }
  0x70   : > { %p1127_p5 = scmp.ne.s32.totalorder %s1458_s14, %s1126_s10  ;;  %s1131_s30 = scalar_lea.hbm %s1721_s1, 128 }
  0x71   : > { %p1132_p1 = scmp.lt.u32.totalorder %s1458_s14, %s1721_s1  ;;  %p1133_p4 = scmp.lt.u32.totalorder %s1131_s30, %s1126_s10 }
  0x72   : > { %p1129_p8 = pnand %p1127_p5, %p1098_p13  ;;  %p1135_p10 = scmp.lt.u32.totalorder %s1126_s10, %s1458_s14 }
  0x73   : > { %p1134_p9 = por %p1133_p4, %p1132_p1 }
  0x74   : > { %p1130_p2 = pneg %p1129_p8 }
  0x75   : > { %p1136_p3 = por %p1135_p10, %p1134_p9 }
  0x77   : > { %p1137_p7 = pnand %p1136_p3, %p1130_p2 }
  0x79   : > { %1140 = shalt.err (!%p1137_p7)
}
  0x7a   : > { %s1141_s27 = scalar_lea.vmem %s240_s29, 64  ;;  %s1269_s9 = smov [#allocation6]  }
  0x7b   : > { %p1142_p11 = scmp.ne.s32.totalorder %s240_s29, %s1141_s27  ;;  %s1146_s11 = sshll.u32 %s1269_s9, 4  ;;  %s1147_s11 = int_to_ptr.vmem [resolvable:$false] %s1146_s11 }
  0x7c   : > { %s1148_s15 = scalar_lea.vmem %s1147_s11, 128  ;;  %p1149_p8 = scmp.lt.s32.totalorder %s240_s29, %s1147_s11 }
  0x7d   : > { %p1144_p0 = pnand %p1142_p11, %p1098_p13  ;;  %p1150_p6 = scmp.lt.s32.totalorder %s1148_s15, %s1141_s27 }
  0x7f   : > { %p1145_p5 = pneg %p1144_p0  ;;  %p1151_p1 = por %p1150_p6, %p1149_p8 }
  0x81   : > { %p1152_p4 = pnand %p1151_p1, %p1145_p5 }
  0x83   : > { %1155 = shalt.err (!%p1152_p4)
}
  0x84   : > { %925 = dma.hbm_to_vmem [thread:$0]  (!%p1451_p12), %s1458_s14, 64, %s240_s29, %s228_s8  }
  0x85   : > { %p1741_p2 = scmp.ne.s32.totalorder %s1734_s26, 0 }
  0x86   : > { %s1511_s16 = sand.u32 (!%p1741_p2), 1, %s1256_s19   ;;  %p1742_p6 = scmp.ne.s32.totalorder (!%p1741_p2), %s1732_s24, 0 }
  0x87   : > { %248 = sbr.rel (%p1741_p2) target bundleno = 705 (0x2c1), region = 36  ;;  %s1514_s2 = sshll.u32 (!%p1741_p2), %s1511_s16, 2 }
  0x88   : > { %s251_s10 = scalar_lea.sflag (!%p1741_p2), [#allocation4], %s1511_s16  ;;  %s254_s13 = scalar_lea.vmem (!%p1741_p2), [#allocation3], %s1514_s2 }
  0x8e   : > { %1227 = dma.done.wait (%p1742_p6), %s251_s10, 64  }
  0x8f   : > { %1229 = vsyncadd (%p1742_p6), %s251_s10, 4294967232  ;;  %s259_s26 = sand.u32 1, %s1335_s22   ;;  %s263_s14 = scalar_lea.vmem [#allocation6], %s1514_s2 }
  0x90   : > { %s260_s12 = scalar_lea.sflag [#allocation7], %s259_s26 }
  0x91   : > { %1231 = dma.done.wait (%p1742_p6), %s260_s12, 64  }
  0x92   : > { %1233 = vsyncadd (%p1742_p6), %s260_s12, 4294967232  ;;  %p1743_p12 = scmp.eq.s32.totalorder %s1335_s22, 0 }
  0x94   : > { %1235 = dma.done.wait (%p1743_p12), [#allocation7], 32   ;;  %p1744_p13 = pmov %p1743_p12 }
  0x95   : > { %p1745_p9 = pmov %p1743_p12 }
  0x96   : > { %1237 = vsyncadd (%p1744_p13), [#allocation7], 4294967264 }
  0x97   : > { %1239 = dma.done.wait (%p1745_p9), [#allocation10], 64   ;;  %p1746_p10 = pmov %p1745_p9 }
  0x98   : > { %v304_v0 = vld [vmem:[%s254_s13] sm:$0xf]  ;;  %v306_v1 = vld [vmem:[%s263_s14] sm:$0xf]  ;;  %v1270_v5 = vmov 0   ;;  %s1271_s24 = smov 15   ;;  %v309_v10 = vlaneseq }
  0x99   : > { %1241 = vsyncadd (%p1746_p10), [#allocation10], 4294967232  ;;  %v305_v2 = vunpack.c.l.bf16 %v304_v0  ;;  %v307_v3 = vunpack.c.l.bf16 %v306_v1  ;;  %314 = vst [vmem:[#allocation2] sm:$0xcc] %v1270_v5  ;;  %631 = vmatprep.mubr.bf16.mxu0 %v1270_v5  ;;  %1025 = vset.pattern.permute.xlu0 %v1270_v5  ;;  %s1272_s29 = smov 17   ;;  %s1273_s8 = smov 1  }
  0x9a   : > { %315 = vst [vmem:[#allocation2 + $0x8] sm:$0xcc] %v1270_v5  ;;  %316 = vst [vmem:[#allocation2 + $0x10] sm:$0xcc] %v1270_v5  ;;  %s1274_s23 = smov 16   ;;  %s1275_s30 = smov 127  }
  0x9b   : > { %v308_v4 = vadd.f32 %v307_v3, %v305_v2  ;;  %317 = vst [vmem:[#allocation2 + $0x18] sm:$0xcc] %v1270_v5  ;;  %318 = vst [vmem:[#allocation2 + $0x20] sm:$0xcc] %v1270_v5  ;;  %s1276_s28 = smov 113   ;;  %s1277_s3 = smov 112  }
  0x9c   : > { %319 = vst [vmem:[#allocation2 + $0x28] sm:$0xcc] %v1270_v5  ;;  %320 = vst [vmem:[#allocation2 + $0x30] sm:$0xcc] %v1270_v5  ;;  %s1278_s27 = smov 111   ;;  %v1536_v11 = vand.u32 127, %v309_v10 }
  0x9d   : > { %321 = vst [vmem:[#allocation2 + $0x38] sm:$0xcc] %v1270_v5  ;;  %322 = vst [vmem:[#allocation2 + $0x40] sm:$0xcc] %v1270_v5  ;;  %v324_v6 = vcombine.high %v308_v4, %v308_v4  ;;  %v537_v9 = vld [vmem:[#allocation9] sm:$0xf] }
  0x9e   : > { %v1539_v12 = vadd.s32 128, %v1536_v11  ;;  %v312_v13 = vand.u32 15, %v1536_v11  ;;  %vm333_vm1 = vcmp.ge.s32.totalorder %v1536_v11, 16  ;;  %vm380_vm3 = vcmp.lt.s32.totalorder %v1536_v11, 15  ;;  %s300_s9 = scalar_lea.vmem [#allocation11], %s1514_s2  ;;  %p1761_p3 = scmp.ne.s32.totalorder %s1335_s22, 0 }
  0x9f   : > { %v995_v7 = vpack.i.bf16 %v324_v6, %v308_v4  ;;  %v888_v8 = vpack.c.bf16 %v324_v6, %v308_v4  ;;  %vm330_vm6 = vcmp.lt.s32.totalorder %v1536_v11, 17  ;;  %vm406_vm9 = vcmp.lt.s32.totalorder %v1536_v11, 1 }
  0xa0   : > { %v313_v14 = vand.u32 15, %v1539_v12  ;;  %vm1543_vm0 = vcmp.lt.s32.totalorder %v312_v13, 15  ;;  %vm1548_vm2 = vcmp.ge.s32.totalorder %v312_v13, 1  ;;  %vm358_vm10 = vcmp.lt.s32.totalorder %v1536_v11, 16 }
  0xa1   : > { %996 = vrot.lane.b32.xlu1 %v995_v7, %s1271_s24  ;;  %986 = vrot.lane.b32.xlu0 %v995_v7, %s1272_s29  ;;  %432 = vst [vmem:[#allocation2 + $0x20] sm:$0x33] %v888_v8  ;;  %vm1561_vm5 = vmand %vm333_vm1, %vm1543_vm0  ;;  %vm437_vm11 = vcmp.lt.s32.totalorder %v1536_v11, 127  ;;  %vm459_vm12 = vcmp.lt.s32.totalorder %v1536_v11, 113  ;;  %vm463_vm13 = vcmp.lt.s32.totalorder %v1539_v12, 240  ;;  %vm485_vm15 = vcmp.lt.s32.totalorder %v1536_v11, 112 }
  0xa2   : > { %vm1553_vm4 = vcmp.lt.s32.totalorder %v313_v14, 15  ;;  %vm1566_vm7 = vcmp.ge.s32.totalorder %v313_v14, 1  ;;  %vm1574_vm8 = vmand %vm333_vm1, %vm1548_vm2 }
  0xa3   : > { %vm1609_vm14 = vmand %vm463_vm13, %vm1566_vm7 }
  0xa5   : > { %1001 = vrot.lane.b32.xlu1 %v995_v7, %s1273_s8  ;;  %991 = vrot.lane.b32.xlu0 %v995_v7, %s1274_s23 }
  0xa9   : > { %1006 = vrot.lane.b32.xlu0 %v995_v7, %s1275_s30  ;;  %1011 = vrot.lane.b32.xlu1 %v995_v7, %s1276_s28 }
  0xad   : > { %1016 = vrot.lane.b32.xlu0 %v995_v7, %s1277_s3  ;;  %1021 = vrot.lane.b32.xlu1 %v995_v7, %s1278_s27 }
  0xb1   : > { %540 = vperm.xlu0 %1025, %v537_v9  }
 0x113   : > { %v997_v19 = vpop.permute.xlu1 %996  ;;  %v987_v21 = vpop.permute.xlu0 %986 }
 0x114   : > { %v999_v22 = vunpack.i.h.bf16 %v997_v19  ;;  %v998_v23 = vunpack.i.l.bf16 %v997_v19  ;;  %v989_v25 = vunpack.i.h.bf16 %v987_v21  ;;  %v988_v26 = vunpack.i.l.bf16 %v987_v21 }
 0x116   : > { %v381_v27 = vsel %vm380_vm3, %v998_v23, %v999_v22  ;;  %v382_v28 = vsel %vm380_vm3, %v999_v22, %v998_v23  ;;  %v331_v29 = vsel %vm330_vm6, %v988_v26, %v989_v25  ;;  %v332_v30 = vsel %vm330_vm6, %v989_v25, %v988_v26  ;;  %vm511_vm3 = vmand %vm463_vm13, %vm1553_vm4 }
 0x117   : > { %v391_v31 = vsel %vm1561_vm5, %v382_v28, 0.0  ;;  %v392_v32 = vsel %vm1553_vm4, %v381_v27, 0.0  ;;  %v343_v33 = vsel %vm1574_vm8, %v332_v30, 0.0  ;;  %v344_v34 = vsel %vm1566_vm7, %v331_v29, 0.0  ;;  %v1002_v35 = vpop.permute.xlu1 %1001  ;;  %v992_v36 = vpop.permute.xlu0 %991 }
 0x118   : > { %v886_v37 = vpack.c.bf16 %v392_v32, %v391_v31  ;;  %v884_v38 = vpack.c.bf16 %v344_v34, %v343_v33  ;;  %v1004_v39 = vunpack.i.h.bf16 %v1002_v35  ;;  %v1003_v40 = vunpack.i.l.bf16 %v1002_v35  ;;  %v527_v32 = vld [vmem:[#allocation8] sm:$0x3] }
 0x119   : > { %v994_v41 = vunpack.i.h.bf16 %v992_v36  ;;  %v993_v42 = vunpack.i.l.bf16 %v992_v36 }
 0x11a   : > { %401 = vst [vmem:[#allocation2 + $0x10] sm:$0x33] %v886_v37  ;;  %353 = vst [vmem:[#allocation2] sm:$0x33] %v884_v38  ;;  %v407_v43 = vsel %vm406_vm9, %v1003_v40, %v1004_v39  ;;  %v408_v44 = vsel %vm406_vm9, %v1004_v39, %v1003_v40 }
 0x11b   : > { %v413_v45 = vsel %vm1548_vm2, %v408_v44, 0.0  ;;  %v414_v46 = vsel %vm1566_vm7, %v407_v43, 0.0  ;;  %v359_v47 = vsel %vm358_vm10, %v993_v42, %v994_v41  ;;  %v360_v48 = vsel %vm358_vm10, %v994_v41, %v993_v42  ;;  %v1007_v49 = vpop.permute.xlu0 %1006  ;;  %v1012_v50 = vpop.permute.xlu1 %1011 }
 0x11c   : > { %v887_v51 = vpack.c.bf16 %v414_v46, %v413_v45  ;;  %v365_v52 = vsel %vm333_vm1, %v360_v48, 0.0  ;;  %v1009_v53 = vunpack.i.h.bf16 %v1007_v49  ;;  %v1008_v54 = vunpack.i.l.bf16 %v1007_v49 }
 0x11d   : > { %v885_v55 = vpack.c.bf16 %v359_v47, %v365_v52  ;;  %v1014_v57 = vunpack.i.h.bf16 %v1012_v50  ;;  %v1013_v58 = vunpack.i.l.bf16 %v1012_v50  ;;  %vm507_vm1 = vcmp.lt.s32.totalorder %v1536_v11, 111 }
 0x11e   : > { %423 = vst [vmem:[#allocation2 + $0x18] sm:$0x33] %v887_v51  ;;  %v438_v59 = vsel %vm437_vm11, %v1008_v54, %v1009_v53  ;;  %v439_v60 = vsel %vm437_vm11, %v1009_v53, %v1008_v54  ;;  %v1279_v43 = vmov (!%p1761_p3), 0.0  }
 0x11f   : > { %375 = vst [vmem:[#allocation2 + $0x8] sm:$0x33] %v885_v55  ;;  %v444_v61 = vsel %vm1543_vm0, %v438_v59, 0.0  ;;  %v445_v62 = vsel %vm1553_vm4, %v439_v60, 0.0  ;;  %v460_v63 = vsel %vm459_vm12, %v1013_v58, %v1014_v57  ;;  %v461_v0 = vsel %vm459_vm12, %v1014_v57, %v1013_v58  ;;  %v1017_v1 = vpop.permute.xlu0 %1016  ;;  %v1022_v2 = vpop.permute.xlu1 %1021 }
 0x120   : > { %v889_v3 = vpack.c.bf16 %v445_v62, %v444_v61  ;;  %v470_v4 = vsel %vm1548_vm2, %v460_v63, 0.0  ;;  %v471_v5 = vsel %vm1609_vm14, %v461_v0, 0.0  ;;  %v1019_v6 = vunpack.i.h.bf16 %v1017_v1 }
 0x121   : > { %v890_v7 = vpack.c.bf16 %v471_v5, %v470_v4  ;;  %v1018_v8 = vunpack.i.l.bf16 %v1017_v1  ;;  %v1024_v9 = vunpack.i.h.bf16 %v1022_v2  ;;  %v1023_v10 = vunpack.i.l.bf16 %v1022_v2 }
 0x122   : > { %454 = vst [vmem:[#allocation2 + $0x28] sm:$0x33] %v889_v3  ;;  %vm588_vm2 = vcmask 588800   ;;  %vm658_vm4 = vcmask (!%p1761_p3), 3072  }
 0x123   : > { %480 = vst [vmem:[#allocation2 + $0x30] sm:$0x33] %v890_v7  ;;  %v486_v13 = vsel %vm485_vm15, %v1018_v8, %v1019_v6  ;;  %v487_v14 = vsel %vm485_vm15, %v1019_v6, %v1018_v8  ;;  %v508_v16 = vsel %vm507_vm1, %v1023_v10, %v1024_v9  ;;  %v509_v18 = vsel %vm507_vm1, %v1024_v9, %v1023_v10 }
 0x124   : > { %v493_v17 = vsel %vm463_vm13, %v487_v14, 0.0  ;;  %v516_v19 = vsel %vm1543_vm0, %v508_v16, 0.0  ;;  %v517_v20 = vsel %vm511_vm3, %v509_v18, 0.0  ;;  %vm592_vm0 = vcmask 1043456   ;;  %659 = vst.msk [vmem:[#allocation12] sm:$0xf] (!%p1761_p3), %vm658_vm4, %v1279_v43 }
 0x125   : > { %v891_v21 = vpack.c.bf16 %v493_v17, %v486_v13  ;;  %v892_v22 = vpack.c.bf16 %v517_v20, %v516_v19  ;;  %v1029_v25 = vld [vmem:[#allocation2 + $0x14] ss:$8 sps:$4 sm:$0xff]   ;;  %v1031_v11 = vld [vmem:[#allocation2 + $0x10] ss:$8 sps:$4 sm:$0xff]   ;;  %660 = vst.msk [vmem:[#allocation12 + $0x4] sm:$0xf] (!%p1761_p3), %vm658_vm4, %v1279_v43 }
 0x126   : > { %v1026_v23 = vld [vmem:[#allocation2 + $0x4] ss:$8 sps:$4 sm:$0xff]   ;;  %v1028_v24 = vld [vmem:[#allocation2] ss:$8 sps:$4 sm:$0xff]  }
 0x127   : > { %502 = vst [vmem:[#allocation2 + $0x38] sm:$0x33] %v891_v21  ;;  %526 = vst [vmem:[#allocation2 + $0x40] sm:$0x33] %v892_v22  ;;  %599 = vmatprep.subr.bf16.mxu0 %v1026_v23 }
 0x128   : > { %600 = vmatpush1.bf16.msra.mxu0 %v1028_v24 }
 0x129   : > { %601 = vmatprep.subr.bf16.mxu0 %v1029_v25  ;;  %v1032_v26 = vld [vmem:[#allocation2 + $0x24] ss:$8 sps:$4 sm:$0xff]   ;;  %v1034_v27 = vld [vmem:[#allocation2 + $0x20] ss:$8 sps:$4 sm:$0xff]  }
 0x12c   : > { %602 = vmatpush1.bf16.msra.mxu0 %v1031_v11 }
 0x12d   : > { %603 = vmatprep.subr.bf16.mxu0 %v1032_v26 }
 0x12e   : > { %v1035_v12 = vld [vmem:[#allocation2 + $0x34] ss:$8 sps:$4 sm:$0xff]   ;;  %v536_v28 = vld [vmem:[#allocation2 + $0x40] sm:$0xff]  ;;  %v1037_v30 = vld [vmem:[#allocation2 + $0x30] ss:$8 sps:$4 sm:$0xff]  }
 0x12f   : > { %v869_v15 = vcombine.high %v536_v28, %v536_v28  ;;  %v868_v29 = vcombine.low %v536_v28, %v536_v28 }
 0x130   : > { %604 = vmatpush1.bf16.msra.mxu0 %v1034_v27  ;;  %v541_v33 = vpop.permute.xlu0 %540 }
 0x131   : > { %605 = vmatprep.subr.bf16.mxu0 %v1035_v12  ;;  %v594_v31 = vsel %vm592_vm0, %v868_v29, 0 }
 0x134   : > { %606 = vmatpush1.bf16.msra.mxu0 %v1037_v30 }
 0x135   : > { %870 = vmatprep.subr.msk.bf16.mxu0 %vm592_vm0, %v869_v15 }
 0x138   : > { %608 = vmatpush1.bf16.msra.mxu0 %v594_v31 }
 0x13b   : > { %871 = vmatmul.mubr.msk.bf16.vlgmr.msra.gmra.mrb[0].mxu0 %vm588_vm2, %v527_v32 }
 0x20e   : > { %v633_v34 = vpop.f32.mrb[0].mxu0  ;;  %657 = sbr.rel (%p1761_p3) target bundleno = 533 (0x215), region = 56 }
 0x20f   : > { %v634_v35 = vadd.f32 %v633_v34, %v541_v33  ;;  %v635_v36 = vpop.f32.mrb[1].mxu0 }
 0x210   : > { %v636_v37 = vadd.f32 %v635_v36, %v541_v33  ;;  %v637_v38 = vpop.f32.mrb[2].mxu0 }
 0x211   : > { %v640_v39 = vpack.c.bf16 %v634_v35, %v634_v35  ;;  %v638_v40 = vpop.f32.mrb[3].mxu0 }
 0x212   : > { %v641_v41 = vpack.c.bf16 %v636_v37, %v636_v37  ;;  %v872_v42 = vpack.c.bf16 %v636_v37, %v634_v35 }
 0x214   : > { %873 = vst.sshfl [vmem:[%s300_s9] sm:$0x33 pattern:$0x76325410] %v872_v42 }
 0x215 PF: > { %v661_v44 = vunpack.c.l.bf16 %v640_v39  ;;  %v662_v45 = vunpack.c.l.bf16 %v641_v41  ;;  %s893_s11 = sshll.u32 %s1335_s22, 6  ;;  %s698_s15 = sshll.u32 %s300_s9, 4  ;;  %s699_s15 = int_to_ptr.vmem [resolvable:$true] %s698_s15 }
 0x216   : > { %s1660_s13 = scalar_lea.hbm %s1724_s4, %s893_s11  ;;  %s684_s26 = scalar_lea.sflag [#allocation5], %s1511_s16 }
 0x217   : > { %v664_v46 = vsel %vm592_vm0, %v661_v44, 0.0  ;;  %v665_v47 = vsel %vm592_vm0, %v662_v45, 0.0  ;;  %v674_v48 = vmul.f32 %v661_v44, %v661_v44  ;;  %v675_v49 = vmul.f32 %v662_v45, %v662_v45  ;;  %s1156_s12 = scalar_lea.vmem %s699_s15, 64  ;;  %p1762_p11 = scmp.ne.s32.totalorder %s1739_s17, 0 }
 0x218   : > { %v666_v50 = vadd.f32 %v665_v47, %v664_v46  ;;  %p1157_p7 = scmp.ne.s32.totalorder %s699_s15, %s1156_s12  ;;  %s1280_s14 = smov [#allocation11]  }
 0x219   : > { %v676_v51 = vsel %vm592_vm0, %v674_v48, 0.0  ;;  %v677_v52 = vsel %vm592_vm0, %v675_v49, 0.0  ;;  %s1160_s24 = sshll.u32 %s1280_s14, 4  ;;  %s1161_s24 = int_to_ptr.vmem [resolvable:$false] %s1160_s24 }
 0x21a   : > { %667 = vadd.xlane.f32.xlu0 %v666_v50  ;;  %v678_v53 = vadd.f32 %v677_v52, %v676_v51  ;;  %p1158_p0 = pnand %p1157_p7, %p1762_p11  ;;  %s1162_s29 = scalar_lea.vmem %s1161_s24, 128 }
 0x21b   : > { %p1163_p8 = scmp.lt.s32.totalorder %s699_s15, %s1161_s24  ;;  %p1164_p1 = scmp.lt.s32.totalorder %s1162_s29, %s1156_s12 }
 0x21c   : > { %p1159_p5 = pneg %p1158_p0 }
 0x21d   : > { %p1165_p4 = por %p1164_p1, %p1163_p8 }
 0x21e   : > { %679 = vadd.xlane.f32.xlu0 %v678_v53 }
 0x21f   : > { %p1166_p2 = pnand %p1165_p4, %p1159_p5 }
 0x221   : > { %1169 = shalt.err (!%p1166_p2)
}
 0x222   : > { %s1170_s16 = scalar_lea.hbm %s1660_s13, 64  ;;  %s1174_s30 = scalar_lea.hbm %s1724_s4, 128 }
 0x223   : > { %p1171_p6 = scmp.ne.s32.totalorder %s1660_s13, %s1170_s16  ;;  %p1175_p9 = scmp.lt.u32.totalorder %s1660_s13, %s1724_s4 }
 0x224   : > { %p1176_p10 = scmp.lt.u32.totalorder %s1174_s30, %s1170_s16  ;;  %p1178_p7 = scmp.lt.u32.totalorder %s1170_s16, %s1660_s13 }
 0x225   : > { %p1172_p12 = pnand %p1171_p6, %p1762_p11 }
 0x226   : > { %p1177_p3 = por %p1176_p10, %p1175_p9 }
 0x227   : > { %p1173_p13 = pneg %p1172_p12 }
 0x228   : > { %p1179_p0 = por %p1178_p7, %p1177_p3 }
 0x22a   : > { %p1180_p5 = pnand %p1179_p0, %p1173_p13 }
 0x22c   : > { %1183 = shalt.err (!%p1180_p5)
}
 0x22d   : > { %906 = dma.vmem_to_hbm [thread:$0]  (%p1762_p11), %s699_s15, 64, %s1660_s13, %s684_s26   ;;  %v663_v54 = vld [vmem:[#allocation12] sm:$0xf]  ;;  %vm670_vm5 = vcmask 3072   ;;  %v673_v57 = vld [vmem:[#allocation12 + $0x4] sm:$0xf] }
 0x22e   : > { %s1281_s27 = smov [#allocation12]   ;;  %p1763_p1 = scmp.eq.s32.totalorder %s1335_s22, 1 }
 0x22f   : > { %s708_s9 = sshll.u32 %s1281_s27, 4  ;;  %s709_s9 = int_to_ptr.vmem [resolvable:$true] %s708_s9 }
 0x230   : > { %s1184_s11 = scalar_lea.vmem %s709_s9, 128  ;;  %p1191_p6 = scmp.lt.s32.totalorder %s709_s9, %s709_s9 }
 0x231   : > { %p1185_p8 = scmp.ne.s32.totalorder %s709_s9, %s1184_s11  ;;  %p1192_p12 = scmp.lt.s32.totalorder %s1184_s11, %s1184_s11 }
 0x233   : > { %p1186_p4 = pnand %p1185_p8, %p1763_p1  ;;  %p1193_p11 = por %p1192_p12, %p1191_p6 }
 0x235   : > { %p1187_p2 = pneg %p1186_p4 }
 0x237   : > { %p1194_p13 = pnand %p1193_p11, %p1187_p2 }
 0x2a7   : > { %v668_v55 = vpop.xlane.xlu0 %667 }
 0x2a8   : > { %v669_v56 = vadd.f32 %v668_v55, %v663_v54 }
 0x2aa   : > { %671 = vst.msk [vmem:[#allocation12] sm:$0xf] %vm670_vm5, %v669_v56 }
 0x2ab   : > { %v680_v58 = vpop.xlane.xlu0 %679 }
 0x2ac   : > { %v681_v59 = vadd.f32 %v680_v58, %v673_v57 }
 0x2ae   : > { %682 = vst.msk [vmem:[#allocation12 + $0x4] sm:$0xf] %vm670_vm5, %v681_v59 }
 0x2af   : > { %1197 = shalt.err (!%p1194_p13)
}
 0x2b0   : > { %s1198_s2 = scalar_lea.hbm %s1725_s5, 128  ;;  %p1764_p10 = pmov %p1763_p1 }
 0x2b1   : > { %p1199_p9 = scmp.ne.s32.totalorder %s1725_s5, %s1198_s2  ;;  %p1204_p0 = scmp.lt.u32.totalorder %s1198_s2, %s1725_s5 }
 0x2b3   : > { %p1200_p3 = pnand %p1199_p9, %p1764_p10 }
 0x2b5   : > { %p1201_p7 = pneg %p1200_p3 }
 0x2b7   : > { %p1206_p5 = pnand %p1204_p0, %p1201_p7 }
 0x2b9   : > { %1209 = shalt.err (!%p1206_p5)
}
 0x2ba   : > { %s1282_s14 = smov 64   ;;  %s1283_s24 = smov 4  }
 0x2bb   : > { %p1765_p8 = pmov %p1763_p1 }
 0x2bd   : > { %908 = dma.vmem_to_hbm [thread:$0]  (%p1765_p8), %s709_s9, 128, %s1725_s5, [#allocation13], %s1282_s14, %s1282_s14, %s1283_s24  }
 0x2be   : > { %1243 = dma.done.wait (%p1763_p1), [#allocation13], 128   ;;  %p1766_p4 = pmov %p1763_p1 }
 0x2c0   : > { %1245 = vsyncadd (%p1766_p4), [#allocation13], 4294967168 }
 0x2c1 PF: > { %s727_s8 = sand.u32 1, %s1252_s18   ;;  %p1767_p2 = scmp.ne.s32.totalorder %s1733_s25, 0 }
 0x2c2   : > { %p1768_p6 = scmp.ge.s32.totalorder %s1264_s21, 2  ;;  %s728_s23 = scalar_lea.sflag [#allocation5], %s727_s8 }
 0x2c4   : > { %p927_p12 = pnand %p1768_p6, %p1767_p2 }
 0x2c6   : > { %1247 = dma.done.wait (!%p927_p12), %s728_s23, 64  }
 0x2c7   : > { %1249 = vsyncadd (!%p927_p12), %s728_s23, 4294967232  ;;  %p24_p11 = scmp.ge.s32.totalorder %s1371_s7, 4   ;;  %s1769_s18 = smov %s1256_s19 }
 0x2c8   : > { %s1770_s19 = smov %s1260_s20  ;;  %s1771_s20 = smov %s1430_s6 }
 0x2c9   : > { %s1772_s21 = smov %s1371_s7  ;;  %26 = sbr.rel (!%p24_p11) target bundleno = 12 (0xc), region = 115 }
 0x2d0   :  { %733 = vsyncpa [#allocation4], 1 }
 0x2d1   :  { %735 = vsyncpa [#allocation4 + $0x1], 1 }
 0x2d2   :  { %736 = vsyncpa [#allocation7], 1 }
 0x2d3   :  { %738 = vsyncpa [#allocation7 + $0x1], 1 }
 0x2d4   :  { %739 = vsyncpa [#allocation10], 1 }
 0x2d5   :  { %740 = vsyncpa [#allocation5], 1 }
 0x2d6   :  { %742 = vsyncpa [#allocation5 + $0x1], 1 }
 0x2d7   :  { %743 = vsyncpa [#allocation13], 1 }

// kernel: last_block_forward.10
= control target key start
LH: loop header
LB: loop body
LE: loop exit
PB: predicated region body
PF: predicated region fallthrough
CT: control target
= control target key end

     0   :  { %s1858_s0 = inlined_call_operand.hbm [shape: bf16[2,4,256], index: 0, kind: input, shape index: {}]   ;;  %s1859_s1 = inlined_call_operand.hbm [shape: f32[2,4,1], index: 1, kind: input, shape index: {}]   ;;  %s1860_s2 = inlined_call_operand.hbm [shape: bf16[4,72], index: 2, kind: input, shape index: {}]   ;;  %s1861_s3 = inlined_call_operand.hbm [shape: f32[4,1], index: 3, kind: input, shape index: {}]   ;;  %s1862_s4 = inlined_call_operand.hbm [shape: bf16[2,4,256], index: 4, kind: input, shape index: {}]   ;;  %s1863_s5 = inlined_call_operand.hbm [shape: bf16[2,4,256], index: 5, kind: output, shape index: {0}]   ;;  %s1864_s6 = inlined_call_operand.hbm [shape: f32[2,4,1], index: 6, kind: output, shape index: {1}]  }
   0x1   :  { %1878 = sst [smem:[#allocation25_spill]] %s1858_s0 }
   0x2   :  { %1879 = sst [smem:[#allocation26_spill]] %s1859_s1 }
   0x3   :  { %12 = vsyncpa [#allocation4], 0 }
   0x4   :  { %14 = vsyncpa [#allocation4 + $0x1], 0 }
   0x5   :  { %15 = vsyncpa [#allocation7], 0 }
   0x6   :  { %16 = vsyncpa [#allocation10], 0 }
   0x7   :  { %17 = vsyncpa [#allocation5], 0 }
   0x8   :  { %19 = vsyncpa [#allocation5 + $0x1], 0 }
   0x9   :  { %20 = vsyncpa [#allocation14], 0  ;;  %s1446_s21 = smov 0   ;;  %s1448_s22 = smov 0  }
   0xa   :  { %s1450_s23 = smov 0   ;;  %s1452_s24 = smov 0  }
   0xb LB: > { %1880 = sst [smem:[#allocation21_spill]] %s1383_s23  ;;  %s1467_s25 = sadd.s32 4294967295, %s1387_s24   ;;  %s1387_s24 = sphi %s1452_s24, %s1925_s24   ;;  %s1383_s23 = sphi %s1450_s23, %s1927_s23   ;;  %s1379_s22 = sphi %s1448_s22, %s1929_s22   ;;  %s1375_s21 = sphi %s1446_s21, %s1928_s21  }
   0xc   : > { %1881 = sst [smem:[#allocation22_spill]] %s1387_s24  ;;  %s914_s26 = sadd.s32 4294967294, %s1387_s24  }
   0xd   : > { %p46_p0 = scmp.ne.s32.totalorder %s1379_s22, %s1375_s21  ;;  %p1865_p1 = scmp.eq.s32.totalorder %s1467_s25, 0 }
   0xe   : > { %p165_p3 = scmp.eq.s32.totalorder %s914_s26, 1  ;;  %p915_p5 = scmp.ge.s32.totalorder %s1387_s24, 1 }
   0xf   : > { %p1476_p4 = por %p1865_p1, %p46_p0  ;;  %p193_p7 = scmp.lt.s32.totalorder %s1387_s24, 3 }
  0x10   : > { %p1481_p6 = por %p165_p3, %p46_p0  ;;  %s1389_s30 = smov [#allocation6]  }
  0x11   : > { %s1882_s27 = scalar_select %p1476_p4, 1, 0 }
  0x12   : > { %s1883_s28 = scalar_select %p1481_p6, 1, 0 }
  0x13   : > { %p1487_p9 = pnand %p915_p5, %p193_p7  ;;  %s205_s7 = sshll.u32 %s1389_s30, 4  ;;  %s1491_s7 = int_to_ptr.vmem [resolvable:$true] %s205_s7 }
  0x14   : > { %s1503_s9 = sadd.s32 1, %s1387_s24   ;;  %s33_s10 = sadd.s32 1, %s1383_s23 }
  0x15   : > { %s1884_s29 = scalar_select %p1487_p9, 1, 0 }
  0x16   : > { %p998_p10 = pneg %p1487_p9  ;;  %1886 = sst [smem:[#allocation23_spill]] %s1503_s9 }
  0x17   : > { %s30_s11 = ssub.s32 %s1387_s24, %s1503_s9  ;;  %s1887_s1 = sld [smem:[#allocation26_spill]] }
  0x18   : > { %p1498_p12 = pnand %p998_p10, %p1865_p1 }
  0x1a   : > { %s1885_s8 = scalar_select %p1498_p12, 1, 0 }
  0x1b   : > { %p1516_p0 = pneg %p1498_p12 }
  0x1d   : > { %s1135_s14 = scalar_lea.hbm %s1887_s1, 128 }
  0x1e   : > { %p1136_p13 = scmp.ne.s32.totalorder %s1887_s1, %s1135_s14  ;;  %p1142_p7 = scmp.lt.u32.totalorder %s1135_s14, %s1887_s1 }
  0x20   : > { %p1138_p3 = pnand %p1516_p0, %p1136_p13 }
  0x22   : > { %p1139_p5 = pneg %p1138_p3 }
  0x24   : > { %p1144_p10 = pnand %p1142_p7, %p1139_p5 }
  0x26   : > { %1147 = shalt.err (!%p1144_p10)
}
  0x27   : > { %s1148_s20 = scalar_lea.vmem %s1491_s7, 128  ;;  %p1156_p2 = scmp.lt.s32.totalorder %s1491_s7, %s1491_s7 }
  0x28   : > { %p1149_p11 = scmp.ne.s32.totalorder %s1491_s7, %s1148_s20  ;;  %p1157_p6 = scmp.lt.s32.totalorder %s1148_s20, %s1148_s20 }
  0x2a   : > { %p1151_p8 = pnand %p1149_p11, %p1516_p0  ;;  %p1158_p13 = por %p1157_p6, %p1156_p2 }
  0x2c   : > { %p1152_p1 = pneg %p1151_p8 }
  0x2e   : > { %p1159_p3 = pnand %p1158_p13, %p1152_p1 }
  0x30   : > { %1162 = shalt.err (!%p1159_p3)
}
  0x31   : > { %s1390_s26 = smov 64   ;;  %s1391_s30 = smov 4  }
  0x32   : > { %1001 = dma.hbm_to_vmem [thread:$0]  (!%p1498_p12), %s1887_s1, 128, %s1491_s7, [#allocation7], %s1390_s26, %s1390_s26, %s1391_s30  }
  0x33   : > { %p31_p1 = scmp.eq.s32.totalorder %s30_s11, 0  ;;  %p40_p2 = scmp.ne.s32.totalorder %s1383_s23, %s1379_s22 }
  0x34   : > { %p41_p6 = scmp.eq.s32.totalorder %s1387_s24, 0  ;;  %p1022_p8 = scmp.lt.s32.totalorder %s1387_s24, 2 }
  0x35   : > { %s1542_s14 = scalar_select %p31_p1, %s1383_s23, %s33_s10  }
  0x36   : > { %p42_p11 = por %p41_p6, %p40_p2  ;;  %p1890_p5 = scmp.eq.s32.totalorder %s1467_s25, 1 }
  0x37   : > { %1889 = sst [smem:[#allocation24_spill]] %s1542_s14  ;;  %s241_s16 = sand.u32 1, %s1387_s24  }
  0x38   : > { %p1546_p7 = por %p1890_p5, %p40_p2  ;;  %s243_s18 = sand.u32 1, %s1383_s23  }
  0x39   : > { %s1552_s19 = sshll.u32 %s243_s18, 2  ;;  %s964_s20 = sshll.u32 %s1387_s24, 6 }
  0x3a   : > { %s1891_s15 = scalar_select %p1546_p7, 1, 0 }
  0x3b   : > { %s1892_s0 = sld [smem:[#allocation25_spill]]  ;;  %s245_s10 = scalar_lea.vmem [#allocation3], %s1552_s19 }
  0x3c   : > { %s253_s26 = sshll.u32 %s245_s10, 4  ;;  %p1563_p10 = pnand %p1022_p8, %p42_p11  ;;  %s1561_s26 = int_to_ptr.vmem [resolvable:$true] %s253_s26 }
  0x3d   : > { %s1570_s12 = scalar_lea.hbm %s1862_s4, %s964_s20  ;;  %s1572_s7 = scalar_lea.sflag [#allocation4], %s241_s16 }
  0x3e   : > { %s1893_s30 = scalar_select %p1563_p10, 1, 0 }
  0x3f   : > { %p1875_p3 = pneg %p1563_p10 }
  0x41   : > { %s1558_s11 = scalar_lea.hbm %s1892_s0, %s964_s20  ;;  %s1168_s23 = scalar_lea.hbm %s1892_s0, 128 }
  0x42   : > { %s1163_s1 = scalar_lea.hbm %s1558_s11, 64  ;;  %p1169_p6 = scmp.lt.u32.totalorder %s1558_s11, %s1892_s0 }
  0x43   : > { %p1164_p13 = scmp.ne.s32.totalorder %s1558_s11, %s1163_s1  ;;  %p1170_p8 = scmp.lt.u32.totalorder %s1168_s23, %s1163_s1 }
  0x44   : > { %p1172_p5 = scmp.lt.u32.totalorder %s1163_s1, %s1558_s11 }
  0x45   : > { %p1166_p1 = pnand %p1875_p3, %p1164_p13  ;;  %p1171_p11 = por %p1170_p8, %p1169_p6 }
  0x47   : > { %p1167_p2 = pneg %p1166_p1  ;;  %p1173_p7 = por %p1172_p5, %p1171_p11 }
  0x49   : > { %p1174_p4 = pnand %p1173_p7, %p1167_p2 }
  0x4b   : > { %1177 = shalt.err (!%p1174_p4)
}
  0x4c   : > { %s1178_s16 = scalar_lea.vmem %s1561_s26, 64  ;;  %s1392_s14 = smov [#allocation3]  }
  0x4d   : > { %p1179_p13 = scmp.ne.s32.totalorder %s1561_s26, %s1178_s16  ;;  %s1183_s20 = sshll.u32 %s1392_s14, 4  ;;  %s1184_s20 = int_to_ptr.vmem [resolvable:$false] %s1183_s20 }
  0x4e   : > { %s1185_s9 = scalar_lea.vmem %s1184_s20, 128  ;;  %p1186_p12 = scmp.lt.s32.totalorder %s1561_s26, %s1184_s20 }
  0x4f   : > { %p1181_p1 = pnand %p1179_p13, %p1875_p3  ;;  %p1187_p6 = scmp.lt.s32.totalorder %s1185_s9, %s1178_s16 }
  0x51   : > { %p1182_p9 = pneg %p1181_p1  ;;  %p1188_p8 = por %p1187_p6, %p1186_p12 }
  0x53   : > { %p1189_p11 = pnand %p1188_p8, %p1182_p9 }
  0x55   : > { %1192 = shalt.err (!%p1189_p11)
}
  0x56   : > { %1011 = dma.hbm_to_vmem [thread:$0]  (!%p1563_p10), %s1558_s11, 64, %s1561_s26, %s1572_s7  }
  0x57   : > { %s1393_s1 = smov [#allocation8]   ;;  %s1394_s18 = smov [#allocation9]  }
  0x58   : > { %s219_s23 = sshll.u32 %s1393_s1, 4  ;;  %s230_s10 = sshll.u32 %s1394_s18, 4  ;;  %s220_s23 = int_to_ptr.vmem [resolvable:$true] %s219_s23  ;;  %s231_s10 = int_to_ptr.vmem [resolvable:$true] %s230_s10 }
  0x59   : > { %s1193_s20 = scalar_lea.hbm %s1860_s2, 32 }
  0x5a   : > { %p1194_p4 = scmp.ne.s32.totalorder %s1860_s2, %s1193_s20  ;;  %p1200_p7 = scmp.lt.u32.totalorder %s1193_s20, %s1860_s2 }
  0x5c   : > { %p1196_p9 = pnand %p1194_p4, %p1516_p0 }
  0x5e   : > { %p1197_p12 = pneg %p1196_p9 }
  0x60   : > { %p1202_p2 = pnand %p1200_p7, %p1197_p12 }
  0x62   : > { %1205 = shalt.err (!%p1202_p2)
}
  0x63   : > { %s1206_s11 = scalar_lea.vmem %s220_s23, 32  ;;  %p1214_p6 = scmp.lt.s32.totalorder %s220_s23, %s220_s23 }
  0x64   : > { %p1207_p5 = scmp.ne.s32.totalorder %s220_s23, %s1206_s11  ;;  %p1215_p8 = scmp.lt.s32.totalorder %s1206_s11, %s1206_s11 }
  0x66   : > { %p1209_p13 = pnand %p1207_p5, %p1516_p0  ;;  %p1216_p11 = por %p1215_p8, %p1214_p6 }
  0x68   : > { %p1210_p1 = pneg %p1209_p13 }
  0x6a   : > { %p1217_p3 = pnand %p1216_p11, %p1210_p1 }
  0x6c   : > { %1220 = shalt.err (!%p1217_p3)
}
  0x6d   : > { %p1894_p4 = scmp.ne.s32.totalorder %s1885_s8, 0  ;;  %s264_s0 = scalar_lea.vmem [#allocation11], %s1552_s19 }
  0x6e   : > { %s272_s24 = sshll.u32 %s264_s0, 4  ;;  %s1221_s14 = scalar_lea.hbm %s1861_s3, 64  ;;  %s273_s24 = int_to_ptr.vmem [resolvable:$true] %s272_s24 }
  0x6f   : > { %1004 = dma.hbm_to_vmem [thread:$0]  (!%p1894_p4), %s1860_s2, 32, %s220_s23, [#allocation7]  }
  0x70   : > { %p1222_p9 = scmp.ne.s32.totalorder %s1861_s3, %s1221_s14  ;;  %p1228_p7 = scmp.lt.u32.totalorder %s1221_s14, %s1861_s3 }
  0x72   : > { %p1224_p3 = pnand %p1222_p9, %p1516_p0 }
  0x74   : > { %p1225_p12 = pneg %p1224_p3 }
  0x76   : > { %p1230_p2 = pnand %p1228_p7, %p1225_p12 }
  0x78   : > { %1233 = shalt.err (!%p1230_p2)
}
  0x79   : > { %s1234_s23 = scalar_lea.vmem %s231_s10, 64  ;;  %p1242_p6 = scmp.lt.s32.totalorder %s231_s10, %s231_s10 }
  0x7a   : > { %p1235_p5 = scmp.ne.s32.totalorder %s231_s10, %s1234_s23  ;;  %p1243_p8 = scmp.lt.s32.totalorder %s1234_s23, %s1234_s23 }
  0x7c   : > { %p1237_p13 = pnand %p1235_p5, %p1516_p0  ;;  %p1244_p11 = por %p1243_p8, %p1242_p6 }
  0x7e   : > { %p1238_p1 = pneg %p1237_p13 }
  0x80   : > { %p1245_p10 = pnand %p1244_p11, %p1238_p1 }
  0x82   : > { %1248 = shalt.err (!%p1245_p10)
}
  0x83   : > { %1007 = dma.hbm_to_vmem [thread:$0]  (!%p1894_p4), %s1861_s3, 64, %s231_s10, [#allocation10]  }
  0x84   : > { %s1249_s17 = scalar_lea.hbm %s1570_s12, 64  ;;  %p1895_p9 = scmp.ne.s32.totalorder %s1893_s30, 0 }
  0x85   : > { %p1250_p0 = scmp.ne.s32.totalorder %s1570_s12, %s1249_s17  ;;  %s1254_s8 = scalar_lea.hbm %s1862_s4, 128 }
  0x86   : > { %p1896_p3 = pneg %p1895_p9  ;;  %p1255_p10 = scmp.lt.u32.totalorder %s1570_s12, %s1862_s4 }
  0x87   : > { %p1256_p2 = scmp.lt.u32.totalorder %s1254_s8, %s1249_s17  ;;  %p1258_p13 = scmp.lt.u32.totalorder %s1249_s17, %s1570_s12 }
  0x88   : > { %p1252_p12 = pnand %p1250_p0, %p1896_p3 }
  0x89   : > { %p1257_p5 = por %p1256_p2, %p1255_p10 }
  0x8a   : > { %p1253_p7 = pneg %p1252_p12 }
  0x8b   : > { %p1259_p1 = por %p1258_p13, %p1257_p5 }
  0x8d   : > { %p1260_p4 = pnand %p1259_p1, %p1253_p7 }
  0x8f   : > { %1263 = shalt.err (!%p1260_p4)
}
  0x90   : > { %s1264_s10 = scalar_lea.vmem %s273_s24, 64  ;;  %p1897_p8 = pmov %p1896_p3 }
  0x91   : > { %p1265_p6 = scmp.ne.s32.totalorder %s273_s24, %s1264_s10  ;;  %s1395_s14 = smov [#allocation11]  }
  0x92   : > { %s1269_s20 = sshll.u32 %s1395_s14, 4  ;;  %s1270_s20 = int_to_ptr.vmem [resolvable:$false] %s1269_s20 }
  0x93   : > { %p1267_p11 = pnand %p1265_p6, %p1897_p8  ;;  %s1271_s16 = scalar_lea.vmem %s1270_s20, 128 }
  0x94   : > { %p1272_p3 = scmp.lt.s32.totalorder %s273_s24, %s1270_s20  ;;  %p1273_p12 = scmp.lt.s32.totalorder %s1271_s16, %s1264_s10 }
  0x95   : > { %p1268_p0 = pneg %p1267_p11 }
  0x96   : > { %p1274_p2 = por %p1273_p12, %p1272_p3 }
  0x98   : > { %p1275_p10 = pnand %p1274_p2, %p1268_p0 }
  0x9a   : > { %1278 = shalt.err (!%p1275_p10)
}
  0x9b   : > { %1014 = dma.hbm_to_vmem [thread:$0]  (!%p1895_p9), %s1570_s12, 64, %s273_s24, %s1572_s7  }
  0x9c   : > { %p1898_p7 = scmp.ne.s32.totalorder %s1884_s29, 0 }
  0x9d   : > { %s283_s9 = sand.u32 (!%p1898_p7), 1, %s1467_s25   ;;  %s285_s11 = sand.u32 (!%p1898_p7), 1, %s1379_s22  }
  0x9e   : > { %281 = sbr.rel (%p1898_p7) target bundleno = 865 (0x361), region = 40  ;;  %s1663_s23 = sshll.u32 (!%p1898_p7), %s285_s11, 2 }
  0x9f   : > { %s284_s19 = scalar_lea.sflag (!%p1898_p7), [#allocation4], %s283_s9  ;;  %s287_s26 = scalar_lea.vmem (!%p1898_p7), [#allocation3], %s1663_s23 }
  0xa0   : > { %p1899_p5 = scmp.ne.s32.totalorder (!%p1898_p7), %s1882_s27, 0 }
  0xa5   : > { %1350 = dma.done.wait (%p1899_p5), %s284_s19, 64  }
  0xa6   : > { %1352 = vsyncadd (%p1899_p5), %s284_s19, 4294967232  ;;  %p1900_p9 = scmp.eq.s32.totalorder %s1467_s25, 0 }
  0xa8   : > { %1354 = dma.done.wait (%p1900_p9), [#allocation7], 160   ;;  %p1901_p13 = pmov %p1900_p9 }
  0xa9   : > { %p1902_p1 = pmov %p1900_p9 }
  0xaa   : > { %1356 = vsyncadd (%p1901_p13), [#allocation7], 4294967136 }
  0xab   : > { %1358 = dma.done.wait (%p1902_p1), [#allocation10], 64   ;;  %p1903_p4 = pmov %p1902_p1 }
  0xac   : > { %s308_s29 = scalar_lea.vmem [#allocation11], %s1663_s23 }
  0xad   : > { %1360 = vsyncadd (%p1903_p4), [#allocation10], 4294967232 }
  0xae   : > { %1362 = dma.done.wait (%p1899_p5), %s284_s19, 64  }
  0xaf   : > { %1364 = vsyncadd (%p1899_p5), %s284_s19, 4294967232  ;;  %v1396_v0 = vmov 0   ;;  %v345_v1 = vld [vmem:[#allocation6] sm:$0xf]  ;;  %v360_v2 = vld [vmem:[#allocation6 + $0x4] sm:$0xf]  ;;  %v353_v5 = vlaneseq }
  0xb0   : > { %1080 = vset.pattern.permute.xlu0 %v1396_v0  ;;  %380 = vst [vmem:[#allocation2] sm:$0xcc] %v1396_v0  ;;  %381 = vst [vmem:[#allocation2 + $0x8] sm:$0xcc] %v1396_v0  ;;  %697 = vmatprep.mubr.bf16.mxu0 %v1396_v0  ;;  %v1397_v3 = vmov 839922192  }
  0xb1   : > { %382 = vst [vmem:[#allocation2 + $0x10] sm:$0xcc] %v1396_v0  ;;  %383 = vst [vmem:[#allocation2 + $0x18] sm:$0xcc] %v1396_v0  ;;  %348 = vperm.xlu0 %1080, %v345_v1   ;;  %v351_v4 = vunpack.c.l.s4 %v1397_v3  ;;  %v354_v7 = vshrl.u32 %v353_v5, 7  ;;  %s1398_s27 = smov 15  }
  0xb2   : > { %384 = vst [vmem:[#allocation2 + $0x20] sm:$0xcc] %v1396_v0  ;;  %385 = vst [vmem:[#allocation2 + $0x28] sm:$0xcc] %v1396_v0  ;;  %v343_v9 = vld [vmem:[%s287_s26] sm:$0xf] }
  0xb3   : > { %386 = vst [vmem:[#allocation2 + $0x30] sm:$0xcc] %v1396_v0  ;;  %387 = vst [vmem:[#allocation2 + $0x38] sm:$0xcc] %v1396_v0  ;;  %v352_v6 = vunpack.c.0.s8 %v351_v4  ;;  %v344_v11 = vunpack.c.l.bf16 %v343_v9  ;;  %s1399_s30 = smov 17   ;;  %s1400_s12 = smov 127  }
  0xb4   : > { %388 = vst [vmem:[#allocation2 + $0x40] sm:$0xcc] %v1396_v0  ;;  %s1401_s7 = smov 16   ;;  %s1402_s24 = smov 112   ;;  %v603_v21 = vld [vmem:[#allocation9] sm:$0xf] }
  0xb5   : > { %363 = vperm.xlu0 %1080, %v360_v2   ;;  %v355_v8 = vsub.s32 %v352_v6, %v354_v7  ;;  %s1403_s17 = smov 1   ;;  %s1404_s1 = smov 113   ;;  %v1685_v22 = vand.u32 127, %v353_v5 }
  0xb6   : > { %s1405_s0 = smov 111   ;;  %s339_s8 = scalar_lea.vmem [#allocation12], %s1663_s23 }
  0xb7   : > { %v1688_v23 = vadd.s32 128, %v1685_v22  ;;  %v378_v24 = vand.u32 15, %v1685_v22  ;;  %vm399_vm0 = vcmp.ge.s32.totalorder %v1685_v22, 16  ;;  %vm446_vm3 = vcmp.lt.s32.totalorder %v1685_v22, 15  ;;  %p1916_p6 = scmp.ne.s32.totalorder %s1467_s25, 0 }
  0xb8   : > { %vm396_vm6 = vcmp.lt.s32.totalorder %v1685_v22, 17  ;;  %vm503_vm9 = vcmp.lt.s32.totalorder %v1685_v22, 127  ;;  %vm424_vm10 = vcmp.lt.s32.totalorder %v1685_v22, 16  ;;  %vm551_vm11 = vcmp.lt.s32.totalorder %v1685_v22, 112 }
  0xb9   : > { %v379_v25 = vand.u32 15, %v1688_v23  ;;  %vm1693_vm1 = vcmp.lt.s32.totalorder %v378_v24, 15  ;;  %vm1697_vm2 = vcmp.ge.s32.totalorder %v378_v24, 1  ;;  %vm529_vm12 = vcmp.lt.s32.totalorder %v1688_v23, 240 }
  0xba   : > { %vm1710_vm5 = vmand %vm399_vm0, %vm1693_vm1  ;;  %vm472_vm13 = vcmp.lt.s32.totalorder %v1685_v22, 1  ;;  %vm525_vm14 = vcmp.lt.s32.totalorder %v1685_v22, 113 }
  0xbb   : > { %vm1702_vm4 = vcmp.lt.s32.totalorder %v379_v25, 15  ;;  %vm1715_vm7 = vcmp.ge.s32.totalorder %v379_v25, 1  ;;  %vm1723_vm8 = vmand %vm399_vm0, %vm1697_vm2 }
  0xbc   : > { %vm531_vm15 = vmand %vm529_vm12, %vm1715_vm7 }
 0x130   : > { %v349_v10 = vpop.permute.xlu0 %348 }
 0x131   : > { %v356_v12 = vrot.slane %v349_v10, %v355_v8 }
 0x133   : > { %v358_v14 = vmul.f32 %v356_v12, %v344_v11 }
 0x134   : > { %v364_v13 = vpop.permute.xlu0 %363 }
 0x135   : > { %v371_v15 = vrot.slane %v364_v13, %v355_v8 }
 0x137   : > { %v373_v16 = vadd.f32 %v371_v15, %v358_v14 }
 0x139   : > { %v374_v17 = vmax.f32 %v373_v16, 0.0 }
 0x13b   : > { %v390_v18 = vcombine.high %v374_v17, %v374_v17 }
 0x13d   : > { %v1091_v19 = vpack.i.bf16 %v390_v18, %v374_v17  ;;  %v970_v20 = vpack.c.bf16 %v390_v18, %v374_v17 }
 0x13f   : > { %1092 = vrot.lane.b32.xlu0 %v1091_v19, %s1398_s27  ;;  %1082 = vrot.lane.b32.xlu1 %v1091_v19, %s1399_s30  ;;  %498 = vst [vmem:[#allocation2 + $0x20] sm:$0x33] %v970_v20 }
 0x143   : > { %1102 = vrot.lane.b32.xlu0 %v1091_v19, %s1400_s12  ;;  %1087 = vrot.lane.b32.xlu1 %v1091_v19, %s1401_s7 }
 0x147   : > { %1112 = vrot.lane.b32.xlu0 %v1091_v19, %s1402_s24  ;;  %1097 = vrot.lane.b32.xlu1 %v1091_v19, %s1403_s17 }
 0x14b   : > { %606 = vperm.xlu0 %1080, %v603_v21   ;;  %1107 = vrot.lane.b32.xlu1 %v1091_v19, %s1404_s1 }
 0x14f   : > { %1117 = vrot.lane.b32.xlu1 %v1091_v19, %s1405_s0 }
 0x1b1   : > { %v1093_v30 = vpop.permute.xlu0 %1092  ;;  %v1083_v32 = vpop.permute.xlu1 %1082 }
 0x1b2   : > { %v1095_v33 = vunpack.i.h.bf16 %v1093_v30  ;;  %v1094_v34 = vunpack.i.l.bf16 %v1093_v30  ;;  %v1085_v36 = vunpack.i.h.bf16 %v1083_v32  ;;  %v1084_v37 = vunpack.i.l.bf16 %v1083_v32 }
 0x1b4   : > { %v447_v38 = vsel %vm446_vm3, %v1094_v34, %v1095_v33  ;;  %v448_v39 = vsel %vm446_vm3, %v1095_v33, %v1094_v34  ;;  %v397_v40 = vsel %vm396_vm6, %v1084_v37, %v1085_v36  ;;  %v398_v41 = vsel %vm396_vm6, %v1085_v36, %v1084_v37  ;;  %vm577_vm3 = vmand %vm529_vm12, %vm1702_vm4 }
 0x1b5   : > { %v457_v42 = vsel %vm1710_vm5, %v448_v39, 0.0  ;;  %v458_v43 = vsel %vm1702_vm4, %v447_v38, 0.0  ;;  %v409_v44 = vsel %vm1723_vm8, %v398_v41, 0.0  ;;  %v410_v45 = vsel %vm1715_vm7, %v397_v40, 0.0  ;;  %v1103_v46 = vpop.permute.xlu0 %1102  ;;  %v1088_v47 = vpop.permute.xlu1 %1087 }
 0x1b6   : > { %v968_v48 = vpack.c.bf16 %v458_v43, %v457_v42  ;;  %v966_v49 = vpack.c.bf16 %v410_v45, %v409_v44  ;;  %v1105_v50 = vunpack.i.h.bf16 %v1103_v46  ;;  %v1104_v51 = vunpack.i.l.bf16 %v1103_v46  ;;  %v593_v42 = vld [vmem:[#allocation8] sm:$0x3]  ;;  %v706_v43 = vld [vmem:[%s308_s29] sm:$0xf] }
 0x1b7   : > { %v1090_v52 = vunpack.i.h.bf16 %v1088_v47  ;;  %v1089_v53 = vunpack.i.l.bf16 %v1088_v47  ;;  %v707_v44 = vunpack.c.l.bf16 %v706_v43 }
 0x1b8   : > { %467 = vst [vmem:[#allocation2 + $0x10] sm:$0x33] %v968_v48  ;;  %419 = vst [vmem:[#allocation2] sm:$0x33] %v966_v49  ;;  %v504_v54 = vsel %vm503_vm9, %v1104_v51, %v1105_v50  ;;  %v505_v55 = vsel %vm503_vm9, %v1105_v50, %v1104_v51 }
 0x1b9   : > { %v510_v56 = vsel %vm1693_vm1, %v504_v54, 0.0  ;;  %v511_v57 = vsel %vm1702_vm4, %v505_v55, 0.0  ;;  %v425_v58 = vsel %vm424_vm10, %v1089_v53, %v1090_v52  ;;  %v426_v59 = vsel %vm424_vm10, %v1090_v52, %v1089_v53  ;;  %v1113_v60 = vpop.permute.xlu0 %1112  ;;  %v1098_v61 = vpop.permute.xlu1 %1097 }
 0x1ba   : > { %v971_v62 = vpack.c.bf16 %v511_v57, %v510_v56  ;;  %v431_v63 = vsel %vm399_vm0, %v426_v59, 0.0  ;;  %v1115_v0 = vunpack.i.h.bf16 %v1113_v60  ;;  %v1114_v1 = vunpack.i.l.bf16 %v1113_v60 }
 0x1bb   : > { %v967_v2 = vpack.c.bf16 %v425_v58, %v431_v63  ;;  %v1100_v3 = vunpack.i.h.bf16 %v1098_v61  ;;  %v1099_v4 = vunpack.i.l.bf16 %v1098_v61  ;;  %vm573_vm0 = vcmp.lt.s32.totalorder %v1685_v22, 111 }
 0x1bc   : > { %520 = vst [vmem:[#allocation2 + $0x28] sm:$0x33] %v971_v62  ;;  %v552_v5 = vsel %vm551_vm11, %v1114_v1, %v1115_v0  ;;  %v553_v6 = vsel %vm551_vm11, %v1115_v0, %v1114_v1  ;;  %v709_v47 = vcombine.high %v707_v44, %v707_v44  ;;  %vm731_vm4 = vcmask (!%p1916_p6), 3072  }
 0x1bd   : > { %441 = vst [vmem:[#allocation2 + $0x8] sm:$0x33] %v967_v2  ;;  %v559_v7 = vsel %vm529_vm12, %v553_v6, 0.0  ;;  %v473_v8 = vsel %vm472_vm13, %v1099_v4, %v1100_v3  ;;  %v474_v9 = vsel %vm472_vm13, %v1100_v3, %v1099_v4  ;;  %v1108_v10 = vpop.permute.xlu1 %1107  ;;  %v1406_v58 = vmov (!%p1916_p6), 0.0  }
 0x1be   : > { %v973_v11 = vpack.c.bf16 %v559_v7, %v552_v5  ;;  %v479_v12 = vsel %vm1697_vm2, %v474_v9, 0.0  ;;  %v480_v13 = vsel %vm1715_vm7, %v473_v8, 0.0  ;;  %v1110_v14 = vunpack.i.h.bf16 %v1108_v10  ;;  %732 = vst.msk [vmem:[#allocation13] sm:$0xf] (!%p1916_p6), %vm731_vm4, %v1406_v58  ;;  %733 = vst.msk [vmem:[#allocation13 + $0x4] sm:$0xf] (!%p1916_p6), %vm731_vm4, %v1406_v58 }
 0x1bf   : > { %v969_v15 = vpack.c.bf16 %v480_v13, %v479_v12  ;;  %v1109_v16 = vunpack.i.l.bf16 %v1108_v10 }
 0x1c0   : > { %568 = vst [vmem:[#allocation2 + $0x38] sm:$0x33] %v973_v11 }
 0x1c1   : > { %489 = vst [vmem:[#allocation2 + $0x18] sm:$0x33] %v969_v15  ;;  %v526_v17 = vsel %vm525_vm14, %v1109_v16, %v1110_v14  ;;  %v527_v18 = vsel %vm525_vm14, %v1110_v14, %v1109_v16  ;;  %v1118_v19 = vpop.permute.xlu1 %1117 }
 0x1c2   : > { %v536_v20 = vsel %vm1697_vm2, %v526_v17, 0.0  ;;  %v537_v21 = vsel %vm531_vm15, %v527_v18, 0.0  ;;  %v1120_v24 = vunpack.i.h.bf16 %v1118_v19  ;;  %v1119_v25 = vunpack.i.l.bf16 %v1118_v19 }
 0x1c3   : > { %v972_v29 = vpack.c.bf16 %v537_v21, %v536_v20  ;;  %v1127_v23 = vld [vmem:[#allocation2 + $0x24] ss:$8 sps:$4 sm:$0xff]   ;;  %v1129_v36 = vld [vmem:[#allocation2 + $0x20] ss:$8 sps:$4 sm:$0xff]   ;;  %vm654_vm2 = vcmask 588800  }
 0x1c4   : > { %v574_v30 = vsel %vm573_vm0, %v1119_v25, %v1120_v24  ;;  %v575_v31 = vsel %vm573_vm0, %v1120_v24, %v1119_v25  ;;  %v1121_v32 = vld [vmem:[#allocation2 + $0x4] ss:$8 sps:$4 sm:$0xff]   ;;  %v1123_v33 = vld [vmem:[#allocation2] ss:$8 sps:$4 sm:$0xff]  }
 0x1c5   : > { %546 = vst [vmem:[#allocation2 + $0x30] sm:$0x33] %v972_v29  ;;  %v582_v22 = vsel %vm1693_vm1, %v574_v30, 0.0  ;;  %v583_v34 = vsel %vm577_vm3, %v575_v31, 0.0  ;;  %665 = vmatprep.subr.bf16.mxu0 %v1121_v32  ;;  %vm658_vm1 = vcmask 1043456  }
 0x1c6   : > { %v974_v27 = vpack.c.bf16 %v583_v34, %v582_v22  ;;  %666 = vmatpush1.bf16.msra.mxu0 %v1123_v33 }
 0x1c8   : > { %592 = vst [vmem:[#allocation2 + $0x40] sm:$0x33] %v974_v27  ;;  %v1124_v28 = vld [vmem:[#allocation2 + $0x14] ss:$8 sps:$4 sm:$0xff]   ;;  %v1126_v35 = vld [vmem:[#allocation2 + $0x10] ss:$8 sps:$4 sm:$0xff]  }
 0x1c9   : > { %667 = vmatprep.subr.bf16.mxu0 %v1124_v28 }
 0x1ca   : > { %668 = vmatpush1.bf16.msra.mxu0 %v1126_v35  ;;  %v607_v45 = vpop.permute.xlu0 %606 }
 0x1cb   : > { %669 = vmatprep.subr.bf16.mxu0 %v1127_v23 }
 0x1cc   : > { %v1130_v37 = vld [vmem:[#allocation2 + $0x34] ss:$8 sps:$4 sm:$0xff]   ;;  %v1132_v26 = vld [vmem:[#allocation2 + $0x30] ss:$8 sps:$4 sm:$0xff]  }
 0x1ce   : > { %670 = vmatpush1.bf16.msra.mxu0 %v1129_v36 }
 0x1cf   : > { %v602_v38 = vld [vmem:[#allocation2 + $0x40] sm:$0xff]  ;;  %671 = vmatprep.subr.bf16.mxu0 %v1130_v37 }
 0x1d0   : > { %v951_v39 = vcombine.high %v602_v38, %v602_v38  ;;  %v950_v40 = vcombine.low %v602_v38, %v602_v38 }
 0x1d2   : > { %672 = vmatpush1.bf16.msra.mxu0 %v1132_v26  ;;  %v660_v41 = vsel %vm658_vm1, %v950_v40, 0 }
 0x1d3   : > { %952 = vmatprep.subr.msk.bf16.mxu0 %vm658_vm1, %v951_v39 }
 0x1d6   : > { %674 = vmatpush1.bf16.msra.mxu0 %v660_v41 }
 0x1d9   : > { %953 = vmatmul.mubr.msk.bf16.vlgmr.msra.gmra.mrb[0].mxu0 %vm654_vm2, %v593_v42 }
 0x2ac   : > { %v699_v46 = vpop.f32.mrb[0].mxu0 }
 0x2ad   : > { %v700_v48 = vadd.f32 %v699_v46, %v607_v45  ;;  %v701_v49 = vpop.f32.mrb[1].mxu0 }
 0x2ae   : > { %v702_v50 = vadd.f32 %v701_v49, %v607_v45  ;;  %v703_v51 = vpop.f32.mrb[2].mxu0  ;;  %730 = sbr.rel (%p1916_p6) target bundleno = 693 (0x2b5), region = 64 }
 0x2af   : > { %v711_v52 = vadd.f32 %v707_v44, %v700_v48  ;;  %v704_v53 = vpop.f32.mrb[3].mxu0 }
 0x2b0   : > { %v712_v54 = vadd.f32 %v709_v47, %v702_v50 }
 0x2b1   : > { %v713_v55 = vpack.c.bf16 %v711_v52, %v711_v52 }
 0x2b2   : > { %v714_v56 = vpack.c.bf16 %v712_v54, %v712_v54  ;;  %v954_v57 = vpack.c.bf16 %v712_v54, %v711_v52 }
 0x2b4   : > { %955 = vst.sshfl [vmem:[%s339_s8] sm:$0x33 pattern:$0x76325410] %v954_v57 }
 0x2b5 PF: > { %v734_v59 = vunpack.c.l.bf16 %v713_v55  ;;  %v735_v60 = vunpack.c.l.bf16 %v714_v56  ;;  %s975_s18 = sshll.u32 %s1467_s25, 6  ;;  %s771_s13 = sshll.u32 %s339_s8, 4  ;;  %s772_s13 = int_to_ptr.vmem [resolvable:$true] %s771_s13 }
 0x2b6   : > { %s1797_s20 = scalar_lea.hbm %s1863_s5, %s975_s18  ;;  %s757_s16 = scalar_lea.sflag [#allocation5], %s285_s11 }
 0x2b7   : > { %v737_v61 = vsel %vm658_vm1, %v734_v59, 0.0  ;;  %v738_v62 = vsel %vm658_vm1, %v735_v60, 0.0  ;;  %v747_v63 = vmul.f32 %v734_v59, %v734_v59  ;;  %v748_v0 = vmul.f32 %v735_v60, %v735_v60  ;;  %s1279_s9 = scalar_lea.vmem %s772_s13, 64  ;;  %p1917_p11 = scmp.ne.s32.totalorder %s1891_s15, 0 }
 0x2b8   : > { %v739_v1 = vadd.f32 %v738_v62, %v737_v61  ;;  %p1280_p8 = scmp.ne.s32.totalorder %s772_s13, %s1279_s9  ;;  %s1407_s23 = smov [#allocation12]  }
 0x2b9   : > { %v749_v2 = vsel %vm658_vm1, %v747_v63, 0.0  ;;  %v750_v3 = vsel %vm658_vm1, %v748_v0, 0.0  ;;  %s1283_s19 = sshll.u32 %s1407_s23, 4  ;;  %s1284_s19 = int_to_ptr.vmem [resolvable:$false] %s1283_s19 }
 0x2ba   : > { %740 = vadd.xlane.f32.xlu0 %v739_v1  ;;  %v751_v4 = vadd.f32 %v750_v3, %v749_v2  ;;  %p1281_p0 = pnand %p1280_p8, %p1917_p11  ;;  %s1285_s26 = scalar_lea.vmem %s1284_s19, 128 }
 0x2bb   : > { %p1286_p12 = scmp.lt.s32.totalorder %s772_s13, %s1284_s19  ;;  %p1287_p2 = scmp.lt.s32.totalorder %s1285_s26, %s1279_s9 }
 0x2bc   : > { %p1282_p3 = pneg %p1281_p0 }
 0x2bd   : > { %p1288_p10 = por %p1287_p2, %p1286_p12 }
 0x2be   : > { %752 = vadd.xlane.f32.xlu0 %v751_v4 }
 0x2bf   : > { %p1289_p7 = pnand %p1288_p10, %p1282_p3 }
 0x2c1   : > { %1292 = shalt.err (!%p1289_p7)
}
 0x2c2   : > { %s1293_s11 = scalar_lea.hbm %s1797_s20, 64  ;;  %s1297_s30 = scalar_lea.hbm %s1863_s5, 128 }
 0x2c3   : > { %p1294_p5 = scmp.ne.s32.totalorder %s1797_s20, %s1293_s11  ;;  %p1298_p1 = scmp.lt.u32.totalorder %s1797_s20, %s1863_s5 }
 0x2c4   : > { %p1299_p4 = scmp.lt.u32.totalorder %s1297_s30, %s1293_s11  ;;  %p1301_p8 = scmp.lt.u32.totalorder %s1293_s11, %s1797_s20 }
 0x2c5   : > { %p1295_p9 = pnand %p1294_p5, %p1917_p11 }
 0x2c6   : > { %p1300_p6 = por %p1299_p4, %p1298_p1 }
 0x2c7   : > { %p1296_p13 = pneg %p1295_p9 }
 0x2c8   : > { %p1302_p0 = por %p1301_p8, %p1300_p6 }
 0x2ca   : > { %p1303_p3 = pnand %p1302_p0, %p1296_p13 }
 0x2cc   : > { %1306 = shalt.err (!%p1303_p3)
}
 0x2cd   : > { %992 = dma.vmem_to_hbm [thread:$0]  (%p1917_p11), %s772_s13, 64, %s1797_s20, %s757_s16   ;;  %v736_v5 = vld [vmem:[#allocation13] sm:$0xf]  ;;  %vm743_vm5 = vcmask 3072   ;;  %v746_v8 = vld [vmem:[#allocation13 + $0x4] sm:$0xf] }
 0x2ce   : > { %s1408_s24 = smov [#allocation13]   ;;  %p1918_p2 = scmp.eq.s32.totalorder %s1467_s25, 1 }
 0x2cf   : > { %s781_s17 = sshll.u32 %s1408_s24, 4  ;;  %s782_s17 = int_to_ptr.vmem [resolvable:$true] %s781_s17 }
 0x2d0   : > { %s1307_s1 = scalar_lea.vmem %s782_s17, 128  ;;  %p1314_p5 = scmp.lt.s32.totalorder %s782_s17, %s782_s17 }
 0x2d1   : > { %p1308_p12 = scmp.ne.s32.totalorder %s782_s17, %s1307_s1  ;;  %p1315_p9 = scmp.lt.s32.totalorder %s1307_s1, %s1307_s1 }
 0x2d3   : > { %p1309_p10 = pnand %p1308_p12, %p1918_p2  ;;  %p1316_p11 = por %p1315_p9, %p1314_p5 }
 0x2d5   : > { %p1310_p7 = pneg %p1309_p10 }
 0x2d7   : > { %p1317_p13 = pnand %p1316_p11, %p1310_p7 }
 0x347   : > { %v741_v6 = vpop.xlane.xlu0 %740 }
 0x348   : > { %v742_v7 = vadd.f32 %v741_v6, %v736_v5 }
 0x34a   : > { %744 = vst.msk [vmem:[#allocation13] sm:$0xf] %vm743_vm5, %v742_v7 }
 0x34b   : > { %v753_v9 = vpop.xlane.xlu0 %752 }
 0x34c   : > { %v754_v10 = vadd.f32 %v753_v9, %v746_v8 }
 0x34e   : > { %755 = vst.msk [vmem:[#allocation13 + $0x4] sm:$0xf] %vm743_vm5, %v754_v10 }
 0x34f   : > { %1320 = shalt.err (!%p1317_p13)
}
 0x350   : > { %s1321_s8 = scalar_lea.hbm %s1864_s6, 128  ;;  %p1919_p4 = pmov %p1918_p2 }
 0x351   : > { %p1322_p1 = scmp.ne.s32.totalorder %s1864_s6, %s1321_s8  ;;  %p1327_p0 = scmp.lt.u32.totalorder %s1321_s8, %s1864_s6 }
 0x353   : > { %p1323_p6 = pnand %p1322_p1, %p1919_p4 }
 0x355   : > { %p1324_p8 = pneg %p1323_p6 }
 0x357   : > { %p1329_p3 = pnand %p1327_p0, %p1324_p8 }
 0x359   : > { %1332 = shalt.err (!%p1329_p3)
}
 0x35a   : > { %s1409_s20 = smov 64   ;;  %s1410_s16 = smov 4  }
 0x35b   : > { %p1920_p12 = pmov %p1918_p2 }
 0x35d   : > { %994 = dma.vmem_to_hbm [thread:$0]  (%p1920_p12), %s782_s17, 128, %s1864_s6, [#allocation14], %s1409_s20, %s1409_s20, %s1410_s16  }
 0x35e   : > { %1366 = dma.done.wait (%p1918_p2), [#allocation14], 128   ;;  %p1921_p10 = pmov %p1918_p2 }
 0x360   : > { %1368 = vsyncadd (%p1921_p10), [#allocation14], 4294967168 }
 0x361 PF: > { %s1922_s19 = sld [smem:[#allocation22_spill]]  ;;  %s800_s26 = sand.u32 1, %s1375_s21  }
 0x362   : > { %p1923_p7 = scmp.ne.s32.totalorder %s1883_s28, 0  ;;  %s801_s11 = scalar_lea.sflag [#allocation5], %s800_s26 }
 0x367   : > { %p1924_p5 = scmp.ge.s32.totalorder %s1922_s19, 2 }
 0x369   : > { %p1016_p9 = pnand %p1924_p5, %p1923_p7 }
 0x36b   : > { %1370 = dma.done.wait (!%p1016_p9), %s801_s11, 64  }
 0x36c   : > { %1372 = vsyncadd (!%p1016_p9), %s801_s11, 4294967232  ;;  %s1925_s24 = sld [smem:[#allocation23_spill]]  ;;  %s1926_s29 = sld [smem:[#allocation21_spill]] }
 0x36d   : > { %s1927_s23 = sld [smem:[#allocation24_spill]]  ;;  %s1928_s21 = smov %s1379_s22 }
 0x372   : > { %p23_p11 = scmp.ge.s32.totalorder %s1925_s24, 4   ;;  %s1929_s22 = smov %s1926_s29 }
 0x374   :  { %25 = sbr.rel (!%p23_p11) target bundleno = 11 (0xb), region = 122 }
 0x37b   :  { %806 = vsyncpa [#allocation4], 1 }
 0x37c   :  { %808 = vsyncpa [#allocation4 + $0x1], 1 }
 0x37d   :  { %809 = vsyncpa [#allocation7], 1 }
 0x37e   :  { %810 = vsyncpa [#allocation10], 1 }
 0x37f   :  { %811 = vsyncpa [#allocation5], 1 }
 0x380   :  { %813 = vsyncpa [#allocation5 + $0x1], 1 }
 0x381   :  { %814 = vsyncpa [#allocation14], 1 }

// kernel: last_block_forward.9
= control target key start
LH: loop header
LB: loop body
LE: loop exit
PB: predicated region body
PF: predicated region fallthrough
CT: control target
= control target key end

     0   :  { %11 = vsyncpa [#allocation4], 0  ;;  %s1687_s0 = inlined_call_operand.hbm [shape: bf16[2,4,256], index: 0, kind: input, shape index: {}]   ;;  %s1688_s1 = inlined_call_operand.hbm [shape: f32[2,4,1], index: 1, kind: input, shape index: {}]   ;;  %s1689_s2 = inlined_call_operand.hbm [shape: bf16[4,72], index: 2, kind: input, shape index: {}]   ;;  %s1690_s3 = inlined_call_operand.hbm [shape: f32[4,1], index: 3, kind: input, shape index: {}]   ;;  %s1691_s4 = inlined_call_operand.hbm [shape: bf16[2,4,256], index: 4, kind: output, shape index: {0}]   ;;  %s1692_s5 = inlined_call_operand.hbm [shape: f32[2,4,1], index: 5, kind: output, shape index: {1}]  }
   0x1   :  { %13 = vsyncpa [#allocation4 + $0x1], 0 }
   0x2   :  { %14 = vsyncpa [#allocation7], 0 }
   0x3   :  { %15 = vsyncpa [#allocation10], 0 }
   0x4   :  { %16 = vsyncpa [#allocation5], 0 }
   0x5   :  { %18 = vsyncpa [#allocation5 + $0x1], 0 }
   0x6   :  { %19 = vsyncpa [#allocation13], 0  ;;  %s1307_s18 = smov 0   ;;  %s1309_s19 = smov 0  }
   0x7   :  { %s1311_s20 = smov 0   ;;  %s1313_s21 = smov 0  }
   0x8 LB: > { %s1328_s22 = sadd.s32 4294967295, %s1254_s21   ;;  %s825_s23 = sadd.s32 4294967294, %s1254_s21   ;;  %s1254_s21 = sphi %s1313_s21, %s1732_s21   ;;  %s1250_s20 = sphi %s1311_s20, %s1731_s20   ;;  %s1246_s19 = sphi %s1309_s19, %s1730_s19   ;;  %s1242_s18 = sphi %s1307_s18, %s1729_s18  }
   0x9   : > { %p45_p0 = scmp.ne.s32.totalorder %s1246_s19, %s1242_s18  ;;  %p1693_p1 = scmp.eq.s32.totalorder %s1328_s22, 0 }
   0xa   : > { %p138_p3 = scmp.eq.s32.totalorder %s825_s23, 1  ;;  %p826_p5 = scmp.ge.s32.totalorder %s1254_s21, 1 }
   0xb   : > { %p1337_p4 = por %p1693_p1, %p45_p0  ;;  %p166_p7 = scmp.lt.s32.totalorder %s1254_s21, 3 }
   0xc   : > { %p1342_p6 = por %p138_p3, %p45_p0  ;;  %s1256_s27 = smov [#allocation6]  }
   0xd   : > { %s1696_s24 = scalar_select %p1337_p4, 1, 0 }
   0xe   : > { %s1697_s25 = scalar_select %p1342_p6, 1, 0 }
   0xf   : > { %p1348_p9 = pnand %p826_p5, %p166_p7  ;;  %s178_s28 = sshll.u32 %s1256_s27, 4  ;;  %s1352_s28 = int_to_ptr.vmem [resolvable:$true] %s178_s28 }
  0x10   : > { %s1257_s30 = smov [#allocation8]   ;;  %s1258_s7 = smov [#allocation9]  }
  0x11   : > { %s1698_s26 = scalar_select %p1348_p9, 1, 0 }
  0x12   : > { %p902_p10 = pneg %p1348_p9  ;;  %s192_s6 = sshll.u32 %s1257_s30, 4  ;;  %s1363_s6 = int_to_ptr.vmem [resolvable:$true] %s192_s6 }
  0x13   : > { %s1365_s8 = sshll.u32 %s1258_s7, 4  ;;  %s1036_s11 = scalar_lea.hbm %s1688_s1, 128  ;;  %s204_s8 = int_to_ptr.vmem [resolvable:$true] %s1365_s8 }
  0x14   : > { %p1359_p12 = pnand %p902_p10, %p1693_p1  ;;  %p1037_p13 = scmp.ne.s32.totalorder %s1688_s1, %s1036_s11 }
  0x15   : > { %p1043_p7 = scmp.lt.u32.totalorder %s1036_s11, %s1688_s1 }
  0x16   : > { %p1375_p0 = pneg %p1359_p12 }
  0x18   : > { %p1039_p3 = pnand %p1375_p0, %p1037_p13 }
  0x1a   : > { %p1040_p5 = pneg %p1039_p3 }
  0x1c   : > { %p1045_p10 = pnand %p1043_p7, %p1040_p5 }
  0x1e   : > { %1048 = shalt.err (!%p1045_p10)
}
  0x1f   : > { %s1049_s17 = scalar_lea.vmem %s1352_s28, 128  ;;  %p1057_p2 = scmp.lt.s32.totalorder %s1352_s28, %s1352_s28 }
  0x20   : > { %p1050_p11 = scmp.ne.s32.totalorder %s1352_s28, %s1049_s17  ;;  %p1058_p6 = scmp.lt.s32.totalorder %s1049_s17, %s1049_s17 }
  0x22   : > { %p1052_p8 = pnand %p1050_p11, %p1375_p0  ;;  %p1059_p13 = por %p1058_p6, %p1057_p2 }
  0x24   : > { %p1053_p1 = pneg %p1052_p8 }
  0x26   : > { %p1060_p3 = pnand %p1059_p13, %p1053_p1 }
  0x28   : > { %1063 = shalt.err (!%p1060_p3)
}
  0x29   : > { %s1259_s23 = smov 64   ;;  %s1260_s27 = smov 4  }
  0x2a   : > { %905 = dma.hbm_to_vmem [thread:$0]  (!%p1359_p12), %s1688_s1, 128, %s1352_s28, [#allocation7], %s1259_s23, %s1259_s23, %s1260_s27  }
  0x2b   : > { %s1064_s11 = scalar_lea.hbm %s1689_s2, 32 }
  0x2c   : > { %p1065_p2 = scmp.ne.s32.totalorder %s1689_s2, %s1064_s11  ;;  %p1071_p8 = scmp.lt.u32.totalorder %s1064_s11, %s1689_s2 }
  0x2e   : > { %p1067_p1 = pnand %p1065_p2, %p1375_p0 }
  0x30   : > { %p1068_p6 = pneg %p1067_p1 }
  0x32   : > { %p1073_p11 = pnand %p1071_p8, %p1068_p6 }
  0x34   : > { %1076 = shalt.err (!%p1073_p11)
}
  0x35   : > { %s1077_s28 = scalar_lea.vmem %s1363_s6, 32  ;;  %p1085_p13 = scmp.lt.s32.totalorder %s1363_s6, %s1363_s6 }
  0x36   : > { %p1078_p5 = scmp.ne.s32.totalorder %s1363_s6, %s1077_s28  ;;  %p1086_p3 = scmp.lt.s32.totalorder %s1077_s28, %s1077_s28 }
  0x38   : > { %p1080_p7 = pnand %p1078_p5, %p1375_p0  ;;  %p1087_p2 = por %p1086_p3, %p1085_p13 }
  0x3a   : > { %p1081_p10 = pneg %p1080_p7 }
  0x3c   : > { %p1088_p1 = pnand %p1087_p2, %p1081_p10 }
  0x3e   : > { %1091 = shalt.err (!%p1088_p1)
}
  0x3f   : > { %908 = dma.hbm_to_vmem [thread:$0]  (!%p1359_p12), %s1689_s2, 32, %s1363_s6, [#allocation7]  }
  0x40   : > { %s1092_s7 = scalar_lea.hbm %s1690_s3, 64 }
  0x41   : > { %p1093_p6 = scmp.ne.s32.totalorder %s1690_s3, %s1092_s7  ;;  %p1099_p5 = scmp.lt.u32.totalorder %s1092_s7, %s1690_s3 }
  0x43   : > { %p1095_p8 = pnand %p1093_p6, %p1375_p0 }
  0x45   : > { %p1096_p11 = pneg %p1095_p8 }
  0x47   : > { %p1101_p7 = pnand %p1099_p5, %p1096_p11 }
  0x49   : > { %1104 = shalt.err (!%p1101_p7)
}
  0x4a   : > { %s1105_s13 = scalar_lea.vmem %s204_s8, 64  ;;  %p1113_p2 = scmp.lt.s32.totalorder %s204_s8, %s204_s8 }
  0x4b   : > { %p1106_p10 = scmp.ne.s32.totalorder %s204_s8, %s1105_s13  ;;  %p1114_p1 = scmp.lt.s32.totalorder %s1105_s13, %s1105_s13 }
  0x4d   : > { %p1108_p13 = pnand %p1106_p10, %p1375_p0  ;;  %p1115_p4 = por %p1114_p1, %p1113_p2 }
  0x4f   : > { %p1109_p3 = pneg %p1108_p13 }
  0x51   : > { %p1116_p9 = pnand %p1115_p4, %p1109_p3 }
  0x53   : > { %1119 = shalt.err (!%p1116_p9)
}
  0x54   : > { %911 = dma.hbm_to_vmem [thread:$0]  (!%p1359_p12), %s1690_s3, 64, %s204_s8, [#allocation10]  }
  0x55   : > { %s1439_s14 = sadd.s32 1, %s1254_s21   ;;  %s32_s29 = sadd.s32 1, %s1250_s20 }
  0x56   : > { %s29_s16 = ssub.s32 %s1254_s21, %s1439_s14  ;;  %p39_p9 = scmp.ne.s32.totalorder %s1250_s20, %s1246_s19 }
  0x57   : > { %p30_p4 = scmp.eq.s32.totalorder %s29_s16, 0  ;;  %p40_p0 = scmp.eq.s32.totalorder %s1254_s21, 0 }
  0x58   : > { %p923_p6 = scmp.lt.s32.totalorder %s1254_s21, 2  ;;  %p1701_p11 = scmp.eq.s32.totalorder %s1328_s22, 1 }
  0x59   : > { %s1449_s28 = scalar_select %p30_p4, %s1250_s20, %s32_s29  }
  0x5a   : > { %p41_p8 = por %p40_p0, %p39_p9  ;;  %p1453_p5 = por %p1701_p11, %p39_p9 }
  0x5b   : > { %s214_s23 = sand.u32 1, %s1250_s20   ;;  %s871_s27 = sshll.u32 %s1254_s21, 6 }
  0x5c   : > { %s831_s8 = sshll.u32 %s214_s23, 2  ;;  %s1462_s9 = scalar_lea.hbm %s1687_s0, %s871_s27 }
  0x5d   : > { %s218_s10 = scalar_lea.vmem [#allocation3], %s831_s8  ;;  %p1464_p12 = pnand %p923_p6, %p41_p8 }
  0x5e   : > { %s226_s11 = sshll.u32 %s218_s10, 4  ;;  %s215_s13 = scalar_lea.sflag [#allocation4], %s214_s23  ;;  %s1468_s11 = int_to_ptr.vmem [resolvable:$true] %s226_s11 }
  0x5f   : > { %s1120_s6 = scalar_lea.hbm %s1462_s9, 64  ;;  %p1122_p10 = pneg %p1464_p12 }
  0x60   : > { %p1121_p7 = scmp.ne.s32.totalorder %s1462_s9, %s1120_s6  ;;  %s1125_s29 = scalar_lea.hbm %s1687_s0, 128 }
  0x61   : > { %p1126_p2 = scmp.lt.u32.totalorder %s1462_s9, %s1687_s0  ;;  %p1127_p1 = scmp.lt.u32.totalorder %s1125_s29, %s1120_s6 }
  0x62   : > { %p1123_p13 = pnand %p1122_p10, %p1121_p7  ;;  %p1129_p9 = scmp.lt.u32.totalorder %s1120_s6, %s1462_s9 }
  0x63   : > { %p1128_p4 = por %p1127_p1, %p1126_p2 }
  0x64   : > { %p1124_p3 = pneg %p1123_p13 }
  0x65   : > { %p1130_p0 = por %p1129_p9, %p1128_p4 }
  0x67   : > { %p1131_p6 = pnand %p1130_p0, %p1124_p3 }
  0x69   : > { %1134 = shalt.err (!%p1131_p6)
}
  0x6a   : > { %s1135_s23 = scalar_lea.vmem %s1468_s11, 64  ;;  %s1261_s30 = smov [#allocation3]  }
  0x6b   : > { %p1136_p8 = scmp.ne.s32.totalorder %s1468_s11, %s1135_s23  ;;  %s1140_s7 = sshll.u32 %s1261_s30, 4  ;;  %s1141_s7 = int_to_ptr.vmem [resolvable:$false] %s1140_s7 }
  0x6c   : > { %s1142_s10 = scalar_lea.vmem %s1141_s7, 128  ;;  %p1143_p13 = scmp.lt.s32.totalorder %s1468_s11, %s1141_s7 }
  0x6d   : > { %p1138_p11 = pnand %p1136_p8, %p1122_p10  ;;  %p1144_p2 = scmp.lt.s32.totalorder %s1142_s10, %s1135_s23 }
  0x6f   : > { %p1139_p7 = pneg %p1138_p11  ;;  %p1145_p1 = por %p1144_p2, %p1143_p13 }
  0x71   : > { %p1146_p4 = pnand %p1145_p1, %p1139_p7 }
  0x73   : > { %1149 = shalt.err (!%p1146_p4)
}
  0x74   : > { %915 = dma.hbm_to_vmem [thread:$0]  (!%p1464_p12), %s1462_s9, 64, %s1468_s11, %s215_s13  }
  0x75   : > { %p1704_p3 = scmp.ne.s32.totalorder %s1698_s26, 0 }
  0x76   : > { %s1498_s6 = sand.u32 (!%p1704_p3), 1, %s1246_s19   ;;  %p1705_p10 = scmp.ne.s32.totalorder (!%p1704_p3), %s1696_s24, 0 }
  0x77   : > { %235 = sbr.rel (%p1704_p3) target bundleno = 822 (0x336), region = 36  ;;  %s835_s15 = sshll.u32 (!%p1704_p3), %s1498_s6, 2 }
  0x78   : > { %s238_s16 = scalar_lea.sflag (!%p1704_p3), [#allocation4], %s1498_s6  ;;  %s241_s29 = scalar_lea.vmem (!%p1704_p3), [#allocation3], %s835_s15 }
  0x7e   : > { %1221 = dma.done.wait (%p1705_p10), %s238_s16, 64  }
  0x7f   : > { %1223 = vsyncadd (%p1705_p10), %s238_s16, 4294967232  ;;  %p1706_p12 = scmp.eq.s32.totalorder %s1328_s22, 0 }
  0x81   : > { %1225 = dma.done.wait (%p1706_p12), [#allocation7], 160   ;;  %p1707_p9 = pmov %p1706_p12 }
  0x83   : > { %1227 = vsyncadd (%p1707_p9), [#allocation7], 4294967136  ;;  %p1708_p0 = pmov %p1707_p9 }
  0x85   : > { %1229 = dma.done.wait (%p1708_p0), [#allocation10], 64   ;;  %p1709_p6 = pmov %p1708_p0 }
  0x86   : > { %v1262_v0 = vmov 0   ;;  %v283_v1 = vld [vmem:[#allocation6] sm:$0xf]  ;;  %v298_v2 = vld [vmem:[#allocation6 + $0x4] sm:$0xf]  ;;  %v291_v5 = vlaneseq  ;;  %s1264_s24 = smov 15  }
  0x87   : > { %1231 = vsyncadd (%p1709_p6), [#allocation10], 4294967232  ;;  %981 = vset.pattern.permute.xlu0 %v1262_v0  ;;  %318 = vst [vmem:[#allocation2] sm:$0xcc] %v1262_v0  ;;  %635 = vmatprep.mubr.bf16.mxu0 %v1262_v0  ;;  %v1263_v3 = vmov 839922192  }
  0x88   : > { %319 = vst [vmem:[#allocation2 + $0x8] sm:$0xcc] %v1262_v0  ;;  %320 = vst [vmem:[#allocation2 + $0x10] sm:$0xcc] %v1262_v0  ;;  %286 = vperm.xlu0 %981, %v283_v1   ;;  %v289_v4 = vunpack.c.l.s4 %v1263_v3  ;;  %v292_v7 = vshrl.u32 %v291_v5, 7  ;;  %s1265_s26 = smov 17  }
  0x89   : > { %321 = vst [vmem:[#allocation2 + $0x18] sm:$0xcc] %v1262_v0  ;;  %322 = vst [vmem:[#allocation2 + $0x20] sm:$0xcc] %v1262_v0  ;;  %v281_v9 = vld [vmem:[%s241_s29] sm:$0xf] }
  0x8a   : > { %323 = vst [vmem:[#allocation2 + $0x28] sm:$0xcc] %v1262_v0  ;;  %324 = vst [vmem:[#allocation2 + $0x30] sm:$0xcc] %v1262_v0  ;;  %v290_v6 = vunpack.c.0.s8 %v289_v4  ;;  %v282_v11 = vunpack.c.l.bf16 %v281_v9  ;;  %s1266_s9 = smov 127   ;;  %s1267_s11 = smov 16  }
  0x8b   : > { %325 = vst [vmem:[#allocation2 + $0x38] sm:$0xcc] %v1262_v0  ;;  %326 = vst [vmem:[#allocation2 + $0x40] sm:$0xcc] %v1262_v0  ;;  %s1268_s12 = smov 112   ;;  %s1269_s13 = smov 1  }
  0x8c   : > { %301 = vperm.xlu0 %981, %v298_v2   ;;  %v293_v8 = vsub.s32 %v290_v6, %v292_v7  ;;  %v541_v21 = vld [vmem:[#allocation9] sm:$0xf]  ;;  %s1270_s27 = smov 113   ;;  %s1271_s8 = smov 111   ;;  %v1516_v22 = vand.u32 127, %v291_v5 }
  0x8d   : > { %s277_s23 = scalar_lea.vmem [#allocation11], %s835_s15  ;;  %p1722_p8 = scmp.ne.s32.totalorder %s1328_s22, 0 }
  0x8e   : > { %v1519_v23 = vadd.s32 128, %v1516_v22  ;;  %v316_v24 = vand.u32 15, %v1516_v22  ;;  %vm337_vm0 = vcmp.ge.s32.totalorder %v1516_v22, 16  ;;  %vm384_vm3 = vcmp.lt.s32.totalorder %v1516_v22, 15 }
  0x8f   : > { %vm334_vm6 = vcmp.lt.s32.totalorder %v1516_v22, 17  ;;  %vm441_vm9 = vcmp.lt.s32.totalorder %v1516_v22, 127  ;;  %vm362_vm10 = vcmp.lt.s32.totalorder %v1516_v22, 16  ;;  %vm489_vm11 = vcmp.lt.s32.totalorder %v1516_v22, 112 }
  0x90   : > { %v317_v25 = vand.u32 15, %v1519_v23  ;;  %vm1524_vm1 = vcmp.lt.s32.totalorder %v316_v24, 15  ;;  %vm1528_vm2 = vcmp.ge.s32.totalorder %v316_v24, 1  ;;  %vm467_vm12 = vcmp.lt.s32.totalorder %v1519_v23, 240 }
  0x91   : > { %vm1541_vm5 = vmand %vm337_vm0, %vm1524_vm1  ;;  %vm410_vm13 = vcmp.lt.s32.totalorder %v1516_v22, 1  ;;  %vm463_vm14 = vcmp.lt.s32.totalorder %v1516_v22, 113 }
  0x92   : > { %vm1533_vm4 = vcmp.lt.s32.totalorder %v317_v25, 15  ;;  %vm1546_vm7 = vcmp.ge.s32.totalorder %v317_v25, 1  ;;  %vm1554_vm8 = vmand %vm337_vm0, %vm1528_vm2 }
  0x93   : > { %vm469_vm15 = vmand %vm467_vm12, %vm1546_vm7 }
 0x107   : > { %v287_v10 = vpop.permute.xlu0 %286 }
 0x108   : > { %v294_v12 = vrot.slane %v287_v10, %v293_v8 }
 0x10a   : > { %v296_v14 = vmul.f32 %v294_v12, %v282_v11 }
 0x10b   : > { %v302_v13 = vpop.permute.xlu0 %301 }
 0x10c   : > { %v309_v15 = vrot.slane %v302_v13, %v293_v8 }
 0x10e   : > { %v311_v16 = vadd.f32 %v309_v15, %v296_v14 }
 0x110   : > { %v312_v17 = vmax.f32 %v311_v16, 0.0 }
 0x112   : > { %v328_v18 = vcombine.high %v312_v17, %v312_v17 }
 0x114   : > { %v992_v19 = vpack.i.bf16 %v328_v18, %v312_v17  ;;  %v876_v20 = vpack.c.bf16 %v328_v18, %v312_v17 }
 0x116   : > { %993 = vrot.lane.b32.xlu0 %v992_v19, %s1264_s24  ;;  %983 = vrot.lane.b32.xlu1 %v992_v19, %s1265_s26  ;;  %436 = vst [vmem:[#allocation2 + $0x20] sm:$0x33] %v876_v20 }
 0x11a   : > { %1003 = vrot.lane.b32.xlu0 %v992_v19, %s1266_s9  ;;  %988 = vrot.lane.b32.xlu1 %v992_v19, %s1267_s11 }
 0x11e   : > { %1013 = vrot.lane.b32.xlu0 %v992_v19, %s1268_s12  ;;  %998 = vrot.lane.b32.xlu1 %v992_v19, %s1269_s13 }
 0x122   : > { %544 = vperm.xlu0 %981, %v541_v21   ;;  %1008 = vrot.lane.b32.xlu1 %v992_v19, %s1270_s27 }
 0x126   : > { %1018 = vrot.lane.b32.xlu1 %v992_v19, %s1271_s8 }
 0x188   : > { %v994_v30 = vpop.permute.xlu0 %993  ;;  %v984_v32 = vpop.permute.xlu1 %983 }
 0x189   : > { %v996_v33 = vunpack.i.h.bf16 %v994_v30  ;;  %v995_v34 = vunpack.i.l.bf16 %v994_v30  ;;  %v986_v36 = vunpack.i.h.bf16 %v984_v32  ;;  %v985_v37 = vunpack.i.l.bf16 %v984_v32 }
 0x18b   : > { %v385_v38 = vsel %vm384_vm3, %v995_v34, %v996_v33  ;;  %v386_v39 = vsel %vm384_vm3, %v996_v33, %v995_v34  ;;  %v335_v40 = vsel %vm334_vm6, %v985_v37, %v986_v36  ;;  %v336_v41 = vsel %vm334_vm6, %v986_v36, %v985_v37  ;;  %vm515_vm3 = vmand %vm467_vm12, %vm1533_vm4 }
 0x18c   : > { %v395_v42 = vsel %vm1541_vm5, %v386_v39, 0.0  ;;  %v396_v43 = vsel %vm1533_vm4, %v385_v38, 0.0  ;;  %v347_v44 = vsel %vm1554_vm8, %v336_v41, 0.0  ;;  %v348_v45 = vsel %vm1546_vm7, %v335_v40, 0.0  ;;  %v1004_v46 = vpop.permute.xlu0 %1003  ;;  %v989_v47 = vpop.permute.xlu1 %988 }
 0x18d   : > { %v874_v48 = vpack.c.bf16 %v396_v43, %v395_v42  ;;  %v872_v49 = vpack.c.bf16 %v348_v45, %v347_v44  ;;  %v1006_v50 = vunpack.i.h.bf16 %v1004_v46  ;;  %v1005_v51 = vunpack.i.l.bf16 %v1004_v46  ;;  %v531_v42 = vld [vmem:[#allocation8] sm:$0x3] }
 0x18e   : > { %v991_v52 = vunpack.i.h.bf16 %v989_v47  ;;  %v990_v53 = vunpack.i.l.bf16 %v989_v47 }
 0x18f   : > { %405 = vst [vmem:[#allocation2 + $0x10] sm:$0x33] %v874_v48  ;;  %357 = vst [vmem:[#allocation2] sm:$0x33] %v872_v49  ;;  %v442_v54 = vsel %vm441_vm9, %v1005_v51, %v1006_v50  ;;  %v443_v55 = vsel %vm441_vm9, %v1006_v50, %v1005_v51 }
 0x190   : > { %v448_v56 = vsel %vm1524_vm1, %v442_v54, 0.0  ;;  %v449_v57 = vsel %vm1533_vm4, %v443_v55, 0.0  ;;  %v363_v58 = vsel %vm362_vm10, %v990_v53, %v991_v52  ;;  %v364_v59 = vsel %vm362_vm10, %v991_v52, %v990_v53  ;;  %v1014_v60 = vpop.permute.xlu0 %1013  ;;  %v999_v61 = vpop.permute.xlu1 %998 }
 0x191   : > { %v877_v62 = vpack.c.bf16 %v449_v57, %v448_v56  ;;  %v369_v63 = vsel %vm337_vm0, %v364_v59, 0.0  ;;  %v1016_v0 = vunpack.i.h.bf16 %v1014_v60  ;;  %v1015_v1 = vunpack.i.l.bf16 %v1014_v60 }
 0x192   : > { %v873_v2 = vpack.c.bf16 %v363_v58, %v369_v63  ;;  %v1001_v3 = vunpack.i.h.bf16 %v999_v61  ;;  %v1000_v4 = vunpack.i.l.bf16 %v999_v61  ;;  %vm511_vm0 = vcmp.lt.s32.totalorder %v1516_v22, 111 }
 0x193   : > { %458 = vst [vmem:[#allocation2 + $0x28] sm:$0x33] %v877_v62  ;;  %v490_v5 = vsel %vm489_vm11, %v1015_v1, %v1016_v0  ;;  %v491_v6 = vsel %vm489_vm11, %v1016_v0, %v1015_v1  ;;  %vm662_vm4 = vcmask (!%p1722_p8), 3072   ;;  %v1272_v53 = vmov (!%p1722_p8), 0.0  }
 0x194   : > { %379 = vst [vmem:[#allocation2 + $0x8] sm:$0x33] %v873_v2  ;;  %v497_v7 = vsel %vm467_vm12, %v491_v6, 0.0  ;;  %v411_v8 = vsel %vm410_vm13, %v1000_v4, %v1001_v3  ;;  %v412_v9 = vsel %vm410_vm13, %v1001_v3, %v1000_v4  ;;  %v1009_v10 = vpop.permute.xlu1 %1008  ;;  %663 = vst.msk [vmem:[#allocation12] sm:$0xf] (!%p1722_p8), %vm662_vm4, %v1272_v53 }
 0x195   : > { %v879_v11 = vpack.c.bf16 %v497_v7, %v490_v5  ;;  %v417_v12 = vsel %vm1528_vm2, %v412_v9, 0.0  ;;  %v418_v13 = vsel %vm1546_vm7, %v411_v8, 0.0  ;;  %v1011_v14 = vunpack.i.h.bf16 %v1009_v10  ;;  %664 = vst.msk [vmem:[#allocation12 + $0x4] sm:$0xf] (!%p1722_p8), %vm662_vm4, %v1272_v53 }
 0x196   : > { %v875_v15 = vpack.c.bf16 %v418_v13, %v417_v12  ;;  %v1010_v16 = vunpack.i.l.bf16 %v1009_v10 }
 0x197   : > { %506 = vst [vmem:[#allocation2 + $0x38] sm:$0x33] %v879_v11 }
 0x198   : > { %427 = vst [vmem:[#allocation2 + $0x18] sm:$0x33] %v875_v15  ;;  %v464_v17 = vsel %vm463_vm14, %v1010_v16, %v1011_v14  ;;  %v465_v18 = vsel %vm463_vm14, %v1011_v14, %v1010_v16  ;;  %v1019_v19 = vpop.permute.xlu1 %1018 }
 0x199   : > { %v474_v20 = vsel %vm1528_vm2, %v464_v17, 0.0  ;;  %v475_v21 = vsel %vm469_vm15, %v465_v18, 0.0  ;;  %v1021_v24 = vunpack.i.h.bf16 %v1019_v19  ;;  %v1020_v25 = vunpack.i.l.bf16 %v1019_v19 }
 0x19a   : > { %v878_v29 = vpack.c.bf16 %v475_v21, %v474_v20  ;;  %v1028_v23 = vld [vmem:[#allocation2 + $0x24] ss:$8 sps:$4 sm:$0xff]   ;;  %v1030_v36 = vld [vmem:[#allocation2 + $0x20] ss:$8 sps:$4 sm:$0xff]   ;;  %vm596_vm2 = vcmask 1043456  }
 0x19b   : > { %v512_v30 = vsel %vm511_vm0, %v1020_v25, %v1021_v24  ;;  %v513_v31 = vsel %vm511_vm0, %v1021_v24, %v1020_v25  ;;  %v1022_v32 = vld [vmem:[#allocation2 + $0x4] ss:$8 sps:$4 sm:$0xff]   ;;  %v1024_v33 = vld [vmem:[#allocation2] ss:$8 sps:$4 sm:$0xff]  }
 0x19c   : > { %484 = vst [vmem:[#allocation2 + $0x30] sm:$0x33] %v878_v29  ;;  %v520_v22 = vsel %vm1524_vm1, %v512_v30, 0.0  ;;  %v521_v34 = vsel %vm515_vm3, %v513_v31, 0.0  ;;  %603 = vmatprep.subr.bf16.mxu0 %v1022_v32  ;;  %vm592_vm1 = vcmask 588800  }
 0x19d   : > { %v880_v27 = vpack.c.bf16 %v521_v34, %v520_v22  ;;  %604 = vmatpush1.bf16.msra.mxu0 %v1024_v33 }
 0x19f   : > { %530 = vst [vmem:[#allocation2 + $0x40] sm:$0x33] %v880_v27  ;;  %v1025_v28 = vld [vmem:[#allocation2 + $0x14] ss:$8 sps:$4 sm:$0xff]   ;;  %v1027_v35 = vld [vmem:[#allocation2 + $0x10] ss:$8 sps:$4 sm:$0xff]  }
 0x1a0   : > { %605 = vmatprep.subr.bf16.mxu0 %v1025_v28 }
 0x1a1   : > { %606 = vmatpush1.bf16.msra.mxu0 %v1027_v35  ;;  %v545_v43 = vpop.permute.xlu0 %544 }
 0x1a2   : > { %607 = vmatprep.subr.bf16.mxu0 %v1028_v23 }
 0x1a3   : > { %v1031_v37 = vld [vmem:[#allocation2 + $0x34] ss:$8 sps:$4 sm:$0xff]   ;;  %v1033_v40 = vld [vmem:[#allocation2 + $0x30] ss:$8 sps:$4 sm:$0xff]  }
 0x1a5   : > { %608 = vmatpush1.bf16.msra.mxu0 %v1030_v36 }
 0x1a6   : > { %v540_v38 = vld [vmem:[#allocation2 + $0x40] sm:$0xff]  ;;  %609 = vmatprep.subr.bf16.mxu0 %v1031_v37 }
 0x1a7   : > { %v858_v39 = vcombine.high %v540_v38, %v540_v38  ;;  %v857_v26 = vcombine.low %v540_v38, %v540_v38 }
 0x1a9   : > { %610 = vmatpush1.bf16.msra.mxu0 %v1033_v40  ;;  %v598_v41 = vsel %vm596_vm2, %v857_v26, 0 }
 0x1aa   : > { %859 = vmatprep.subr.msk.bf16.mxu0 %vm596_vm2, %v858_v39 }
 0x1ad   : > { %612 = vmatpush1.bf16.msra.mxu0 %v598_v41 }
 0x1b0   : > { %860 = vmatmul.mubr.msk.bf16.vlgmr.msra.gmra.mrb[0].mxu0 %vm592_vm1, %v531_v42 }
 0x283   : > { %v637_v44 = vpop.f32.mrb[0].mxu0  ;;  %661 = sbr.rel (%p1722_p8) target bundleno = 650 (0x28a), region = 56 }
 0x284   : > { %v638_v45 = vadd.f32 %v637_v44, %v545_v43  ;;  %v639_v46 = vpop.f32.mrb[1].mxu0 }
 0x285   : > { %v640_v47 = vadd.f32 %v639_v46, %v545_v43  ;;  %v641_v48 = vpop.f32.mrb[2].mxu0 }
 0x286   : > { %v644_v49 = vpack.c.bf16 %v638_v45, %v638_v45  ;;  %v642_v50 = vpop.f32.mrb[3].mxu0 }
 0x287   : > { %v645_v51 = vpack.c.bf16 %v640_v47, %v640_v47  ;;  %v861_v52 = vpack.c.bf16 %v640_v47, %v638_v45 }
 0x289   : > { %862 = vst.sshfl [vmem:[%s277_s23] sm:$0x33 pattern:$0x76325410] %v861_v52 }
 0x28a PF: > { %v665_v54 = vunpack.c.l.bf16 %v644_v49  ;;  %v666_v55 = vunpack.c.l.bf16 %v645_v51  ;;  %s881_s30 = sshll.u32 %s1328_s22, 6  ;;  %s702_s7 = sshll.u32 %s277_s23, 4  ;;  %s703_s7 = int_to_ptr.vmem [resolvable:$true] %s702_s7 }
 0x28b   : > { %s1627_s16 = scalar_lea.hbm %s1691_s4, %s881_s30  ;;  %s688_s29 = scalar_lea.sflag [#allocation5], %s1498_s6 }
 0x28c   : > { %v668_v56 = vsel %vm596_vm2, %v665_v54, 0.0  ;;  %v669_v57 = vsel %vm596_vm2, %v666_v55, 0.0  ;;  %v678_v58 = vmul.f32 %v665_v54, %v665_v54  ;;  %v679_v59 = vmul.f32 %v666_v55, %v666_v55  ;;  %s1150_s24 = scalar_lea.vmem %s703_s7, 64  ;;  %s1273_s26 = smov [#allocation11]  }
 0x28d   : > { %v670_v60 = vadd.f32 %v669_v57, %v668_v56  ;;  %p1151_p11 = scmp.ne.s32.totalorder %s703_s7, %s1150_s24  ;;  %s1154_s9 = sshll.u32 %s1273_s26, 4  ;;  %s1155_s9 = int_to_ptr.vmem [resolvable:$false] %s1154_s9 }
 0x28e   : > { %v680_v61 = vsel %vm596_vm2, %v678_v58, 0.0  ;;  %v681_v62 = vsel %vm596_vm2, %v679_v59, 0.0  ;;  %s1156_s11 = scalar_lea.vmem %s1155_s9, 128  ;;  %p1157_p2 = scmp.lt.s32.totalorder %s703_s7, %s1155_s9 }
 0x28f   : > { %671 = vadd.xlane.f32.xlu0 %v670_v60  ;;  %v682_v63 = vadd.f32 %v681_v62, %v680_v61  ;;  %p1152_p7 = pnand %p1151_p11, %p1453_p5  ;;  %p1158_p1 = scmp.lt.s32.totalorder %s1156_s11, %s1150_s24 }
 0x291   : > { %p1153_p13 = pneg %p1152_p7  ;;  %p1159_p4 = por %p1158_p1, %p1157_p2 }
 0x293   : > { %683 = vadd.xlane.f32.xlu0 %v682_v63  ;;  %p1160_p3 = pnand %p1159_p4, %p1153_p13 }
 0x295   : > { %1163 = shalt.err (!%p1160_p3)
}
 0x296   : > { %s1164_s6 = scalar_lea.hbm %s1627_s16, 64  ;;  %s1168_s27 = scalar_lea.hbm %s1691_s4, 128 }
 0x297   : > { %p1165_p10 = scmp.ne.s32.totalorder %s1627_s16, %s1164_s6  ;;  %p1169_p0 = scmp.lt.u32.totalorder %s1627_s16, %s1691_s4 }
 0x298   : > { %p1170_p6 = scmp.lt.u32.totalorder %s1168_s27, %s1164_s6  ;;  %p1172_p11 = scmp.lt.u32.totalorder %s1164_s6, %s1627_s16 }
 0x299   : > { %p1166_p12 = pnand %p1165_p10, %p1453_p5 }
 0x29a   : > { %p1171_p8 = por %p1170_p6, %p1169_p0 }
 0x29b   : > { %p1167_p9 = pneg %p1166_p12 }
 0x29c   : > { %p1173_p7 = por %p1172_p11, %p1171_p8 }
 0x29e   : > { %p1174_p13 = pnand %p1173_p7, %p1167_p9 }
 0x2a0   : > { %1177 = shalt.err (!%p1174_p13)
}
 0x2a1   : > { %896 = dma.vmem_to_hbm [thread:$0]  (%p1453_p5), %s703_s7, 64, %s1627_s16, %s688_s29   ;;  %v667_v0 = vld [vmem:[#allocation12] sm:$0xf]  ;;  %vm674_vm5 = vcmask 3072   ;;  %v677_v3 = vld [vmem:[#allocation12 + $0x4] sm:$0xf] }
 0x2a2   : > { %s1274_s30 = smov [#allocation12]   ;;  %p1723_p1 = scmp.eq.s32.totalorder %s1328_s22, 1 }
 0x2a3   : > { %s712_s10 = sshll.u32 %s1274_s30, 4  ;;  %s713_s10 = int_to_ptr.vmem [resolvable:$true] %s712_s10 }
 0x2a4   : > { %s1178_s15 = scalar_lea.vmem %s713_s10, 128  ;;  %p1185_p10 = scmp.lt.s32.totalorder %s713_s10, %s713_s10 }
 0x2a5   : > { %p1179_p2 = scmp.ne.s32.totalorder %s713_s10, %s1178_s15  ;;  %p1186_p12 = scmp.lt.s32.totalorder %s1178_s15, %s1178_s15 }
 0x2a7   : > { %p1180_p4 = pnand %p1179_p2, %p1723_p1  ;;  %p1187_p5 = por %p1186_p12, %p1185_p10 }
 0x2a9   : > { %p1181_p3 = pneg %p1180_p4 }
 0x2ab   : > { %p1188_p9 = pnand %p1187_p5, %p1181_p3 }
 0x31c   : > { %v672_v1 = vpop.xlane.xlu0 %671 }
 0x31d   : > { %v673_v2 = vadd.f32 %v672_v1, %v667_v0 }
 0x31f   : > { %675 = vst.msk [vmem:[#allocation12] sm:$0xf] %vm674_vm5, %v673_v2 }
 0x320   : > { %v684_v4 = vpop.xlane.xlu0 %683 }
 0x321   : > { %v685_v5 = vadd.f32 %v684_v4, %v677_v3 }
 0x323   : > { %686 = vst.msk [vmem:[#allocation12 + $0x4] sm:$0xf] %vm674_vm5, %v685_v5 }
 0x324   : > { %1191 = shalt.err (!%p1188_p9)
}
 0x325   : > { %s1192_s16 = scalar_lea.hbm %s1692_s5, 128  ;;  %p1724_p6 = pmov %p1723_p1 }
 0x326   : > { %p1193_p0 = scmp.ne.s32.totalorder %s1692_s5, %s1192_s16  ;;  %p1198_p7 = scmp.lt.u32.totalorder %s1192_s16, %s1692_s5 }
 0x328   : > { %p1194_p8 = pnand %p1193_p0, %p1724_p6 }
 0x32a   : > { %p1195_p11 = pneg %p1194_p8 }
 0x32c   : > { %p1200_p13 = pnand %p1198_p7, %p1195_p11 }
 0x32e   : > { %1203 = shalt.err (!%p1200_p13)
}
 0x32f   : > { %s1275_s11 = smov 64   ;;  %s1276_s6 = smov 4  }
 0x330   : > { %p1725_p2 = pmov %p1723_p1 }
 0x332   : > { %898 = dma.vmem_to_hbm [thread:$0]  (%p1725_p2), %s713_s10, 128, %s1692_s5, [#allocation13], %s1275_s11, %s1275_s11, %s1276_s6  }
 0x333   : > { %1233 = dma.done.wait (%p1723_p1), [#allocation13], 128   ;;  %p1726_p4 = pmov %p1723_p1 }
 0x335   : > { %1235 = vsyncadd (%p1726_p4), [#allocation13], 4294967168 }
 0x336 PF: > { %s731_s27 = sand.u32 1, %s1242_s18   ;;  %p1727_p3 = scmp.ne.s32.totalorder %s1697_s25, 0 }
 0x337   : > { %p1728_p10 = scmp.ge.s32.totalorder %s1254_s21, 2  ;;  %s732_s8 = scalar_lea.sflag [#allocation5], %s731_s27 }
 0x339   : > { %p917_p12 = pnand %p1728_p10, %p1727_p3 }
 0x33b   : > { %1237 = dma.done.wait (!%p917_p12), %s732_s8, 64  }
 0x33c   : > { %1239 = vsyncadd (!%p917_p12), %s732_s8, 4294967232  ;;  %p22_p5 = scmp.ge.s32.totalorder %s1439_s14, 4   ;;  %s1729_s18 = smov %s1246_s19 }
 0x33d   : > { %s1730_s19 = smov %s1250_s20  ;;  %s1731_s20 = smov %s1449_s28 }
 0x33e   : > { %s1732_s21 = smov %s1439_s14  ;;  %24 = sbr.rel (!%p22_p5) target bundleno = 8 (0x8), region = 107 }
 0x345   :  { %737 = vsyncpa [#allocation4], 1 }
 0x346   :  { %739 = vsyncpa [#allocation4 + $0x1], 1 }
 0x347   :  { %740 = vsyncpa [#allocation7], 1 }
 0x348   :  { %741 = vsyncpa [#allocation10], 1 }
 0x349   :  { %742 = vsyncpa [#allocation5], 1 }
 0x34a   :  { %744 = vsyncpa [#allocation5 + $0x1], 1 }
 0x34b   :  { %745 = vsyncpa [#allocation13], 1 }

// kernel: last_block_forward.12
= control target key start
LH: loop header
LB: loop body
LE: loop exit
PB: predicated region body
PF: predicated region fallthrough
CT: control target
= control target key end

     0   :  { %s1702_s0 = inlined_call_operand.hbm [shape: bf16[2,4,256], index: 0, kind: input, shape index: {}]   ;;  %s1703_s1 = inlined_call_operand.hbm [shape: f32[2,4,1], index: 1, kind: input, shape index: {}]   ;;  %s1704_s2 = inlined_call_operand.hbm [shape: bf16[4,72], index: 2, kind: input, shape index: {}]   ;;  %s1705_s3 = inlined_call_operand.hbm [shape: f32[4,1], index: 3, kind: input, shape index: {}]   ;;  %s1706_s4 = inlined_call_operand.hbm [shape: bf16[2,4,256], index: 4, kind: input, shape index: {}]   ;;  %s1707_s5 = inlined_call_operand.hbm [shape: bf16[2,4,256], index: 5, kind: output, shape index: {}]  }
   0x1   :  { %1720 = sst [smem:[#allocation21_spill]] %s1702_s0 }
   0x2   :  { %1721 = sst [smem:[#allocation22_spill]] %s1703_s1 }
   0x3   :  { %10 = vsyncpa [#allocation4], 0 }
   0x4   :  { %12 = vsyncpa [#allocation4 + $0x1], 0 }
   0x5   :  { %13 = vsyncpa [#allocation7], 0 }
   0x6   :  { %14 = vsyncpa [#allocation10], 0 }
   0x7   :  { %15 = vsyncpa [#allocation5], 0 }
   0x8   :  { %17 = vsyncpa [#allocation5 + $0x1], 0  ;;  %s1315_s18 = smov 0   ;;  %s1317_s19 = smov 0  }
   0x9   :  { %s1319_s20 = smov 0   ;;  %s1321_s21 = smov 0  }
   0xa LB: > { %1722 = sst [smem:[#allocation18_spill]] %s1261_s20  ;;  %s1336_s22 = sadd.s32 4294967295, %s1265_s21   ;;  %s1265_s21 = sphi %s1321_s21, %s1760_s21   ;;  %s1261_s20 = sphi %s1319_s20, %s1762_s20   ;;  %s1257_s19 = sphi %s1317_s19, %s1764_s19   ;;  %s1253_s18 = sphi %s1315_s18, %s1763_s18  }
   0xb   : > { %s835_s23 = sadd.s32 4294967294, %s1265_s21   ;;  %p43_p0 = scmp.ne.s32.totalorder %s1257_s19, %s1253_s18 }
   0xc   : > { %p1708_p1 = scmp.eq.s32.totalorder %s1336_s22, 0  ;;  %p162_p3 = scmp.eq.s32.totalorder %s835_s23, 1 }
   0xd   : > { %p836_p5 = scmp.ge.s32.totalorder %s1265_s21, 1  ;;  %p169_p7 = scmp.lt.s32.totalorder %s1265_s21, 3 }
   0xe   : > { %p1345_p4 = por %p1708_p1, %p43_p0  ;;  %p1350_p6 = por %p162_p3, %p43_p0 }
   0xf   : > { %p1355_p8 = pnand %p836_p5, %p169_p7  ;;  %s1267_s27 = smov [#allocation6]  }
  0x10   : > { %s1723_s24 = scalar_select %p1345_p4, 1, 0 }
  0x11   : > { %s1724_s25 = scalar_select %p1350_p6, 1, 0 }
  0x12   : > { %s1725_s26 = scalar_select %p1355_p8, 1, 0 }
  0x13   : > { %s181_s28 = sshll.u32 %s1267_s27, 4  ;;  %p912_p9 = pneg %p1355_p8  ;;  %s1359_s28 = int_to_ptr.vmem [resolvable:$true] %s181_s28 }
  0x14   : > { %s1371_s30 = sadd.s32 1, %s1265_s21   ;;  %s30_s6 = sadd.s32 1, %s1261_s20 }
  0x15   : > { %p1366_p11 = pnand %p912_p9, %p1708_p1  ;;  %1727 = sst [smem:[#allocation19_spill]] %s1371_s30 }
  0x16   : > { %s27_s7 = ssub.s32 %s1265_s21, %s1371_s30  ;;  %s1728_s1 = sld [smem:[#allocation22_spill]] }
  0x17   : > { %s1726_s29 = scalar_select %p1366_p11, 1, 0 }
  0x18   : > { %p1384_p13 = pneg %p1366_p11 }
  0x1c   : > { %s1043_s10 = scalar_lea.hbm %s1728_s1, 128 }
  0x1d   : > { %p1044_p12 = scmp.ne.s32.totalorder %s1728_s1, %s1043_s10  ;;  %p1050_p5 = scmp.lt.u32.totalorder %s1043_s10, %s1728_s1 }
  0x1f   : > { %p1046_p0 = pnand %p1384_p13, %p1044_p12 }
  0x21   : > { %p1047_p3 = pneg %p1046_p0 }
  0x23   : > { %p1052_p7 = pnand %p1050_p5, %p1047_p3 }
  0x25   : > { %1055 = shalt.err (!%p1052_p7)
}
  0x26   : > { %s1056_s16 = scalar_lea.vmem %s1359_s28, 128  ;;  %p1064_p2 = scmp.lt.s32.totalorder %s1359_s28, %s1359_s28 }
  0x27   : > { %p1057_p9 = scmp.ne.s32.totalorder %s1359_s28, %s1056_s16  ;;  %p1065_p6 = scmp.lt.s32.totalorder %s1056_s16, %s1056_s16 }
  0x29   : > { %p1059_p10 = pnand %p1057_p9, %p1384_p13  ;;  %p1066_p12 = por %p1065_p6, %p1064_p2 }
  0x2b   : > { %p1060_p1 = pneg %p1059_p10 }
  0x2d   : > { %p1067_p0 = pnand %p1066_p12, %p1060_p1 }
  0x2f   : > { %1070 = shalt.err (!%p1067_p0)
}
  0x30   : > { %s1268_s17 = smov 64   ;;  %s1269_s23 = smov 4  }
  0x31   : > { %915 = dma.hbm_to_vmem [thread:$0]  (!%p1366_p11), %s1728_s1, 128, %s1359_s28, [#allocation7], %s1268_s17, %s1268_s17, %s1269_s23  }
  0x32   : > { %p28_p1 = scmp.eq.s32.totalorder %s27_s7, 0  ;;  %p37_p2 = scmp.ne.s32.totalorder %s1261_s20, %s1257_s19 }
  0x33   : > { %p38_p6 = scmp.eq.s32.totalorder %s1265_s21, 0  ;;  %p936_p10 = scmp.lt.s32.totalorder %s1265_s21, 2 }
  0x34   : > { %s1410_s9 = scalar_select %p28_p1, %s1261_s20, %s30_s6  }
  0x35   : > { %p39_p3 = por %p38_p6, %p37_p2  ;;  %p1731_p5 = scmp.eq.s32.totalorder %s1336_s22, 1 }
  0x36   : > { %1730 = sst [smem:[#allocation20_spill]] %s1410_s9  ;;  %s217_s11 = sand.u32 1, %s1265_s21  }
  0x37   : > { %p1414_p7 = por %p1731_p5, %p37_p2  ;;  %s219_s12 = sand.u32 1, %s1261_s20  }
  0x38   : > { %s1420_s14 = sshll.u32 %s219_s12, 2  ;;  %s882_s15 = sshll.u32 %s1265_s21, 6 }
  0x39   : > { %s1732_s10 = scalar_select %p1414_p7, 1, 0 }
  0x3a   : > { %s1733_s0 = sld [smem:[#allocation21_spill]]  ;;  %s221_s6 = scalar_lea.vmem [#allocation3], %s1420_s14 }
  0x3b   : > { %s229_s17 = sshll.u32 %s221_s6, 4  ;;  %p1431_p9 = pnand %p936_p10, %p39_p3  ;;  %s1429_s17 = int_to_ptr.vmem [resolvable:$true] %s229_s17 }
  0x3c   : > { %s1438_s12 = scalar_lea.hbm %s1706_s4, %s882_s15  ;;  %s1440_s16 = scalar_lea.sflag [#allocation4], %s217_s11 }
  0x3d   : > { %s1734_s23 = scalar_select %p1431_p9, 1, 0 }
  0x3e   : > { %p1717_p0 = pneg %p1431_p9 }
  0x40   : > { %s1426_s7 = scalar_lea.hbm %s1733_s0, %s882_s15  ;;  %s1076_s9 = scalar_lea.hbm %s1733_s0, 128 }
  0x41   : > { %s1071_s28 = scalar_lea.hbm %s1426_s7, 64  ;;  %p1077_p6 = scmp.lt.u32.totalorder %s1426_s7, %s1733_s0 }
  0x42   : > { %p1072_p12 = scmp.ne.s32.totalorder %s1426_s7, %s1071_s28  ;;  %p1078_p10 = scmp.lt.u32.totalorder %s1076_s9, %s1071_s28 }
  0x43   : > { %p1080_p5 = scmp.lt.u32.totalorder %s1071_s28, %s1426_s7 }
  0x44   : > { %p1074_p1 = pnand %p1717_p0, %p1072_p12  ;;  %p1079_p3 = por %p1078_p10, %p1077_p6 }
  0x46   : > { %p1075_p2 = pneg %p1074_p1  ;;  %p1081_p7 = por %p1080_p5, %p1079_p3 }
  0x48   : > { %p1082_p4 = pnand %p1081_p7, %p1075_p2 }
  0x4a   : > { %1085 = shalt.err (!%p1082_p4)
}
  0x4b   : > { %s1086_s11 = scalar_lea.vmem %s1429_s17, 64  ;;  %s1270_s1 = smov [#allocation3]  }
  0x4c   : > { %p1087_p12 = scmp.ne.s32.totalorder %s1429_s17, %s1086_s11  ;;  %s1091_s15 = sshll.u32 %s1270_s1, 4  ;;  %s1092_s15 = int_to_ptr.vmem [resolvable:$false] %s1091_s15 }
  0x4d   : > { %s1093_s20 = scalar_lea.vmem %s1092_s15, 128  ;;  %p1094_p11 = scmp.lt.s32.totalorder %s1429_s17, %s1092_s15 }
  0x4e   : > { %p1089_p1 = pnand %p1087_p12, %p1717_p0  ;;  %p1095_p6 = scmp.lt.s32.totalorder %s1093_s20, %s1086_s11 }
  0x50   : > { %p1090_p8 = pneg %p1089_p1  ;;  %p1096_p10 = por %p1095_p6, %p1094_p11 }
  0x52   : > { %p1097_p3 = pnand %p1096_p10, %p1090_p8 }
  0x54   : > { %1100 = shalt.err (!%p1097_p3)
}
  0x55   : > { %925 = dma.hbm_to_vmem [thread:$0]  (!%p1431_p9), %s1426_s7, 64, %s1429_s17, %s1440_s16  }
  0x56   : > { %s1271_s9 = smov [#allocation8]   ;;  %s1272_s28 = smov [#allocation9]  }
  0x57   : > { %s195_s8 = sshll.u32 %s1271_s9, 4  ;;  %s206_s6 = sshll.u32 %s1272_s28, 4  ;;  %s196_s8 = int_to_ptr.vmem [resolvable:$true] %s195_s8  ;;  %s207_s6 = int_to_ptr.vmem [resolvable:$true] %s206_s6 }
  0x58   : > { %s1101_s15 = scalar_lea.hbm %s1704_s2, 32 }
  0x59   : > { %p1102_p4 = scmp.ne.s32.totalorder %s1704_s2, %s1101_s15  ;;  %p1108_p7 = scmp.lt.u32.totalorder %s1101_s15, %s1704_s2 }
  0x5b   : > { %p1104_p8 = pnand %p1102_p4, %p1384_p13 }
  0x5d   : > { %p1105_p11 = pneg %p1104_p8 }
  0x5f   : > { %p1110_p2 = pnand %p1108_p7, %p1105_p11 }
  0x61   : > { %1113 = shalt.err (!%p1110_p2)
}
  0x62   : > { %s1114_s7 = scalar_lea.vmem %s196_s8, 32  ;;  %p1122_p6 = scmp.lt.s32.totalorder %s196_s8, %s196_s8 }
  0x63   : > { %p1115_p5 = scmp.ne.s32.totalorder %s196_s8, %s1114_s7  ;;  %p1123_p10 = scmp.lt.s32.totalorder %s1114_s7, %s1114_s7 }
  0x65   : > { %p1117_p12 = pnand %p1115_p5, %p1384_p13  ;;  %p1124_p3 = por %p1123_p10, %p1122_p6 }
  0x67   : > { %p1118_p1 = pneg %p1117_p12 }
  0x69   : > { %p1125_p0 = pnand %p1124_p3, %p1118_p1 }
  0x6b   : > { %1128 = shalt.err (!%p1125_p0)
}
  0x6c   : > { %p1735_p4 = scmp.ne.s32.totalorder %s1726_s29, 0  ;;  %s240_s0 = scalar_lea.vmem [#allocation11], %s1420_s14 }
  0x6d   : > { %s248_s30 = sshll.u32 %s240_s0, 4  ;;  %s1129_s1 = scalar_lea.hbm %s1705_s3, 64  ;;  %s249_s30 = int_to_ptr.vmem [resolvable:$true] %s248_s30 }
  0x6e   : > { %918 = dma.hbm_to_vmem [thread:$0]  (!%p1735_p4), %s1704_s2, 32, %s196_s8, [#allocation7]  }
  0x6f   : > { %p1130_p8 = scmp.ne.s32.totalorder %s1705_s3, %s1129_s1  ;;  %p1136_p7 = scmp.lt.u32.totalorder %s1129_s1, %s1705_s3 }
  0x71   : > { %p1132_p0 = pnand %p1130_p8, %p1384_p13 }
  0x73   : > { %p1133_p11 = pneg %p1132_p0 }
  0x75   : > { %p1138_p2 = pnand %p1136_p7, %p1133_p11 }
  0x77   : > { %1141 = shalt.err (!%p1138_p2)
}
  0x78   : > { %s1142_s8 = scalar_lea.vmem %s207_s6, 64  ;;  %p1150_p6 = scmp.lt.s32.totalorder %s207_s6, %s207_s6 }
  0x79   : > { %p1143_p5 = scmp.ne.s32.totalorder %s207_s6, %s1142_s8  ;;  %p1151_p10 = scmp.lt.s32.totalorder %s1142_s8, %s1142_s8 }
  0x7b   : > { %p1145_p12 = pnand %p1143_p5, %p1384_p13  ;;  %p1152_p3 = por %p1151_p10, %p1150_p6 }
  0x7d   : > { %p1146_p1 = pneg %p1145_p12 }
  0x7f   : > { %p1153_p9 = pnand %p1152_p3, %p1146_p1 }
  0x81   : > { %1156 = shalt.err (!%p1153_p9)
}
  0x82   : > { %921 = dma.hbm_to_vmem [thread:$0]  (!%p1735_p4), %s1705_s3, 64, %s207_s6, [#allocation10]  }
  0x83   : > { %s1157_s13 = scalar_lea.hbm %s1438_s12, 64  ;;  %p1736_p8 = scmp.ne.s32.totalorder %s1734_s23, 0 }
  0x84   : > { %p1158_p13 = scmp.ne.s32.totalorder %s1438_s12, %s1157_s13  ;;  %s1162_s29 = scalar_lea.hbm %s1706_s4, 128 }
  0x85   : > { %p1737_p0 = pneg %p1736_p8  ;;  %p1163_p9 = scmp.lt.u32.totalorder %s1438_s12, %s1706_s4 }
  0x86   : > { %p1164_p2 = scmp.lt.u32.totalorder %s1162_s29, %s1157_s13  ;;  %p1166_p12 = scmp.lt.u32.totalorder %s1157_s13, %s1438_s12 }
  0x87   : > { %p1160_p11 = pnand %p1158_p13, %p1737_p0 }
  0x88   : > { %p1165_p5 = por %p1164_p2, %p1163_p9 }
  0x89   : > { %p1161_p7 = pneg %p1160_p11 }
  0x8a   : > { %p1167_p1 = por %p1166_p12, %p1165_p5 }
  0x8c   : > { %p1168_p4 = pnand %p1167_p1, %p1161_p7 }
  0x8e   : > { %1171 = shalt.err (!%p1168_p4)
}
  0x8f   : > { %s1172_s6 = scalar_lea.vmem %s249_s30, 64  ;;  %p1738_p10 = pmov %p1737_p0 }
  0x90   : > { %p1173_p6 = scmp.ne.s32.totalorder %s249_s30, %s1172_s6  ;;  %s1273_s1 = smov [#allocation11]  }
  0x91   : > { %s1177_s15 = sshll.u32 %s1273_s1, 4  ;;  %s1178_s15 = int_to_ptr.vmem [resolvable:$false] %s1177_s15 }
  0x92   : > { %p1175_p3 = pnand %p1173_p6, %p1738_p10  ;;  %s1179_s11 = scalar_lea.vmem %s1178_s15, 128 }
  0x93   : > { %p1180_p0 = scmp.lt.s32.totalorder %s249_s30, %s1178_s15  ;;  %p1181_p11 = scmp.lt.s32.totalorder %s1179_s11, %s1172_s6 }
  0x94   : > { %p1176_p13 = pneg %p1175_p3 }
  0x95   : > { %p1182_p2 = por %p1181_p11, %p1180_p0 }
  0x97   : > { %p1183_p9 = pnand %p1182_p2, %p1176_p13 }
  0x99   : > { %1186 = shalt.err (!%p1183_p9)
}
  0x9a   : > { %928 = dma.hbm_to_vmem [thread:$0]  (!%p1736_p8), %s1438_s12, 64, %s249_s30, %s1440_s16  }
  0x9b   : > { %p1739_p7 = scmp.ne.s32.totalorder %s1725_s26, 0 }
  0x9c   : > { %s259_s20 = sand.u32 (!%p1739_p7), 1, %s1336_s22   ;;  %s261_s7 = sand.u32 (!%p1739_p7), 1, %s1257_s19  }
  0x9d   : > { %257 = sbr.rel (%p1739_p7) target bundleno = 705 (0x2c1), region = 40  ;;  %s1531_s8 = sshll.u32 (!%p1739_p7), %s261_s7, 2 }
  0x9e   : > { %s260_s14 = scalar_lea.sflag (!%p1739_p7), [#allocation4], %s259_s20  ;;  %s263_s17 = scalar_lea.vmem (!%p1739_p7), [#allocation3], %s1531_s8 }
  0x9f   : > { %p1740_p5 = scmp.ne.s32.totalorder (!%p1739_p7), %s1723_s24, 0 }
  0xa4   : > { %1232 = dma.done.wait (%p1740_p5), %s260_s14, 64  }
  0xa5   : > { %1234 = vsyncadd (%p1740_p5), %s260_s14, 4294967232  ;;  %p1741_p8 = scmp.eq.s32.totalorder %s1336_s22, 0 }
  0xa7   : > { %1236 = dma.done.wait (%p1741_p8), [#allocation7], 160   ;;  %p1742_p12 = pmov %p1741_p8 }
  0xa8   : > { %p1743_p1 = pmov %p1741_p8 }
  0xa9   : > { %1238 = vsyncadd (%p1742_p12), [#allocation7], 4294967136 }
  0xaa   : > { %1240 = dma.done.wait (%p1743_p1), [#allocation10], 64   ;;  %p1744_p4 = pmov %p1743_p1 }
  0xab   : > { %s284_s26 = scalar_lea.vmem [#allocation11], %s1531_s8 }
  0xac   : > { %1242 = vsyncadd (%p1744_p4), [#allocation10], 4294967232 }
  0xad   : > { %1244 = dma.done.wait (%p1740_p5), %s260_s14, 64  }
  0xae   : > { %1246 = vsyncadd (%p1740_p5), %s260_s14, 4294967232  ;;  %v1274_v0 = vmov 0   ;;  %v319_v1 = vld [vmem:[#allocation6] sm:$0xf]  ;;  %v334_v2 = vld [vmem:[#allocation6 + $0x4] sm:$0xf]  ;;  %v327_v5 = vlaneseq }
  0xaf   : > { %988 = vset.pattern.permute.xlu0 %v1274_v0  ;;  %354 = vst [vmem:[#allocation2] sm:$0xcc] %v1274_v0  ;;  %355 = vst [vmem:[#allocation2 + $0x8] sm:$0xcc] %v1274_v0  ;;  %671 = vmatprep.mubr.bf16.mxu0 %v1274_v0  ;;  %v1275_v3 = vmov 839922192  }
  0xb0   : > { %356 = vst [vmem:[#allocation2 + $0x10] sm:$0xcc] %v1274_v0  ;;  %357 = vst [vmem:[#allocation2 + $0x18] sm:$0xcc] %v1274_v0  ;;  %322 = vperm.xlu0 %988, %v319_v1   ;;  %v325_v4 = vunpack.c.l.s4 %v1275_v3  ;;  %v328_v7 = vshrl.u32 %v327_v5, 7  ;;  %s1276_s24 = smov 15  }
  0xb1   : > { %358 = vst [vmem:[#allocation2 + $0x20] sm:$0xcc] %v1274_v0  ;;  %359 = vst [vmem:[#allocation2 + $0x28] sm:$0xcc] %v1274_v0  ;;  %v317_v9 = vld [vmem:[%s263_s17] sm:$0xf] }
  0xb2   : > { %360 = vst [vmem:[#allocation2 + $0x30] sm:$0xcc] %v1274_v0  ;;  %361 = vst [vmem:[#allocation2 + $0x38] sm:$0xcc] %v1274_v0  ;;  %v326_v6 = vunpack.c.0.s8 %v325_v4  ;;  %v318_v11 = vunpack.c.l.bf16 %v317_v9  ;;  %s1277_s23 = smov 17   ;;  %s1278_s12 = smov 127  }
  0xb3   : > { %362 = vst [vmem:[#allocation2 + $0x40] sm:$0xcc] %v1274_v0  ;;  %s1279_s16 = smov 16   ;;  %s1280_s30 = smov 112   ;;  %v577_v21 = vld [vmem:[#allocation9] sm:$0xf] }
  0xb4   : > { %337 = vperm.xlu0 %988, %v334_v2   ;;  %v329_v8 = vsub.s32 %v326_v6, %v328_v7  ;;  %s1281_s13 = smov 1   ;;  %s1282_s9 = smov 113   ;;  %v1553_v22 = vand.u32 127, %v327_v5 }
  0xb5   : > { %s1283_s0 = smov 111   ;;  %s893_s29 = sshll.u32 %s1336_s22, 6 }
  0xb6   : > { %v1556_v23 = vadd.s32 128, %v1553_v22  ;;  %v352_v24 = vand.u32 15, %v1553_v22  ;;  %vm373_vm0 = vcmp.ge.s32.totalorder %v1553_v22, 16  ;;  %vm420_vm3 = vcmp.lt.s32.totalorder %v1553_v22, 15  ;;  %s315_s28 = scalar_lea.vmem [#allocation12], %s1531_s8  ;;  %s1657_s15 = scalar_lea.hbm %s1707_s5, %s893_s29 }
  0xb7   : > { %vm370_vm6 = vcmp.lt.s32.totalorder %v1553_v22, 17  ;;  %vm477_vm9 = vcmp.lt.s32.totalorder %v1553_v22, 127  ;;  %vm398_vm10 = vcmp.lt.s32.totalorder %v1553_v22, 16  ;;  %vm525_vm11 = vcmp.lt.s32.totalorder %v1553_v22, 112  ;;  %s716_s27 = sshll.u32 %s315_s28, 4  ;;  %s702_s11 = scalar_lea.sflag [#allocation5], %s261_s7  ;;  %s1659_s27 = int_to_ptr.vmem [resolvable:$true] %s716_s27 }
  0xb8   : > { %v353_v25 = vand.u32 15, %v1556_v23  ;;  %vm1561_vm1 = vcmp.lt.s32.totalorder %v352_v24, 15  ;;  %vm1565_vm2 = vcmp.ge.s32.totalorder %v352_v24, 1  ;;  %vm503_vm12 = vcmp.lt.s32.totalorder %v1556_v23, 240  ;;  %s1187_s20 = scalar_lea.vmem %s1659_s27, 64  ;;  %p1757_p10 = scmp.ne.s32.totalorder %s1732_s10, 0 }
  0xb9   : > { %vm1578_vm5 = vmand %vm373_vm0, %vm1561_vm1  ;;  %vm446_vm13 = vcmp.lt.s32.totalorder %v1553_v22, 1  ;;  %vm499_vm14 = vcmp.lt.s32.totalorder %v1553_v22, 113  ;;  %p1188_p6 = scmp.ne.s32.totalorder %s1659_s27, %s1187_s20  ;;  %s1284_s22 = smov [#allocation12]  }
  0xba   : > { %vm1570_vm4 = vcmp.lt.s32.totalorder %v353_v25, 15  ;;  %vm1583_vm7 = vcmp.ge.s32.totalorder %v353_v25, 1  ;;  %vm1591_vm8 = vmand %vm373_vm0, %vm1565_vm2  ;;  %s1191_s8 = sshll.u32 %s1284_s22, 4  ;;  %s1192_s8 = int_to_ptr.vmem [resolvable:$false] %s1191_s8 }
  0xbb   : > { %vm505_vm15 = vmand %vm503_vm12, %vm1583_vm7  ;;  %p1189_p3 = pnand %p1188_p6, %p1757_p10  ;;  %s1193_s14 = scalar_lea.vmem %s1192_s8, 128 }
  0xbc   : > { %p1194_p0 = scmp.lt.s32.totalorder %s1659_s27, %s1192_s8  ;;  %p1195_p11 = scmp.lt.s32.totalorder %s1193_s14, %s1187_s20 }
  0xbd   : > { %p1190_p13 = pneg %p1189_p3 }
  0xbe   : > { %p1196_p2 = por %p1195_p11, %p1194_p0 }
  0xc0   : > { %p1197_p9 = pnand %p1196_p2, %p1190_p13 }
 0x12f   : > { %v323_v10 = vpop.permute.xlu0 %322 }
 0x130   : > { %v330_v12 = vrot.slane %v323_v10, %v329_v8 }
 0x132   : > { %v332_v14 = vmul.f32 %v330_v12, %v318_v11 }
 0x133   : > { %v338_v13 = vpop.permute.xlu0 %337 }
 0x134   : > { %v345_v15 = vrot.slane %v338_v13, %v329_v8 }
 0x136   : > { %v347_v16 = vadd.f32 %v345_v15, %v332_v14 }
 0x138   : > { %v348_v17 = vmax.f32 %v347_v16, 0.0 }
 0x13a   : > { %v364_v18 = vcombine.high %v348_v17, %v348_v17 }
 0x13c   : > { %v999_v19 = vpack.i.bf16 %v364_v18, %v348_v17  ;;  %v888_v20 = vpack.c.bf16 %v364_v18, %v348_v17 }
 0x13e   : > { %1000 = vrot.lane.b32.xlu0 %v999_v19, %s1276_s24  ;;  %990 = vrot.lane.b32.xlu1 %v999_v19, %s1277_s23  ;;  %472 = vst [vmem:[#allocation2 + $0x20] sm:$0x33] %v888_v20 }
 0x142   : > { %1010 = vrot.lane.b32.xlu0 %v999_v19, %s1278_s12  ;;  %995 = vrot.lane.b32.xlu1 %v999_v19, %s1279_s16 }
 0x146   : > { %1020 = vrot.lane.b32.xlu0 %v999_v19, %s1280_s30  ;;  %1005 = vrot.lane.b32.xlu1 %v999_v19, %s1281_s13 }
 0x14a   : > { %580 = vperm.xlu0 %988, %v577_v21   ;;  %1015 = vrot.lane.b32.xlu1 %v999_v19, %s1282_s9 }
 0x14e   : > { %1025 = vrot.lane.b32.xlu1 %v999_v19, %s1283_s0 }
 0x1b0   : > { %v1001_v30 = vpop.permute.xlu0 %1000  ;;  %v991_v32 = vpop.permute.xlu1 %990 }
 0x1b1   : > { %v1003_v33 = vunpack.i.h.bf16 %v1001_v30  ;;  %v1002_v34 = vunpack.i.l.bf16 %v1001_v30  ;;  %v993_v36 = vunpack.i.h.bf16 %v991_v32  ;;  %v992_v37 = vunpack.i.l.bf16 %v991_v32 }
 0x1b3   : > { %v421_v38 = vsel %vm420_vm3, %v1002_v34, %v1003_v33  ;;  %v422_v39 = vsel %vm420_vm3, %v1003_v33, %v1002_v34  ;;  %v371_v40 = vsel %vm370_vm6, %v992_v37, %v993_v36  ;;  %v372_v41 = vsel %vm370_vm6, %v993_v36, %v992_v37  ;;  %vm551_vm3 = vmand %vm503_vm12, %vm1570_vm4 }
 0x1b4   : > { %v431_v42 = vsel %vm1578_vm5, %v422_v39, 0.0  ;;  %v432_v43 = vsel %vm1570_vm4, %v421_v38, 0.0  ;;  %v383_v44 = vsel %vm1591_vm8, %v372_v41, 0.0  ;;  %v384_v45 = vsel %vm1583_vm7, %v371_v40, 0.0  ;;  %v1011_v46 = vpop.permute.xlu0 %1010  ;;  %v996_v47 = vpop.permute.xlu1 %995 }
 0x1b5   : > { %v886_v48 = vpack.c.bf16 %v432_v43, %v431_v42  ;;  %v884_v49 = vpack.c.bf16 %v384_v45, %v383_v44  ;;  %v1013_v50 = vunpack.i.h.bf16 %v1011_v46  ;;  %v1012_v51 = vunpack.i.l.bf16 %v1011_v46  ;;  %v567_v42 = vld [vmem:[#allocation8] sm:$0x3]  ;;  %v680_v43 = vld [vmem:[%s284_s26] sm:$0xf] }
 0x1b6   : > { %v998_v52 = vunpack.i.h.bf16 %v996_v47  ;;  %v997_v53 = vunpack.i.l.bf16 %v996_v47  ;;  %v681_v44 = vunpack.c.l.bf16 %v680_v43 }
 0x1b7   : > { %441 = vst [vmem:[#allocation2 + $0x10] sm:$0x33] %v886_v48  ;;  %393 = vst [vmem:[#allocation2] sm:$0x33] %v884_v49  ;;  %v478_v54 = vsel %vm477_vm9, %v1012_v51, %v1013_v50  ;;  %v479_v55 = vsel %vm477_vm9, %v1013_v50, %v1012_v51 }
 0x1b8   : > { %v484_v56 = vsel %vm1561_vm1, %v478_v54, 0.0  ;;  %v485_v57 = vsel %vm1570_vm4, %v479_v55, 0.0  ;;  %v399_v58 = vsel %vm398_vm10, %v997_v53, %v998_v52  ;;  %v400_v59 = vsel %vm398_vm10, %v998_v52, %v997_v53  ;;  %v1021_v60 = vpop.permute.xlu0 %1020  ;;  %v1006_v61 = vpop.permute.xlu1 %1005 }
 0x1b9   : > { %v889_v62 = vpack.c.bf16 %v485_v57, %v484_v56  ;;  %v405_v63 = vsel %vm373_vm0, %v400_v59, 0.0  ;;  %v1023_v0 = vunpack.i.h.bf16 %v1021_v60  ;;  %v1022_v1 = vunpack.i.l.bf16 %v1021_v60 }
 0x1ba   : > { %v885_v2 = vpack.c.bf16 %v399_v58, %v405_v63  ;;  %v1008_v3 = vunpack.i.h.bf16 %v1006_v61  ;;  %v1007_v4 = vunpack.i.l.bf16 %v1006_v61  ;;  %vm547_vm0 = vcmp.lt.s32.totalorder %v1553_v22, 111 }
 0x1bb   : > { %494 = vst [vmem:[#allocation2 + $0x28] sm:$0x33] %v889_v62  ;;  %v526_v5 = vsel %vm525_vm11, %v1022_v1, %v1023_v0  ;;  %v527_v6 = vsel %vm525_vm11, %v1023_v0, %v1022_v1  ;;  %v683_v47 = vcombine.high %v681_v44, %v681_v44 }
 0x1bc   : > { %415 = vst [vmem:[#allocation2 + $0x8] sm:$0x33] %v885_v2  ;;  %v533_v7 = vsel %vm503_vm12, %v527_v6, 0.0  ;;  %v447_v8 = vsel %vm446_vm13, %v1007_v4, %v1008_v3  ;;  %v448_v9 = vsel %vm446_vm13, %v1008_v3, %v1007_v4  ;;  %v1016_v10 = vpop.permute.xlu1 %1015 }
 0x1bd   : > { %v891_v11 = vpack.c.bf16 %v533_v7, %v526_v5  ;;  %v453_v12 = vsel %vm1565_vm2, %v448_v9, 0.0  ;;  %v454_v13 = vsel %vm1583_vm7, %v447_v8, 0.0  ;;  %v1018_v14 = vunpack.i.h.bf16 %v1016_v10 }
 0x1be   : > { %v887_v15 = vpack.c.bf16 %v454_v13, %v453_v12  ;;  %v1017_v16 = vunpack.i.l.bf16 %v1016_v10 }
 0x1bf   : > { %542 = vst [vmem:[#allocation2 + $0x38] sm:$0x33] %v891_v11 }
 0x1c0   : > { %463 = vst [vmem:[#allocation2 + $0x18] sm:$0x33] %v887_v15  ;;  %v500_v17 = vsel %vm499_vm14, %v1017_v16, %v1018_v14  ;;  %v501_v18 = vsel %vm499_vm14, %v1018_v14, %v1017_v16  ;;  %v1026_v19 = vpop.permute.xlu1 %1025 }
 0x1c1   : > { %v510_v20 = vsel %vm1565_vm2, %v500_v17, 0.0  ;;  %v511_v21 = vsel %vm505_vm15, %v501_v18, 0.0  ;;  %v1028_v24 = vunpack.i.h.bf16 %v1026_v19  ;;  %v1027_v25 = vunpack.i.l.bf16 %v1026_v19 }
 0x1c2   : > { %v890_v29 = vpack.c.bf16 %v511_v21, %v510_v20  ;;  %v1035_v23 = vld [vmem:[#allocation2 + $0x24] ss:$8 sps:$4 sm:$0xff]   ;;  %v1037_v36 = vld [vmem:[#allocation2 + $0x20] ss:$8 sps:$4 sm:$0xff]   ;;  %vm628_vm2 = vcmask 588800  }
 0x1c3   : > { %v548_v30 = vsel %vm547_vm0, %v1027_v25, %v1028_v24  ;;  %v549_v31 = vsel %vm547_vm0, %v1028_v24, %v1027_v25  ;;  %v1029_v32 = vld [vmem:[#allocation2 + $0x4] ss:$8 sps:$4 sm:$0xff]   ;;  %v1031_v33 = vld [vmem:[#allocation2] ss:$8 sps:$4 sm:$0xff]  }
 0x1c4   : > { %520 = vst [vmem:[#allocation2 + $0x30] sm:$0x33] %v890_v29  ;;  %v556_v22 = vsel %vm1561_vm1, %v548_v30, 0.0  ;;  %v557_v34 = vsel %vm551_vm3, %v549_v31, 0.0  ;;  %639 = vmatprep.subr.bf16.mxu0 %v1029_v32  ;;  %vm632_vm1 = vcmask 1043456  }
 0x1c5   : > { %v892_v27 = vpack.c.bf16 %v557_v34, %v556_v22  ;;  %640 = vmatpush1.bf16.msra.mxu0 %v1031_v33 }
 0x1c7   : > { %566 = vst [vmem:[#allocation2 + $0x40] sm:$0x33] %v892_v27  ;;  %v1032_v28 = vld [vmem:[#allocation2 + $0x14] ss:$8 sps:$4 sm:$0xff]   ;;  %v1034_v35 = vld [vmem:[#allocation2 + $0x10] ss:$8 sps:$4 sm:$0xff]  }
 0x1c8   : > { %641 = vmatprep.subr.bf16.mxu0 %v1032_v28 }
 0x1c9   : > { %642 = vmatpush1.bf16.msra.mxu0 %v1034_v35  ;;  %v581_v45 = vpop.permute.xlu0 %580 }
 0x1ca   : > { %643 = vmatprep.subr.bf16.mxu0 %v1035_v23 }
 0x1cb   : > { %v1038_v37 = vld [vmem:[#allocation2 + $0x34] ss:$8 sps:$4 sm:$0xff]   ;;  %v1040_v26 = vld [vmem:[#allocation2 + $0x30] ss:$8 sps:$4 sm:$0xff]  }
 0x1cd   : > { %644 = vmatpush1.bf16.msra.mxu0 %v1037_v36 }
 0x1ce   : > { %v576_v38 = vld [vmem:[#allocation2 + $0x40] sm:$0xff]  ;;  %645 = vmatprep.subr.bf16.mxu0 %v1038_v37 }
 0x1cf   : > { %v872_v39 = vcombine.high %v576_v38, %v576_v38  ;;  %v871_v40 = vcombine.low %v576_v38, %v576_v38 }
 0x1d1   : > { %646 = vmatpush1.bf16.msra.mxu0 %v1040_v26  ;;  %v634_v41 = vsel %vm632_vm1, %v871_v40, 0 }
 0x1d2   : > { %873 = vmatprep.subr.msk.bf16.mxu0 %vm632_vm1, %v872_v39 }
 0x1d5   : > { %648 = vmatpush1.bf16.msra.mxu0 %v634_v41 }
 0x1d8   : > { %874 = vmatmul.mubr.msk.bf16.vlgmr.msra.gmra.mrb[0].mxu0 %vm628_vm2, %v567_v42 }
 0x2ab   : > { %v673_v46 = vpop.f32.mrb[0].mxu0 }
 0x2ac   : > { %v674_v48 = vadd.f32 %v673_v46, %v581_v45  ;;  %v675_v49 = vpop.f32.mrb[1].mxu0 }
 0x2ad   : > { %v676_v50 = vadd.f32 %v675_v49, %v581_v45  ;;  %v677_v51 = vpop.f32.mrb[2].mxu0 }
 0x2ae   : > { %v685_v52 = vadd.f32 %v681_v44, %v674_v48  ;;  %v678_v53 = vpop.f32.mrb[3].mxu0 }
 0x2af   : > { %v686_v54 = vadd.f32 %v683_v47, %v676_v50 }
 0x2b1   : > { %v875_v55 = vpack.c.bf16 %v686_v54, %v685_v52 }
 0x2b3   : > { %876 = vst.sshfl [vmem:[%s315_s28] sm:$0x33 pattern:$0x76325410] %v875_v55 }
 0x2b4   : > { %1200 = shalt.err (!%p1197_p9)
}
 0x2b5   : > { %s1201_s7 = scalar_lea.hbm %s1657_s15, 64  ;;  %s1205_s24 = scalar_lea.hbm %s1707_s5, 128 }
 0x2b6   : > { %p1202_p7 = scmp.ne.s32.totalorder %s1657_s15, %s1201_s7  ;;  %p1206_p12 = scmp.lt.u32.totalorder %s1657_s15, %s1707_s5 }
 0x2b7   : > { %p1207_p1 = scmp.lt.u32.totalorder %s1205_s24, %s1201_s7  ;;  %p1209_p6 = scmp.lt.u32.totalorder %s1201_s7, %s1657_s15 }
 0x2b8   : > { %p1203_p5 = pnand %p1202_p7, %p1757_p10 }
 0x2b9   : > { %p1208_p4 = por %p1207_p1, %p1206_p12 }
 0x2ba   : > { %p1204_p8 = pneg %p1203_p5 }
 0x2bb   : > { %p1210_p3 = por %p1209_p6, %p1208_p4 }
 0x2bd   : > { %p1211_p13 = pnand %p1210_p3, %p1204_p8 }
 0x2bf   : > { %1214 = shalt.err (!%p1211_p13)
}
 0x2c0   : > { %910 = dma.vmem_to_hbm [thread:$0]  (%p1757_p10), %s1659_s27, 64, %s1657_s15, %s702_s11  }
 0x2c1 PF: > { %s728_s16 = sand.u32 1, %s1253_s18   ;;  %p1758_p0 = scmp.ne.s32.totalorder %s1724_s25, 0 }
 0x2c2   : > { %p1759_p11 = scmp.ge.s32.totalorder %s1265_s21, 2  ;;  %s729_s30 = scalar_lea.sflag [#allocation5], %s728_s16 }
 0x2c4   : > { %p930_p2 = pnand %p1759_p11, %p1758_p0 }
 0x2c6   : > { %1248 = dma.done.wait (!%p930_p2), %s729_s30, 64  }
 0x2c7   : > { %1250 = vsyncadd (!%p930_p2), %s729_s30, 4294967232  ;;  %s1760_s21 = sld [smem:[#allocation19_spill]]  ;;  %s1761_s13 = sld [smem:[#allocation18_spill]] }
 0x2c8   : > { %s1762_s20 = sld [smem:[#allocation20_spill]]  ;;  %s1763_s18 = smov %s1257_s19 }
 0x2cd   : > { %p20_p9 = scmp.ge.s32.totalorder %s1760_s21, 4   ;;  %s1764_s19 = smov %s1761_s13 }
 0x2cf   :  { %22 = sbr.rel (!%p20_p9) target bundleno = 10 (0xa), region = 109 }
 0x2d6   :  { %734 = vsyncpa [#allocation4], 1 }
 0x2d7   :  { %736 = vsyncpa [#allocation4 + $0x1], 1 }
 0x2d8   :  { %737 = vsyncpa [#allocation7], 1 }
 0x2d9   :  { %738 = vsyncpa [#allocation10], 1 }
 0x2da   :  { %739 = vsyncpa [#allocation5], 1 }
 0x2db   :  { %741 = vsyncpa [#allocation5 + $0x1], 1 }

// kernel: last_block_forward.13
= control target key start
LH: loop header
LB: loop body
LE: loop exit
PB: predicated region body
PF: predicated region fallthrough
CT: control target
= control target key end

     0   :  { %8 = vsyncpa [#allocation4], 0  ;;  %s1395_s0 = inlined_call_operand.hbm [shape: bf16[2,4,256], index: 0, kind: input, shape index: {}]   ;;  %s1396_s1 = inlined_call_operand.hbm [shape: bf16[2,72], index: 1, kind: input, shape index: {}]   ;;  %s1397_s2 = inlined_call_operand.hbm [shape: f32[2,1], index: 2, kind: input, shape index: {}]   ;;  %s1398_s3 = inlined_call_operand.hbm [shape: f32[2,2,256], index: 3, kind: output, shape index: {}]  }
   0x1   :  { %10 = vsyncpa [#allocation4 + $0x1], 0 }
   0x2   :  { %11 = vsyncpa [#allocation7], 0 }
   0x3   :  { %12 = vsyncpa [#allocation5], 0 }
   0x4   :  { %14 = vsyncpa [#allocation5 + $0x1], 0  ;;  %s1055_s12 = smov 0   ;;  %s1057_s13 = smov 0  }
   0x5   :  { %s1059_s14 = smov 0   ;;  %s1061_s15 = smov 0  }
   0x6 LB: > { %s1076_s16 = sadd.s32 4294967295, %s1020_s15   ;;  %s675_s17 = sadd.s32 4294967294, %s1020_s15   ;;  %s1020_s15 = sphi %s1061_s15, %s1432_s15   ;;  %s1016_s14 = sphi %s1059_s14, %s1431_s14   ;;  %s1012_s13 = sphi %s1057_s13, %s1430_s13   ;;  %s1008_s12 = sphi %s1055_s12, %s1429_s12  }
   0x7   : > { %p40_p0 = scmp.ne.s32.totalorder %s1012_s13, %s1008_s12  ;;  %p1399_p1 = scmp.eq.s32.totalorder %s1076_s16, 0 }
   0x8   : > { %p112_p3 = scmp.eq.s32.totalorder %s675_s17, 1  ;;  %p676_p5 = scmp.ge.s32.totalorder %s1020_s15, 1 }
   0x9   : > { %p1085_p4 = por %p1399_p1, %p40_p0  ;;  %p119_p7 = scmp.lt.s32.totalorder %s1020_s15, 3 }
   0xa   : > { %p1090_p6 = por %p112_p3, %p40_p0  ;;  %s1022_s21 = smov [#allocation6]  }
   0xb   : > { %s1402_s18 = scalar_select %p1085_p4, 1, 0 }
   0xc   : > { %s1403_s19 = scalar_select %p1090_p6, 1, 0 }
   0xd   : > { %p1095_p8 = pnand %p676_p5, %p119_p7  ;;  %s132_s22 = sshll.u32 %s1022_s21, 4  ;;  %s133_s22 = int_to_ptr.vmem [resolvable:$true] %s132_s22 }
   0xe   : > { %s1023_s23 = smov [#allocation8]   ;;  %s1111_s26 = sadd.s32 1, %s1020_s15  }
   0xf   : > { %s1404_s20 = scalar_select %p1095_p8, 1, 0 }
  0x10   : > { %p737_p10 = pneg %p1095_p8  ;;  %s143_s24 = sshll.u32 %s1023_s23, 4  ;;  %s1108_s24 = int_to_ptr.vmem [resolvable:$true] %s143_s24 }
  0x11   : > { %s24_s27 = ssub.s32 %s1020_s15, %s1111_s26  ;;  %s864_s30 = scalar_lea.hbm %s1396_s1, 16 }
  0x12   : > { %p1104_p11 = pnand %p737_p10, %p1399_p1  ;;  %p865_p12 = scmp.ne.s32.totalorder %s1396_s1, %s864_s30 }
  0x13   : > { %p871_p5 = scmp.lt.u32.totalorder %s864_s30, %s1396_s1 }
  0x14   : > { %p866_p13 = pneg %p1104_p11 }
  0x16   : > { %p867_p0 = pnand %p866_p13, %p865_p12 }
  0x18   : > { %p868_p3 = pneg %p867_p0 }
  0x1a   : > { %p873_p7 = pnand %p871_p5, %p868_p3 }
  0x1c   : > { %876 = shalt.err (!%p873_p7)
}
  0x1d   : > { %s877_s8 = scalar_lea.vmem %s133_s22, 16  ;;  %s884_s9 = scalar_lea.vmem %s133_s22, 32 }
  0x1e   : > { %p878_p10 = scmp.ne.s32.totalorder %s133_s22, %s877_s8  ;;  %p885_p2 = scmp.lt.s32.totalorder %s133_s22, %s133_s22 }
  0x1f   : > { %p886_p6 = scmp.lt.s32.totalorder %s884_s9, %s877_s8 }
  0x20   : > { %p880_p9 = pnand %p878_p10, %p866_p13 }
  0x21   : > { %p887_p4 = por %p886_p6, %p885_p2 }
  0x22   : > { %p881_p1 = pneg %p880_p9 }
  0x24   : > { %p888_p8 = pnand %p887_p4, %p881_p1 }
  0x26   : > { %891 = shalt.err (!%p888_p8)
}
  0x27   : > { %740 = dma.hbm_to_vmem [thread:$0]  (!%p1104_p11), %s1396_s1, 16, %s133_s22, [#allocation7]  }
  0x28   : > { %s892_s23 = scalar_lea.hbm %s1397_s2, 32 }
  0x29   : > { %p893_p9 = scmp.ne.s32.totalorder %s1397_s2, %s892_s23  ;;  %p899_p4 = scmp.lt.u32.totalorder %s892_s23, %s1397_s2 }
  0x2b   : > { %p895_p2 = pnand %p893_p9, %p866_p13 }
  0x2d   : > { %p896_p1 = pneg %p895_p2 }
  0x2f   : > { %p901_p6 = pnand %p899_p4, %p896_p1 }
  0x31   : > { %904 = shalt.err (!%p901_p6)
}
  0x32   : > { %s905_s22 = scalar_lea.vmem %s1108_s24, 32  ;;  %p913_p3 = scmp.lt.s32.totalorder %s1108_s24, %s1108_s24 }
  0x33   : > { %p906_p8 = scmp.ne.s32.totalorder %s1108_s24, %s905_s22  ;;  %p914_p5 = scmp.lt.s32.totalorder %s905_s22, %s905_s22 }
  0x35   : > { %p908_p12 = pnand %p906_p8, %p866_p13  ;;  %p915_p7 = por %p914_p5, %p913_p3 }
  0x37   : > { %p909_p0 = pneg %p908_p12 }
  0x39   : > { %p916_p10 = pnand %p915_p7, %p909_p0 }
  0x3b   : > { %919 = shalt.err (!%p916_p10)
}
  0x3c   : > { %743 = dma.hbm_to_vmem [thread:$0]  (!%p1104_p11), %s1397_s2, 32, %s1108_s24, [#allocation7]  }
  0x3d   : > { %p25_p13 = scmp.eq.s32.totalorder %s24_s27, 0  ;;  %s27_s7 = sadd.s32 1, %s1016_s14 }
  0x3e   : > { %p34_p9 = scmp.ne.s32.totalorder %s1016_s14, %s1012_s13  ;;  %p35_p2 = scmp.eq.s32.totalorder %s1020_s15, 0 }
  0x3f   : > { %s1170_s25 = scalar_select %p25_p13, %s1016_s14, %s27_s7  }
  0x40   : > { %p36_p1 = por %p35_p2, %p34_p9  ;;  %p1406_p4 = scmp.eq.s32.totalorder %s1076_s16, 1 }
  0x41   : > { %p754_p8 = scmp.lt.s32.totalorder %s1020_s15, 2  ;;  %s154_s9 = sand.u32 1, %s1016_s14  }
  0x42   : > { %p1174_p6 = por %p1406_p4, %p34_p9  ;;  %s680_s10 = sshll.u32 %s154_s9, 2 }
  0x43   : > { %s715_s11 = sshll.u32 %s1020_s15, 6  ;;  %s158_s27 = scalar_lea.vmem [#allocation3], %s680_s10 }
  0x44   : > { %s1184_s24 = scalar_lea.hbm %s1395_s0, %s715_s11  ;;  %s166_s23 = sshll.u32 %s158_s27, 4  ;;  %s1186_s23 = int_to_ptr.vmem [resolvable:$true] %s166_s23 }
  0x45   : > { %p1188_p11 = pnand %p754_p8, %p36_p1  ;;  %s155_s29 = scalar_lea.sflag [#allocation4], %s154_s9 }
  0x46   : > { %s920_s30 = scalar_lea.hbm %s1184_s24, 64  ;;  %s925_s5 = scalar_lea.hbm %s1395_s0, 128 }
  0x47   : > { %p921_p12 = scmp.ne.s32.totalorder %s1184_s24, %s920_s30  ;;  %p922_p0 = pneg %p1188_p11 }
  0x48   : > { %p926_p7 = scmp.lt.u32.totalorder %s1184_s24, %s1395_s0  ;;  %p927_p10 = scmp.lt.u32.totalorder %s925_s5, %s920_s30 }
  0x49   : > { %p923_p3 = pnand %p922_p0, %p921_p12  ;;  %p929_p9 = scmp.lt.u32.totalorder %s920_s30, %s1184_s24 }
  0x4a   : > { %p928_p13 = por %p927_p10, %p926_p7 }
  0x4b   : > { %p924_p5 = pneg %p923_p3 }
  0x4c   : > { %p930_p2 = por %p929_p9, %p928_p13 }
  0x4e   : > { %p931_p1 = pnand %p930_p2, %p924_p5 }
  0x50   : > { %934 = shalt.err (!%p931_p1)
}
  0x51   : > { %s935_s9 = scalar_lea.vmem %s1186_s23, 64  ;;  %s1024_s10 = smov [#allocation3]  }
  0x52   : > { %p936_p4 = scmp.ne.s32.totalorder %s1186_s23, %s935_s9  ;;  %s940_s11 = sshll.u32 %s1024_s10, 4  ;;  %s941_s11 = int_to_ptr.vmem [resolvable:$false] %s940_s11 }
  0x53   : > { %s942_s17 = scalar_lea.vmem %s941_s11, 128  ;;  %p943_p3 = scmp.lt.s32.totalorder %s1186_s23, %s941_s11 }
  0x54   : > { %p938_p8 = pnand %p936_p4, %p922_p0  ;;  %p944_p7 = scmp.lt.s32.totalorder %s942_s17, %s935_s9 }
  0x56   : > { %p939_p12 = pneg %p938_p8  ;;  %p945_p10 = por %p944_p7, %p943_p3 }
  0x58   : > { %p946_p13 = pnand %p945_p10, %p939_p12 }
  0x5a   : > { %949 = shalt.err (!%p946_p13)
}
  0x5b   : > { %747 = dma.hbm_to_vmem [thread:$0]  (!%p1188_p11), %s1184_s24, 64, %s1186_s23, %s155_s29  }
  0x5c   : > { %p1409_p5 = scmp.ne.s32.totalorder %s1404_s20, 0 }
  0x5d   : > { %s1220_s21 = sand.u32 (!%p1409_p5), 1, %s1012_s13   ;;  %p1410_p0 = scmp.ne.s32.totalorder (!%p1409_p5), %s1402_s18, 0 }
  0x5e   : > { %175 = sbr.rel (%p1409_p5) target bundleno = 525 (0x20d), region = 32  ;;  %s684_s27 = sshll.u32 (!%p1409_p5), %s1220_s21, 2 }
  0x5f   : > { %s178_s30 = scalar_lea.sflag (!%p1409_p5), [#allocation4], %s1220_s21  ;;  %s181_s4 = scalar_lea.vmem (!%p1409_p5), [#allocation3], %s684_s27 }
  0x65   : > { %995 = dma.done.wait (%p1410_p0), %s178_s30, 64  }
  0x66   : > { %997 = vsyncadd (%p1410_p0), %s178_s30, 4294967232  ;;  %p1411_p11 = scmp.eq.s32.totalorder %s1076_s16, 0 }
  0x68   : > { %999 = dma.done.wait (%p1411_p11), [#allocation7], 48   ;;  %p1412_p9 = pmov %p1411_p11 }
  0x69   : > { %v213_v0 = vld [vmem:[%s181_s4] sm:$0xf]  ;;  %v1025_v2 = vmov 0   ;;  %s1026_s18 = smov 15   ;;  %s1027_s20 = smov 17   ;;  %v215_v6 = vlaneseq }
  0x6a   : > { %1001 = vsyncadd (%p1412_p9), [#allocation7], 4294967248  ;;  %v214_v1 = vunpack.c.l.bf16 %v213_v0  ;;  %692 = vst.sshfl [vmem:[#allocation2 + $0x20] sm:$0xf pattern:$0x76325410] %v213_v0  ;;  %538 = vmatprep.mubr.bf16.mxu0 %v1025_v2  ;;  %841 = vset.pattern.permute.xlu0 %v1025_v2 }
  0x6b   : > { %220 = vst [vmem:[#allocation2] sm:$0xcc] %v1025_v2  ;;  %221 = vst [vmem:[#allocation2 + $0x8] sm:$0xcc] %v1025_v2  ;;  %s1028_s24 = smov 1   ;;  %s1029_s23 = smov 16  }
  0x6c   : > { %222 = vst [vmem:[#allocation2 + $0x10] sm:$0xcc] %v1025_v2  ;;  %223 = vst [vmem:[#allocation2 + $0x18] sm:$0xcc] %v1025_v2  ;;  %v230_v3 = vcombine.high %v214_v1, %v214_v1  ;;  %s1030_s28 = smov 127   ;;  %s1031_s29 = smov 113  }
  0x6d   : > { %224 = vst [vmem:[#allocation2 + $0x20] sm:$0xcc] %v1025_v2  ;;  %225 = vst [vmem:[#allocation2 + $0x28] sm:$0xcc] %v1025_v2  ;;  %s1032_s22 = smov 112   ;;  %s1033_s5 = smov 111  }
  0x6e   : > { %226 = vst [vmem:[#allocation2 + $0x30] sm:$0xcc] %v1025_v2  ;;  %227 = vst [vmem:[#allocation2 + $0x38] sm:$0xcc] %v1025_v2  ;;  %v811_v4 = vpack.i.bf16 %v230_v3, %v214_v1  ;;  %v444_v5 = vld [vmem:[#allocation8] sm:$0x3] }
  0x6f   : > { %228 = vst [vmem:[#allocation2 + $0x40] sm:$0xcc] %v1025_v2  ;;  %v1234_v7 = vand.u32 127, %v215_v6  ;;  %s724_s6 = sshll.u32 %s1076_s16, 6  ;;  %s211_s7 = scalar_lea.vmem [#allocation9], %s684_s27 }
  0x70   : > { %812 = vrot.lane.b32.xlu1 %v811_v4, %s1026_s18  ;;  %802 = vrot.lane.b32.xlu0 %v811_v4, %s1027_s20  ;;  %s586_s9 = sshll.u32 %s211_s7, 4  ;;  %s1351_s17 = scalar_lea.hbm %s1398_s3, %s724_s6  ;;  %s1353_s9 = int_to_ptr.vmem [resolvable:$true] %s586_s9 }
  0x71   : > { %v1237_v8 = vadd.s32 128, %v1234_v7  ;;  %v218_v9 = vand.u32 15, %v1234_v7  ;;  %vm239_vm1 = vcmp.ge.s32.totalorder %v1234_v7, 16  ;;  %vm286_vm3 = vcmp.lt.s32.totalorder %v1234_v7, 15  ;;  %s572_s30 = scalar_lea.sflag [#allocation5], %s1220_s21  ;;  %s950_s4 = scalar_lea.vmem %s1353_s9, 64 }
  0x72   : > { %vm236_vm6 = vcmp.lt.s32.totalorder %v1234_v7, 17  ;;  %vm312_vm9 = vcmp.lt.s32.totalorder %v1234_v7, 1  ;;  %vm264_vm10 = vcmp.lt.s32.totalorder %v1234_v7, 16  ;;  %vm344_vm11 = vcmp.lt.s32.totalorder %v1234_v7, 127  ;;  %p951_p2 = scmp.ne.s32.totalorder %s1353_s9, %s950_s4  ;;  %s1034_s16 = smov [#allocation9]  }
  0x73   : > { %v219_v10 = vand.u32 15, %v1237_v8  ;;  %vm1241_vm0 = vcmp.lt.s32.totalorder %v218_v9, 15  ;;  %vm1246_vm2 = vcmp.ge.s32.totalorder %v218_v9, 1  ;;  %vm366_vm12 = vcmp.lt.s32.totalorder %v1234_v7, 113  ;;  %s954_s27 = sshll.u32 %s1034_s16, 4  ;;  %s955_s27 = int_to_ptr.vmem [resolvable:$false] %s954_s27 }
  0x74   : > { %817 = vrot.lane.b32.xlu1 %v811_v4, %s1028_s24  ;;  %807 = vrot.lane.b32.xlu0 %v811_v4, %s1029_s23  ;;  %vm1259_vm5 = vmand %vm239_vm1, %vm1241_vm0  ;;  %vm370_vm13 = vcmp.lt.s32.totalorder %v1237_v8, 240  ;;  %vm392_vm15 = vcmp.lt.s32.totalorder %v1234_v7, 112  ;;  %p952_p1 = pnand %p951_p2, %p1174_p6  ;;  %s956_s18 = scalar_lea.vmem %s955_s27, 128 }
  0x75   : > { %vm1251_vm4 = vcmp.lt.s32.totalorder %v219_v10, 15  ;;  %vm1264_vm7 = vcmp.ge.s32.totalorder %v219_v10, 1  ;;  %vm1272_vm8 = vmand %vm239_vm1, %vm1246_vm2  ;;  %p957_p8 = scmp.lt.s32.totalorder %s1353_s9, %s955_s27  ;;  %p958_p12 = scmp.lt.s32.totalorder %s956_s18, %s950_s4 }
  0x76   : > { %vm1307_vm14 = vmand %vm370_vm13, %vm1264_vm7  ;;  %p953_p4 = pneg %p952_p1 }
  0x77   : > { %p959_p3 = por %p958_p12, %p957_p8 }
  0x78   : > { %822 = vrot.lane.b32.xlu0 %v811_v4, %s1030_s28  ;;  %827 = vrot.lane.b32.xlu1 %v811_v4, %s1031_s29 }
  0x79   : > { %p960_p7 = pnand %p959_p3, %p953_p4 }
  0x7c   : > { %832 = vrot.lane.b32.xlu0 %v811_v4, %s1032_s22  ;;  %837 = vrot.lane.b32.xlu1 %v811_v4, %s1033_s5 }
  0x80   : > { %447 = vperm.xlu0 %841, %v444_v5  }
  0xe2   : > { %v813_v15 = vpop.permute.xlu1 %812  ;;  %v803_v17 = vpop.permute.xlu0 %802 }
  0xe3   : > { %v815_v18 = vunpack.i.h.bf16 %v813_v15  ;;  %v814_v19 = vunpack.i.l.bf16 %v813_v15  ;;  %v805_v21 = vunpack.i.h.bf16 %v803_v17  ;;  %v804_v22 = vunpack.i.l.bf16 %v803_v17 }
  0xe5   : > { %v287_v23 = vsel %vm286_vm3, %v814_v19, %v815_v18  ;;  %v288_v24 = vsel %vm286_vm3, %v815_v18, %v814_v19  ;;  %v237_v25 = vsel %vm236_vm6, %v804_v22, %v805_v21  ;;  %v238_v26 = vsel %vm236_vm6, %v805_v21, %v804_v22  ;;  %vm418_vm3 = vmand %vm370_vm13, %vm1251_vm4 }
  0xe6   : > { %v297_v27 = vsel %vm1259_vm5, %v288_v24, 0.0  ;;  %v298_v28 = vsel %vm1251_vm4, %v287_v23, 0.0  ;;  %v249_v29 = vsel %vm1272_vm8, %v238_v26, 0.0  ;;  %v250_v30 = vsel %vm1264_vm7, %v237_v25, 0.0  ;;  %v818_v31 = vpop.permute.xlu1 %817  ;;  %v808_v32 = vpop.permute.xlu0 %807 }
  0xe7   : > { %v718_v33 = vpack.c.bf16 %v298_v28, %v297_v27  ;;  %v716_v34 = vpack.c.bf16 %v250_v30, %v249_v29  ;;  %v820_v35 = vunpack.i.h.bf16 %v818_v31  ;;  %v819_v36 = vunpack.i.l.bf16 %v818_v31  ;;  %v434_v28 = vld [vmem:[#allocation6] sm:$0x1] }
  0xe8   : > { %v810_v37 = vunpack.i.h.bf16 %v808_v32  ;;  %v809_v38 = vunpack.i.l.bf16 %v808_v32 }
  0xe9   : > { %307 = vst [vmem:[#allocation2 + $0x10] sm:$0x33] %v718_v33  ;;  %259 = vst [vmem:[#allocation2] sm:$0x33] %v716_v34  ;;  %v313_v39 = vsel %vm312_vm9, %v819_v36, %v820_v35  ;;  %v314_v40 = vsel %vm312_vm9, %v820_v35, %v819_v36 }
  0xea   : > { %v319_v41 = vsel %vm1246_vm2, %v314_v40, 0.0  ;;  %v320_v42 = vsel %vm1264_vm7, %v313_v39, 0.0  ;;  %v265_v43 = vsel %vm264_vm10, %v809_v38, %v810_v37  ;;  %v266_v44 = vsel %vm264_vm10, %v810_v37, %v809_v38  ;;  %v823_v45 = vpop.permute.xlu0 %822  ;;  %v828_v46 = vpop.permute.xlu1 %827 }
  0xeb   : > { %v719_v47 = vpack.c.bf16 %v320_v42, %v319_v41  ;;  %v271_v48 = vsel %vm239_vm1, %v266_v44, 0.0  ;;  %v825_v49 = vunpack.i.h.bf16 %v823_v45  ;;  %v824_v50 = vunpack.i.l.bf16 %v823_v45 }
  0xec   : > { %v717_v51 = vpack.c.bf16 %v265_v43, %v271_v48  ;;  %v830_v53 = vunpack.i.h.bf16 %v828_v46  ;;  %v829_v54 = vunpack.i.l.bf16 %v828_v46  ;;  %vm414_vm1 = vcmp.lt.s32.totalorder %v1234_v7, 111 }
  0xed   : > { %329 = vst [vmem:[#allocation2 + $0x18] sm:$0x33] %v719_v47  ;;  %v345_v55 = vsel %vm344_vm11, %v824_v50, %v825_v49  ;;  %v346_v56 = vsel %vm344_vm11, %v825_v49, %v824_v50 }
  0xee   : > { %281 = vst [vmem:[#allocation2 + $0x8] sm:$0x33] %v717_v51  ;;  %v351_v57 = vsel %vm1241_vm0, %v345_v55, 0.0  ;;  %v352_v58 = vsel %vm1251_vm4, %v346_v56, 0.0  ;;  %v367_v59 = vsel %vm366_vm12, %v829_v54, %v830_v53  ;;  %v368_v60 = vsel %vm366_vm12, %v830_v53, %v829_v54  ;;  %v833_v61 = vpop.permute.xlu0 %832  ;;  %v838_v62 = vpop.permute.xlu1 %837 }
  0xef   : > { %v720_v63 = vpack.c.bf16 %v352_v58, %v351_v57  ;;  %v377_v0 = vsel %vm1246_vm2, %v367_v59, 0.0  ;;  %v378_v1 = vsel %vm1307_vm14, %v368_v60, 0.0  ;;  %v835_v2 = vunpack.i.h.bf16 %v833_v61 }
  0xf0   : > { %v721_v3 = vpack.c.bf16 %v378_v1, %v377_v0  ;;  %v834_v4 = vunpack.i.l.bf16 %v833_v61  ;;  %v840_v5 = vunpack.i.h.bf16 %v838_v62  ;;  %v839_v6 = vunpack.i.l.bf16 %v838_v62 }
  0xf1   : > { %361 = vst [vmem:[#allocation2 + $0x28] sm:$0x33] %v720_v63  ;;  %vm495_vm2 = vcmask 588800  }
  0xf2   : > { %387 = vst [vmem:[#allocation2 + $0x30] sm:$0x33] %v721_v3  ;;  %v393_v9 = vsel %vm392_vm15, %v834_v4, %v835_v2  ;;  %v394_v10 = vsel %vm392_vm15, %v835_v2, %v834_v4  ;;  %v415_v12 = vsel %vm414_vm1, %v839_v6, %v840_v5  ;;  %v416_v14 = vsel %vm414_vm1, %v840_v5, %v839_v6 }
  0xf3   : > { %v400_v13 = vsel %vm370_vm13, %v394_v10, 0.0  ;;  %v423_v15 = vsel %vm1241_vm0, %v415_v12, 0.0  ;;  %v424_v16 = vsel %vm418_vm3, %v416_v14, 0.0  ;;  %vm499_vm0 = vcmask 1043456  }
  0xf4   : > { %v722_v17 = vpack.c.bf16 %v400_v13, %v393_v9  ;;  %v723_v18 = vpack.c.bf16 %v424_v16, %v423_v15  ;;  %v845_v21 = vld [vmem:[#allocation2 + $0x14] ss:$8 sps:$4 sm:$0xff]   ;;  %v847_v7 = vld [vmem:[#allocation2 + $0x10] ss:$8 sps:$4 sm:$0xff]  }
  0xf5   : > { %v842_v19 = vld [vmem:[#allocation2 + $0x4] ss:$8 sps:$4 sm:$0xff]   ;;  %v844_v20 = vld [vmem:[#allocation2] ss:$8 sps:$4 sm:$0xff]  }
  0xf6   : > { %409 = vst [vmem:[#allocation2 + $0x38] sm:$0x33] %v722_v17  ;;  %433 = vst [vmem:[#allocation2 + $0x40] sm:$0x33] %v723_v18  ;;  %506 = vmatprep.subr.bf16.mxu0 %v842_v19 }
  0xf7   : > { %507 = vmatpush1.bf16.msra.mxu0 %v844_v20 }
  0xf8   : > { %508 = vmatprep.subr.bf16.mxu0 %v845_v21  ;;  %v848_v22 = vld [vmem:[#allocation2 + $0x24] ss:$8 sps:$4 sm:$0xff]   ;;  %v850_v23 = vld [vmem:[#allocation2 + $0x20] ss:$8 sps:$4 sm:$0xff]  }
  0xfb   : > { %509 = vmatpush1.bf16.msra.mxu0 %v847_v7 }
  0xfc   : > { %510 = vmatprep.subr.bf16.mxu0 %v848_v22 }
  0xfd   : > { %v851_v8 = vld [vmem:[#allocation2 + $0x34] ss:$8 sps:$4 sm:$0xff]   ;;  %v443_v24 = vld [vmem:[#allocation2 + $0x40] sm:$0xff]  ;;  %v853_v26 = vld [vmem:[#allocation2 + $0x30] ss:$8 sps:$4 sm:$0xff]  }
  0xfe   : > { %v706_v11 = vcombine.high %v443_v24, %v443_v24  ;;  %v705_v25 = vcombine.low %v443_v24, %v443_v24 }
  0xff   : > { %511 = vmatpush1.bf16.msra.mxu0 %v850_v23  ;;  %v448_v29 = vpop.permute.xlu0 %447 }
 0x100   : > { %512 = vmatprep.subr.bf16.mxu0 %v851_v8  ;;  %v501_v27 = vsel %vm499_vm0, %v705_v25, 0 }
 0x103   : > { %513 = vmatpush1.bf16.msra.mxu0 %v853_v26 }
 0x104   : > { %707 = vmatprep.subr.msk.bf16.mxu0 %vm499_vm0, %v706_v11 }
 0x107   : > { %515 = vmatpush1.bf16.msra.mxu0 %v501_v27 }
 0x10a   : > { %708 = vmatmul.mubr.msk.bf16.vlgmr.msra.gmra.mrb[0].mxu0 %vm495_vm2, %v434_v28 }
 0x1dd   : > { %v540_v30 = vpop.f32.mrb[0].mxu0 }
 0x1de   : > { %v541_v31 = vadd.f32 %v540_v30, %v448_v29  ;;  %v542_v32 = vpop.f32.mrb[1].mxu0 }
 0x1df   : > { %v543_v33 = vadd.f32 %v542_v32, %v448_v29  ;;  %v544_v34 = vpop.f32.mrb[2].mxu0 }
 0x1e0   : > { %v547_v35 = vsub.f32 0.0, %v541_v31  ;;  %v545_v36 = vpop.f32.mrb[3].mxu0 }
 0x1e1   : > { %v548_v37 = vsub.f32 0.0, %v543_v33 }
 0x1e2   : > { %v549_v38 = vmul.f32 1.442695, %v547_v35 }
 0x1e3   : > { %v551_v39 = vmul.f32 1.442695, %v548_v37 }
 0x1e4   : > { %856 = vpow2.f32 %v549_v38 }
 0x1e5   : > { %858 = vpow2.f32 %v551_v39 }
 0x1ee   : > { %v857_v40 = vpop.eup %856 }
 0x1ef   : > { %v859_v41 = vpop.eup %858  ;;  %v553_v42 = vadd.f32 1.0, %v857_v40 }
 0x1f0   : > { %v554_v43 = vadd.f32 1.0, %v859_v41 }
 0x1f1   : > { %860 = vrcp.f32 %v553_v42 }
 0x1f2   : > { %862 = vrcp.f32 %v554_v43 }
 0x1fb   : > { %v861_v44 = vpop.eup %860 }
 0x1fc   : > { %v863_v45 = vpop.eup %862 }
 0x1fd   : > { %v561_v46 = vcombine.low %v861_v44, %v863_v45 }
 0x1ff   : > { %709 = vst.sshfl [vmem:[%s211_s7] sm:$0x33 pattern:$0x76325410] %v561_v46 }
 0x200   : > { %963 = shalt.err (!%p960_p7)
}
 0x201   : > { %s964_s21 = scalar_lea.hbm %s1351_s17, 64  ;;  %s968_s23 = scalar_lea.hbm %s1398_s3, 128 }
 0x202   : > { %p965_p10 = scmp.ne.s32.totalorder %s1351_s17, %s964_s21  ;;  %p969_p0 = scmp.lt.u32.totalorder %s1351_s17, %s1398_s3 }
 0x203   : > { %p970_p11 = scmp.lt.u32.totalorder %s968_s23, %s964_s21  ;;  %p972_p2 = scmp.lt.u32.totalorder %s964_s21, %s1351_s17 }
 0x204   : > { %p966_p13 = pnand %p965_p10, %p1174_p6 }
 0x205   : > { %p971_p9 = por %p970_p11, %p969_p0 }
 0x206   : > { %p967_p5 = pneg %p966_p13 }
 0x207   : > { %p973_p1 = por %p972_p2, %p971_p9 }
 0x209   : > { %p974_p4 = pnand %p973_p1, %p967_p5 }
 0x20b   : > { %977 = shalt.err (!%p974_p4)
}
 0x20c   : > { %735 = dma.vmem_to_hbm [thread:$0]  (%p1174_p6), %s1353_s9, 64, %s1351_s17, %s572_s30  }
 0x20d PF: > { %s598_s22 = sand.u32 1, %s1008_s12   ;;  %p1427_p8 = scmp.ne.s32.totalorder %s1403_s19, 0 }
 0x20e   : > { %p1428_p12 = scmp.ge.s32.totalorder %s1020_s15, 2  ;;  %s599_s5 = scalar_lea.sflag [#allocation5], %s598_s22 }
 0x210   : > { %p749_p3 = pnand %p1428_p12, %p1427_p8 }
 0x212   : > { %1003 = dma.done.wait (!%p749_p3), %s599_s5, 64  }
 0x213   : > { %1005 = vsyncadd (!%p749_p3), %s599_s5, 4294967232  ;;  %p17_p7 = scmp.ge.s32.totalorder %s1111_s26, 4   ;;  %s1429_s12 = smov %s1012_s13 }
 0x214   : > { %s1430_s13 = smov %s1016_s14  ;;  %s1431_s14 = smov %s1170_s25 }
 0x215   : > { %s1432_s15 = smov %s1111_s26  ;;  %19 = sbr.rel (!%p17_p7) target bundleno = 6 (0x6), region = 85 }
 0x21c   :  { %604 = vsyncpa [#allocation4], 1 }
 0x21d   :  { %606 = vsyncpa [#allocation4 + $0x1], 1 }
 0x21e   :  { %607 = vsyncpa [#allocation7], 1 }
 0x21f   :  { %608 = vsyncpa [#allocation5], 1 }
 0x220   :  { %610 = vsyncpa [#allocation5 + $0x1], 1 }

</bundles_post_ra>
